<compile_context>
chip_gen: v6e
topology: v6e:2x2x1
jax: 0.10.0
libtpu: 0.0.40
codegen_flags: <defaults>
</compile_context>

<pallas_src>
from functools import partial

import jax
import jax.numpy as jnp
from jax.experimental import pallas as pl
from jax.experimental.pallas import tpu as pltpu

K = 7      # spatial-attention conv kernel size
PAD = 3    # spatial-attention conv padding


def _cbam_kernel(bias_ref, x_ref, w1t_ref, w2t_ref, mwa_ref, mwm_ref, o_ref, *, W):
    # bias_ref : (1,)        f32 SMEM   spatial-conv bias
    # x_ref    : (Nb, C, HW) f32 VMEM   lane-dense input block
    # w1t_ref  : (C, Crp)    f32 VMEM   MLP layer-1 weight (transposed, zero-padded)
    # w2t_ref  : (Crp, C)    f32 VMEM   MLP layer-2 weight (transposed, zero-padded)
    # mwa_ref  : (K*K, HW)   f32 VMEM   per-tap boundary-mask * w[0,0,ki,kj]
    # mwm_ref  : (K*K, HW)   f32 VMEM   per-tap boundary-mask * w[0,1,ki,kj]
    # o_ref    : (Nb, C, HW) f32 VMEM
    Nb, C, HW = x_ref.shape
    x = x_ref[...]                                        # (Nb, C, HW)

    # ---------------- Channel attention ----------------
    pooled_avg = jnp.mean(x, axis=2)                      # (Nb, C)  AdaptiveAvgPool2d(1)
    pooled_max = jnp.max(x, axis=2)                       # (Nb, C)  AdaptiveMaxPool2d(1)

    w1t = w1t_ref[...]                                    # (C, Crp)
    w2t = w2t_ref[...]                                    # (Crp, C)

    def shared_mlp(p):                                    # (Nb, C) -> (Nb, C), on the MXU
        h = jnp.dot(p, w1t, preferred_element_type=jnp.float32)      # (Nb, Crp)
        h = jnp.maximum(h, 0.0)                                       # ReLU
        return jnp.dot(h, w2t, preferred_element_type=jnp.float32)   # (Nb, C)

    ca = jax.nn.sigmoid(shared_mlp(pooled_avg) + shared_mlp(pooled_max))  # (Nb, C)
    out1 = x * ca[:, :, None]                             # (Nb, C, HW)

    # ---------------- Spatial attention ----------------
    # Lane-dense channel reductions (HW on the lane axis).
    avg_c = jnp.mean(out1, axis=1)                        # (Nb, HW)
    max_c = jnp.max(out1, axis=1)                         # (Nb, HW)

    # 7x7 conv over the zero-padded maps, expressed directly in the flat HW
    # layout: tap (ki, kj) is a circular roll by -(di*W + dj) followed by a
    # multiply with the (mask * weight) row.  Valid taps never wrap, invalid
    # positions are masked to zero, so circularity is harmless.
    n_acc = 4
    accs = [jnp.zeros((Nb, HW), jnp.float32) for _ in range(n_acc)]
    t = 0
    for ki in range(K):
        for kj in range(K):
            s = (ki - PAD) * W + (kj - PAD)               # flat offset of this tap
            shift = (-s) % HW
            ra = pltpu.roll(avg_c, shift, axis=1) if shift else avg_c
            rm = pltpu.roll(max_c, shift, axis=1) if shift else max_c
            tap = ki * K + kj
            accs[t % n_acc] = accs[t % n_acc] + ra * mwa_ref[tap] + rm * mwm_ref[tap]
            t += 1
    conv = (accs[0] + accs[1]) + (accs[2] + accs[3]) + bias_ref[0]   # (Nb, HW)

    sa = jax.nn.sigmoid(conv)                             # (Nb, HW)
    o_ref[...] = out1 * sa[:, None, :]                    # (Nb, C, HW), unmasked stores


def _pick_nb(N, C, HW):
    """Batch elements per grid step: ~2 MiB blocks, >= min(N, 8) grid steps."""
    per_elem = C * HW * 4                                  # f32 bytes of one element
    nb = max(1, min(N, (2 * 1024 * 1024) // max(per_elem, 1)))
    target_steps = min(N, 8)                               # keep both v7x TCs busy
    nb = min(nb, max(1, N // target_steps))
    while N % nb:
        nb -= 1
    return nb


def _build_tap_maps(conv_weight, H, W):
    """(mask * weight) rows for the 49 taps of the 7x7 conv, one per channel."""
    HW = H * W
    ii = jnp.arange(H, dtype=jnp.int32)[:, None]
    jj = jnp.arange(W, dtype=jnp.int32)[None, :]
    rows = []
    for ki in range(K):
        for kj in range(K):
            di, dj = ki - PAD, kj - PAD
            valid = ((ii + di >= 0) & (ii + di < H) &
                     (jj + dj >= 0) & (jj + dj < W))
            rows.append(valid.reshape(HW))
    masks = jnp.stack(rows, axis=0).astype(jnp.float32)    # (K*K, HW)
    w = conv_weight.reshape(2, K * K).astype(jnp.float32)  # (2, K*K)
    mwa = masks * w[0][:, None]                            # avg-channel taps
    mwm = masks * w[1][:, None]                            # max-channel taps
    return mwa, mwm


def cbam(x, w1, w2, conv_weight, conv_bias):
    """x: (N, C, H, W) f32
       w1: (C//ratio, C) f32   (first 1x1 conv of shared MLP, no bias)
       w2: (C, C//ratio) f32   (second 1x1 conv of shared MLP, no bias)
       conv_weight: (1, 2, K, K) f32, conv_bias: (1,) f32
       -> (N, C, H, W) f32

       Best performance when H*W is a multiple of 128 (lane-dense); any shape
       is still functionally correct for the tested layouts."""
    N, C, H, W = x.shape
    HW = H * W
    Cr = w1.shape[0]
    Crp = max(8, -(-Cr // 8) * 8)                          # pad hidden dim to sublane multiple

    nb = _pick_nb(N, C, HW)

    x_flat = x.reshape(N, C, HW).astype(jnp.float32)       # lane-dense

    # Shared-MLP weights, pre-transposed and zero-padded so both layers are plain
    # (M,K)@(K,N) MXU matmuls; the zero padding does not change the math.
    w1t = jnp.zeros((C, Crp), jnp.float32).at[:, :Cr].set(w1.T.astype(jnp.float32))
    w2t = jnp.zeros((Crp, C), jnp.float32).at[:Cr, :].set(w2.T.astype(jnp.float32))

    mwa, mwm = _build_tap_maps(conv_weight, H, W)
    bias = conv_bias.reshape(1).astype(jnp.float32)

    out_flat = pl.pallas_call(
        partial(_cbam_kernel, W=W),
        out_shape=jax.ShapeDtypeStruct((N, C, HW), jnp.float32),
        grid=(N // nb,),
        in_specs=[
            pl.BlockSpec(memory_space=pltpu.MemorySpace.SMEM),     # conv bias
            pl.BlockSpec((nb, C, HW), lambda n: (n, 0, 0)),        # x block
            pl.BlockSpec((C, Crp), lambda n: (0, 0)),              # MLP w1^T (padded)
            pl.BlockSpec((Crp, C), lambda n: (0, 0)),              # MLP w2^T (padded)
            pl.BlockSpec((K * K, HW), lambda n: (0, 0)),           # masked conv taps (avg)
            pl.BlockSpec((K * K, HW), lambda n: (0, 0)),           # masked conv taps (max)
        ],
        out_specs=pl.BlockSpec((nb, C, HW), lambda n: (n, 0, 0)),
        compiler_params=pltpu.CompilerParams(
            dimension_semantics=("parallel",)),
    )(bias, x_flat, w1t, w2t, mwa, mwm)

    return out_flat.reshape(N, C, H, W)


def reference(x, w1, w2, conv_w, conv_b):
    """Pure-JAX reference matching the PyTorch CBAM forward exactly."""
    hi = jax.lax.Precision.HIGHEST
    # Channel attention
    avg = jnp.mean(x, axis=(2, 3))
    mx = jnp.max(x, axis=(2, 3))

    def mlp(p):
        h = jnp.maximum(jnp.dot(p, w1.T, precision=hi), 0.0)
        return jnp.dot(h, w2.T, precision=hi)

    ca = jax.nn.sigmoid(mlp(avg) + mlp(mx))[:, :, None, None]
    out1 = ca * x
    # Spatial attention
    avg_c = jnp.mean(out1, axis=1, keepdims=True)
    max_c = jnp.max(out1, axis=1, keepdims=True)
    cat = jnp.concatenate([avg_c, max_c], axis=1)
    conv = jax.lax.conv_general_dilated(
        cat, conv_w, window_strides=(1, 1), padding=((PAD, PAD), (PAD, PAD)),
        dimension_numbers=("NCHW", "OIHW", "NCHW"), precision=hi)
    sa = jax.nn.sigmoid(conv + conv_b.reshape(1, 1, 1, 1))
    return sa * out1


if __name__ == "__main__":
    key = jax.random.PRNGKey(0)
    kx, k1, k2, kw, kb = jax.random.split(key, 5)

    # Small shapes consistent with the module: ratio=16 requires C >= 16,
    # so use batch=2, channels=32, spatial=16x16.
    N, C, H, W, ratio = 2, 32, 16, 16, 16
    Cr = C // ratio

    x = jax.random.normal(kx, (N, C, H, W), dtype=jnp.float32)

    # Channel-attention shared MLP (1x1 convs, bias=False), stored as matrices.
    b1 = 1.0 / (C ** 0.5)
    w1 = jax.random.uniform(k1, (Cr, C), jnp.float32, -b1, b1)
    b2 = 1.0 / (Cr ** 0.5)
    w2 = jax.random.uniform(k2, (C, Cr), jnp.float32, -b2, b2)

    # Spatial-attention Conv2d(2 -> 1, k=7) weights + bias.
    fan_in = 2 * K * K
    bw = 1.0 / (fan_in ** 0.5)
    conv_w = jax.random.uniform(kw, (1, 2, K, K), jnp.float32, -bw, bw)
    conv_b = jax.random.uniform(kb, (1,), jnp.float32, -bw, bw)

    out = cbam(x, w1, w2, conv_w, conv_b)
    jax.block_until_ready(out)

    ref = reference(x, w1, w2, conv_w, conv_b)
    assert out.shape == (N, C, H, W), out.shape
    err = float(jnp.max(jnp.abs(out - ref)))
    assert jnp.allclose(out, ref, atol=1e-4, rtol=1e-4), err
    print("KERNEL_OK")
</pallas_src>

<mosaic_0001>
module attributes {stable_mosaic.version = 11 : i64} {
  func.func @_cbam_kernel(%arg0: i32, %arg1: memref<1xf32, #tpu.memory_space<smem>>, %arg2: memref<1x32x256xf32, #tpu.memory_space<vmem>>, %arg3: memref<32x8xf32, #tpu.memory_space<vmem>>, %arg4: memref<8x32xf32, #tpu.memory_space<vmem>>, %arg5: memref<49x256xf32, #tpu.memory_space<vmem>>, %arg6: memref<49x256xf32, #tpu.memory_space<vmem>>, %arg7: memref<1x32x256xf32, #tpu.memory_space<vmem>>) attributes {dimension_semantics = [#tpu.dimension_semantics<parallel>], iteration_bounds = array<i64: 2>, scalar_prefetch = 0 : i64, scratch_operands = 0 : i64, tpu.core_type = #tpu.core_type<tc>, window_params = [{transform_indices = @transform_0, window_bounds = array<i64: 1>}, {transform_indices = @transform_1, window_bounds = array<i64: 1, 32, 256>}, {pipeline_mode = #tpu.pipeline_mode<synchronous>, transform_indices = @transform_2, window_bounds = array<i64: 32, 8>}, {pipeline_mode = #tpu.pipeline_mode<synchronous>, transform_indices = @transform_3, window_bounds = array<i64: 8, 32>}, {pipeline_mode = #tpu.pipeline_mode<synchronous>, transform_indices = @transform_4, window_bounds = array<i64: 49, 256>}, {pipeline_mode = #tpu.pipeline_mode<synchronous>, transform_indices = @transform_5, window_bounds = array<i64: 49, 256>}, {transform_indices = @transform_6, window_bounds = array<i64: 1, 32, 256>}]} {
    %c0 = arith.constant 0 : index
    %c0_0 = arith.constant 0 : index
    %c0_1 = arith.constant 0 : index
    %0 = vector.load %arg2[%c0, %c0_0, %c0_1] : memref<1x32x256xf32, #tpu.memory_space<vmem>>, vector<1x32x256xf32>
    %cst = arith.constant dense<0.000000e+00> : vector<1x32xf32>
    %1 = vector.multi_reduction <add>, %0, %cst [2] : vector<1x32x256xf32> to vector<1x32xf32>
    %cst_2 = arith.constant 2.560000e+02 : f32
    %2 = vector.broadcast %cst_2 : f32 to vector<1x32xf32>
    %3 = arith.divf %1, %2 : vector<1x32xf32>
    %cst_3 = arith.constant dense<0xFF800000> : vector<1x32xf32>
    %4 = vector.multi_reduction <maximumf>, %0, %cst_3 [2] : vector<1x32x256xf32> to vector<1x32xf32>
    %c0_4 = arith.constant 0 : index
    %c0_5 = arith.constant 0 : index
    %5 = vector.load %arg3[%c0_4, %c0_5] : memref<32x8xf32, #tpu.memory_space<vmem>>, vector<32x8xf32>
    %c0_6 = arith.constant 0 : index
    %c0_7 = arith.constant 0 : index
    %6 = vector.load %arg4[%c0_6, %c0_7] : memref<8x32xf32, #tpu.memory_space<vmem>>, vector<8x32xf32>
    %cst_8 = arith.constant dense<0.000000e+00> : vector<1x8xf32>
    %7 = tpu.matmul %3, %5, %cst_8 {dimension_numbers = #tpu.dot_dimension_numbers<[1], [0], [0], [1], [0, 0, 1, 1], [], []>} : vector<1x32xf32>, vector<32x8xf32>, vector<1x8xf32> -> vector<1x8xf32>
    %cst_9 = arith.constant 0.000000e+00 : f32
    %8 = vector.broadcast %cst_9 : f32 to vector<1x8xf32>
    %9 = arith.maximumf %7, %8 : vector<1x8xf32>
    %cst_10 = arith.constant dense<0.000000e+00> : vector<1x32xf32>
    %10 = tpu.matmul %9, %6, %cst_10 {dimension_numbers = #tpu.dot_dimension_numbers<[1], [0], [0], [1], [0, 0, 1, 1], [], []>} : vector<1x8xf32>, vector<8x32xf32>, vector<1x32xf32> -> vector<1x32xf32>
    %cst_11 = arith.constant dense<0.000000e+00> : vector<1x8xf32>
    %11 = tpu.matmul %4, %5, %cst_11 {dimension_numbers = #tpu.dot_dimension_numbers<[1], [0], [0], [1], [0, 0, 1, 1], [], []>} : vector<1x32xf32>, vector<32x8xf32>, vector<1x8xf32> -> vector<1x8xf32>
    %cst_12 = arith.constant 0.000000e+00 : f32
    %12 = vector.broadcast %cst_12 : f32 to vector<1x8xf32>
    %13 = arith.maximumf %11, %12 : vector<1x8xf32>
    %cst_13 = arith.constant dense<0.000000e+00> : vector<1x32xf32>
    %14 = tpu.matmul %13, %6, %cst_13 {dimension_numbers = #tpu.dot_dimension_numbers<[1], [0], [0], [1], [0, 0, 1, 1], [], []>} : vector<1x8xf32>, vector<8x32xf32>, vector<1x32xf32> -> vector<1x32xf32>
    %15 = arith.addf %10, %14 : vector<1x32xf32>
    %16 = arith.negf %15 : vector<1x32xf32>
    %17 = math.exp %16 : vector<1x32xf32>
    %cst_14 = arith.constant 1.000000e+00 : f32
    %18 = vector.broadcast %cst_14 : f32 to vector<1x32xf32>
    %19 = arith.addf %18, %17 : vector<1x32xf32>
    %20 = arith.divf %18, %19 : vector<1x32xf32>
    %21 = vector.shape_cast %20 : vector<1x32xf32> to vector<1x32x1xf32>
    %22 = vector.broadcast %21 : vector<1x32x1xf32> to vector<1x32x256xf32>
    %23 = arith.mulf %0, %22 : vector<1x32x256xf32>
    %cst_15 = arith.constant dense<0.000000e+00> : vector<1x256xf32>
    %24 = vector.multi_reduction <add>, %23, %cst_15 [1] : vector<1x32x256xf32> to vector<1x256xf32>
    %cst_16 = arith.constant 3.200000e+01 : f32
    %25 = vector.broadcast %cst_16 : f32 to vector<1x256xf32>
    %26 = arith.divf %24, %25 : vector<1x256xf32>
    %cst_17 = arith.constant dense<0xFF800000> : vector<1x256xf32>
    %27 = vector.multi_reduction <maximumf>, %23, %cst_17 [1] : vector<1x32x256xf32> to vector<1x256xf32>
    %cst_18 = arith.constant 0.000000e+00 : f32
    %28 = vector.broadcast %cst_18 : f32 to vector<1x256xf32>
    %cst_19 = arith.constant 0.000000e+00 : f32
    %29 = vector.broadcast %cst_19 : f32 to vector<1x256xf32>
    %cst_20 = arith.constant 0.000000e+00 : f32
    %30 = vector.broadcast %cst_20 : f32 to vector<1x256xf32>
    %cst_21 = arith.constant 0.000000e+00 : f32
    %31 = vector.broadcast %cst_21 : f32 to vector<1x256xf32>
    %c51_i32 = arith.constant 51 : i32
    %32 = tpu.dynamic_rotate %26 by %c51_i32 dim 1 : vector<1x256xf32>, i32 -> vector<1x256xf32>
    %c51_i32_22 = arith.constant 51 : i32
    %33 = tpu.dynamic_rotate %27 by %c51_i32_22 dim 1 : vector<1x256xf32>, i32 -> vector<1x256xf32>
    %c0_23 = arith.constant 0 : index
    %c0_24 = arith.constant 0 : index
    %34 = vector.load %arg5[%c0_23, %c0_24] : memref<49x256xf32, #tpu.memory_space<vmem>>, vector<1x256xf32>
    %35 = vector.shape_cast %34 : vector<1x256xf32> to vector<256xf32>
    %36 = vector.shape_cast %35 : vector<256xf32> to vector<1x256xf32>
    %37 = arith.mulf %32, %36 : vector<1x256xf32>
    %38 = arith.addf %28, %37 : vector<1x256xf32>
    %c0_25 = arith.constant 0 : index
    %c0_26 = arith.constant 0 : index
    %39 = vector.load %arg6[%c0_25, %c0_26] : memref<49x256xf32, #tpu.memory_space<vmem>>, vector<1x256xf32>
    %40 = vector.shape_cast %39 : vector<1x256xf32> to vector<256xf32>
    %41 = vector.shape_cast %40 : vector<256xf32> to vector<1x256xf32>
    %42 = arith.mulf %33, %41 : vector<1x256xf32>
    %43 = arith.addf %38, %42 : vector<1x256xf32>
    %c50_i32 = arith.constant 50 : i32
    %44 = tpu.dynamic_rotate %26 by %c50_i32 dim 1 : vector<1x256xf32>, i32 -> vector<1x256xf32>
    %c50_i32_27 = arith.constant 50 : i32
    %45 = tpu.dynamic_rotate %27 by %c50_i32_27 dim 1 : vector<1x256xf32>, i32 -> vector<1x256xf32>
    %c1 = arith.constant 1 : index
    %c0_28 = arith.constant 0 : index
    %46 = vector.load %arg5[%c1, %c0_28] : memref<49x256xf32, #tpu.memory_space<vmem>>, vector<1x256xf32>
    %47 = vector.shape_cast %46 : vector<1x256xf32> to vector<256xf32>
    %48 = vector.shape_cast %47 : vector<256xf32> to vector<1x256xf32>
    %49 = arith.mulf %44, %48 : vector<1x256xf32>
    %50 = arith.addf %29, %49 : vector<1x256xf32>
    %c1_29 = arith.constant 1 : index
    %c0_30 = arith.constant 0 : index
    %51 = vector.load %arg6[%c1_29, %c0_30] : memref<49x256xf32, #tpu.memory_space<vmem>>, vector<1x256xf32>
    %52 = vector.shape_cast %51 : vector<1x256xf32> to vector<256xf32>
    %53 = vector.shape_cast %52 : vector<256xf32> to vector<1x256xf32>
    %54 = arith.mulf %45, %53 : vector<1x256xf32>
    %55 = arith.addf %50, %54 : vector<1x256xf32>
    %c49_i32 = arith.constant 49 : i32
    %56 = tpu.dynamic_rotate %26 by %c49_i32 dim 1 : vector<1x256xf32>, i32 -> vector<1x256xf32>
    %c49_i32_31 = arith.constant 49 : i32
    %57 = tpu.dynamic_rotate %27 by %c49_i32_31 dim 1 : vector<1x256xf32>, i32 -> vector<1x256xf32>
    %c2 = arith.constant 2 : index
    %c0_32 = arith.constant 0 : index
    %58 = vector.load %arg5[%c2, %c0_32] : memref<49x256xf32, #tpu.memory_space<vmem>>, vector<1x256xf32>
    %59 = vector.shape_cast %58 : vector<1x256xf32> to vector<256xf32>
    %60 = vector.shape_cast %59 : vector<256xf32> to vector<1x256xf32>
    %61 = arith.mulf %56, %60 : vector<1x256xf32>
    %62 = arith.addf %30, %61 : vector<1x256xf32>
    %c2_33 = arith.constant 2 : index
    %c0_34 = arith.constant 0 : index
    %63 = vector.load %arg6[%c2_33, %c0_34] : memref<49x256xf32, #tpu.memory_space<vmem>>, vector<1x256xf32>
    %64 = vector.shape_cast %63 : vector<1x256xf32> to vector<256xf32>
    %65 = vector.shape_cast %64 : vector<256xf32> to vector<1x256xf32>
    %66 = arith.mulf %57, %65 : vector<1x256xf32>
    %67 = arith.addf %62, %66 : vector<1x256xf32>
    %c48_i32 = arith.constant 48 : i32
    %68 = tpu.dynamic_rotate %26 by %c48_i32 dim 1 : vector<1x256xf32>, i32 -> vector<1x256xf32>
    %c48_i32_35 = arith.constant 48 : i32
    %69 = tpu.dynamic_rotate %27 by %c48_i32_35 dim 1 : vector<1x256xf32>, i32 -> vector<1x256xf32>
    %c3 = arith.constant 3 : index
    %c0_36 = arith.constant 0 : index
    %70 = vector.load %arg5[%c3, %c0_36] : memref<49x256xf32, #tpu.memory_space<vmem>>, vector<1x256xf32>
    %71 = vector.shape_cast %70 : vector<1x256xf32> to vector<256xf32>
    %72 = vector.shape_cast %71 : vector<256xf32> to vector<1x256xf32>
    %73 = arith.mulf %68, %72 : vector<1x256xf32>
    %74 = arith.addf %31, %73 : vector<1x256xf32>
    %c3_37 = arith.constant 3 : index
    %c0_38 = arith.constant 0 : index
    %75 = vector.load %arg6[%c3_37, %c0_38] : memref<49x256xf32, #tpu.memory_space<vmem>>, vector<1x256xf32>
    %76 = vector.shape_cast %75 : vector<1x256xf32> to vector<256xf32>
    %77 = vector.shape_cast %76 : vector<256xf32> to vector<1x256xf32>
    %78 = arith.mulf %69, %77 : vector<1x256xf32>
    %79 = arith.addf %74, %78 : vector<1x256xf32>
    %c47_i32 = arith.constant 47 : i32
    %80 = tpu.dynamic_rotate %26 by %c47_i32 dim 1 : vector<1x256xf32>, i32 -> vector<1x256xf32>
    %c47_i32_39 = arith.constant 47 : i32
    %81 = tpu.dynamic_rotate %27 by %c47_i32_39 dim 1 : vector<1x256xf32>, i32 -> vector<1x256xf32>
    %c4 = arith.constant 4 : index
    %c0_40 = arith.constant 0 : index
    %82 = vector.load %arg5[%c4, %c0_40] : memref<49x256xf32, #tpu.memory_space<vmem>>, vector<1x256xf32>
    %83 = vector.shape_cast %82 : vector<1x256xf32> to vector<256xf32>
    %84 = vector.shape_cast %83 : vector<256xf32> to vector<1x256xf32>
    %85 = arith.mulf %80, %84 : vector<1x256xf32>
    %86 = arith.addf %43, %85 : vector<1x256xf32>
    %c4_41 = arith.constant 4 : index
    %c0_42 = arith.constant 0 : index
    %87 = vector.load %arg6[%c4_41, %c0_42] : memref<49x256xf32, #tpu.memory_space<vmem>>, vector<1x256xf32>
    %88 = vector.shape_cast %87 : vector<1x256xf32> to vector<256xf32>
    %89 = vector.shape_cast %88 : vector<256xf32> to vector<1x256xf32>
    %90 = arith.mulf %81, %89 : vector<1x256xf32>
    %91 = arith.addf %86, %90 : vector<1x256xf32>
    %c46_i32 = arith.constant 46 : i32
    %92 = tpu.dynamic_rotate %26 by %c46_i32 dim 1 : vector<1x256xf32>, i32 -> vector<1x256xf32>
    %c46_i32_43 = arith.constant 46 : i32
    %93 = tpu.dynamic_rotate %27 by %c46_i32_43 dim 1 : vector<1x256xf32>, i32 -> vector<1x256xf32>
    %c5 = arith.constant 5 : index
    %c0_44 = arith.constant 0 : index
    %94 = vector.load %arg5[%c5, %c0_44] : memref<49x256xf32, #tpu.memory_space<vmem>>, vector<1x256xf32>
    %95 = vector.shape_cast %94 : vector<1x256xf32> to vector<256xf32>
    %96 = vector.shape_cast %95 : vector<256xf32> to vector<1x256xf32>
    %97 = arith.mulf %92, %96 : vector<1x256xf32>
    %98 = arith.addf %55, %97 : vector<1x256xf32>
    %c5_45 = arith.constant 5 : index
    %c0_46 = arith.constant 0 : index
    %99 = vector.load %arg6[%c5_45, %c0_46] : memref<49x256xf32, #tpu.memory_space<vmem>>, vector<1x256xf32>
    %100 = vector.shape_cast %99 : vector<1x256xf32> to vector<256xf32>
    %101 = vector.shape_cast %100 : vector<256xf32> to vector<1x256xf32>
    %102 = arith.mulf %93, %101 : vector<1x256xf32>
    %103 = arith.addf %98, %102 : vector<1x256xf32>
    %c45_i32 = arith.constant 45 : i32
    %104 = tpu.dynamic_rotate %26 by %c45_i32 dim 1 : vector<1x256xf32>, i32 -> vector<1x256xf32>
    %c45_i32_47 = arith.constant 45 : i32
    %105 = tpu.dynamic_rotate %27 by %c45_i32_47 dim 1 : vector<1x256xf32>, i32 -> vector<1x256xf32>
    %c6 = arith.constant 6 : index
    %c0_48 = arith.constant 0 : index
    %106 = vector.load %arg5[%c6, %c0_48] : memref<49x256xf32, #tpu.memory_space<vmem>>, vector<1x256xf32>
    %107 = vector.shape_cast %106 : vector<1x256xf32> to vector<256xf32>
    %108 = vector.shape_cast %107 : vector<256xf32> to vector<1x256xf32>
    %109 = arith.mulf %104, %108 : vector<1x256xf32>
    %110 = arith.addf %67, %109 : vector<1x256xf32>
    %c6_49 = arith.constant 6 : index
    %c0_50 = arith.constant 0 : index
    %111 = vector.load %arg6[%c6_49, %c0_50] : memref<49x256xf32, #tpu.memory_space<vmem>>, vector<1x256xf32>
    %112 = vector.shape_cast %111 : vector<1x256xf32> to vector<256xf32>
    %113 = vector.shape_cast %112 : vector<256xf32> to vector<1x256xf32>
    %114 = arith.mulf %105, %113 : vector<1x256xf32>
    %115 = arith.addf %110, %114 : vector<1x256xf32>
    %c35_i32 = arith.constant 35 : i32
    %116 = tpu.dynamic_rotate %26 by %c35_i32 dim 1 : vector<1x256xf32>, i32 -> vector<1x256xf32>
    %c35_i32_51 = arith.constant 35 : i32
    %117 = tpu.dynamic_rotate %27 by %c35_i32_51 dim 1 : vector<1x256xf32>, i32 -> vector<1x256xf32>
    %c7 = arith.constant 7 : index
    %c0_52 = arith.constant 0 : index
    %118 = vector.load %arg5[%c7, %c0_52] : memref<49x256xf32, #tpu.memory_space<vmem>>, vector<1x256xf32>
    %119 = vector.shape_cast %118 : vector<1x256xf32> to vector<256xf32>
    %120 = vector.shape_cast %119 : vector<256xf32> to vector<1x256xf32>
    %121 = arith.mulf %116, %120 : vector<1x256xf32>
    %122 = arith.addf %79, %121 : vector<1x256xf32>
    %c7_53 = arith.constant 7 : index
    %c0_54 = arith.constant 0 : index
    %123 = vector.load %arg6[%c7_53, %c0_54] : memref<49x256xf32, #tpu.memory_space<vmem>>, vector<1x256xf32>
    %124 = vector.shape_cast %123 : vector<1x256xf32> to vector<256xf32>
    %125 = vector.shape_cast %124 : vector<256xf32> to vector<1x256xf32>
    %126 = arith.mulf %117, %125 : vector<1x256xf32>
    %127 = arith.addf %122, %126 : vector<1x256xf32>
    %c34_i32 = arith.constant 34 : i32
    %128 = tpu.dynamic_rotate %26 by %c34_i32 dim 1 : vector<1x256xf32>, i32 -> vector<1x256xf32>
    %c34_i32_55 = arith.constant 34 : i32
    %129 = tpu.dynamic_rotate %27 by %c34_i32_55 dim 1 : vector<1x256xf32>, i32 -> vector<1x256xf32>
    %c8 = arith.constant 8 : index
    %c0_56 = arith.constant 0 : index
    %130 = vector.load %arg5[%c8, %c0_56] : memref<49x256xf32, #tpu.memory_space<vmem>>, vector<1x256xf32>
    %131 = vector.shape_cast %130 : vector<1x256xf32> to vector<256xf32>
    %132 = vector.shape_cast %131 : vector<256xf32> to vector<1x256xf32>
    %133 = arith.mulf %128, %132 : vector<1x256xf32>
    %134 = arith.addf %91, %133 : vector<1x256xf32>
    %c8_57 = arith.constant 8 : index
    %c0_58 = arith.constant 0 : index
    %135 = vector.load %arg6[%c8_57, %c0_58] : memref<49x256xf32, #tpu.memory_space<vmem>>, vector<1x256xf32>
    %136 = vector.shape_cast %135 : vector<1x256xf32> to vector<256xf32>
    %137 = vector.shape_cast %136 : vector<256xf32> to vector<1x256xf32>
    %138 = arith.mulf %129, %137 : vector<1x256xf32>
    %139 = arith.addf %134, %138 : vector<1x256xf32>
    %c33_i32 = arith.constant 33 : i32
    %140 = tpu.dynamic_rotate %26 by %c33_i32 dim 1 : vector<1x256xf32>, i32 -> vector<1x256xf32>
    %c33_i32_59 = arith.constant 33 : i32
    %141 = tpu.dynamic_rotate %27 by %c33_i32_59 dim 1 : vector<1x256xf32>, i32 -> vector<1x256xf32>
    %c9 = arith.constant 9 : index
    %c0_60 = arith.constant 0 : index
    %142 = vector.load %arg5[%c9, %c0_60] : memref<49x256xf32, #tpu.memory_space<vmem>>, vector<1x256xf32>
    %143 = vector.shape_cast %142 : vector<1x256xf32> to vector<256xf32>
    %144 = vector.shape_cast %143 : vector<256xf32> to vector<1x256xf32>
    %145 = arith.mulf %140, %144 : vector<1x256xf32>
    %146 = arith.addf %103, %145 : vector<1x256xf32>
    %c9_61 = arith.constant 9 : index
    %c0_62 = arith.constant 0 : index
    %147 = vector.load %arg6[%c9_61, %c0_62] : memref<49x256xf32, #tpu.memory_space<vmem>>, vector<1x256xf32>
    %148 = vector.shape_cast %147 : vector<1x256xf32> to vector<256xf32>
    %149 = vector.shape_cast %148 : vector<256xf32> to vector<1x256xf32>
    %150 = arith.mulf %141, %149 : vector<1x256xf32>
    %151 = arith.addf %146, %150 : vector<1x256xf32>
    %c32_i32 = arith.constant 32 : i32
    %152 = tpu.dynamic_rotate %26 by %c32_i32 dim 1 : vector<1x256xf32>, i32 -> vector<1x256xf32>
    %c32_i32_63 = arith.constant 32 : i32
    %153 = tpu.dynamic_rotate %27 by %c32_i32_63 dim 1 : vector<1x256xf32>, i32 -> vector<1x256xf32>
    %c10 = arith.constant 10 : index
    %c0_64 = arith.constant 0 : index
    %154 = vector.load %arg5[%c10, %c0_64] : memref<49x256xf32, #tpu.memory_space<vmem>>, vector<1x256xf32>
    %155 = vector.shape_cast %154 : vector<1x256xf32> to vector<256xf32>
    %156 = vector.shape_cast %155 : vector<256xf32> to vector<1x256xf32>
    %157 = arith.mulf %152, %156 : vector<1x256xf32>
    %158 = arith.addf %115, %157 : vector<1x256xf32>
    %c10_65 = arith.constant 10 : index
    %c0_66 = arith.constant 0 : index
    %159 = vector.load %arg6[%c10_65, %c0_66] : memref<49x256xf32, #tpu.memory_space<vmem>>, vector<1x256xf32>
    %160 = vector.shape_cast %159 : vector<1x256xf32> to vector<256xf32>
    %161 = vector.shape_cast %160 : vector<256xf32> to vector<1x256xf32>
    %162 = arith.mulf %153, %161 : vector<1x256xf32>
    %163 = arith.addf %158, %162 : vector<1x256xf32>
    %c31_i32 = arith.constant 31 : i32
    %164 = tpu.dynamic_rotate %26 by %c31_i32 dim 1 : vector<1x256xf32>, i32 -> vector<1x256xf32>
    %c31_i32_67 = arith.constant 31 : i32
    %165 = tpu.dynamic_rotate %27 by %c31_i32_67 dim 1 : vector<1x256xf32>, i32 -> vector<1x256xf32>
    %c11 = arith.constant 11 : index
    %c0_68 = arith.constant 0 : index
    %166 = vector.load %arg5[%c11, %c0_68] : memref<49x256xf32, #tpu.memory_space<vmem>>, vector<1x256xf32>
    %167 = vector.shape_cast %166 : vector<1x256xf32> to vector<256xf32>
    %168 = vector.shape_cast %167 : vector<256xf32> to vector<1x256xf32>
    %169 = arith.mulf %164, %168 : vector<1x256xf32>
    %170 = arith.addf %127, %169 : vector<1x256xf32>
    %c11_69 = arith.constant 11 : index
    %c0_70 = arith.constant 0 : index
    %171 = vector.load %arg6[%c11_69, %c0_70] : memref<49x256xf32, #tpu.memory_space<vmem>>, vector<1x256xf32>
    %172 = vector.shape_cast %171 : vector<1x256xf32> to vector<256xf32>
    %173 = vector.shape_cast %172 : vector<256xf32> to vector<1x256xf32>
    %174 = arith.mulf %165, %173 : vector<1x256xf32>
    %175 = arith.addf %170, %174 : vector<1x256xf32>
    %c30_i32 = arith.constant 30 : i32
    %176 = tpu.dynamic_rotate %26 by %c30_i32 dim 1 : vector<1x256xf32>, i32 -> vector<1x256xf32>
    %c30_i32_71 = arith.constant 30 : i32
    %177 = tpu.dynamic_rotate %27 by %c30_i32_71 dim 1 : vector<1x256xf32>, i32 -> vector<1x256xf32>
    %c12 = arith.constant 12 : index
    %c0_72 = arith.constant 0 : index
    %178 = vector.load %arg5[%c12, %c0_72] : memref<49x256xf32, #tpu.memory_space<vmem>>, vector<1x256xf32>
    %179 = vector.shape_cast %178 : vector<1x256xf32> to vector<256xf32>
    %180 = vector.shape_cast %179 : vector<256xf32> to vector<1x256xf32>
    %181 = arith.mulf %176, %180 : vector<1x256xf32>
    %182 = arith.addf %139, %181 : vector<1x256xf32>
    %c12_73 = arith.constant 12 : index
    %c0_74 = arith.constant 0 : index
    %183 = vector.load %arg6[%c12_73, %c0_74] : memref<49x256xf32, #tpu.memory_space<vmem>>, vector<1x256xf32>
    %184 = vector.shape_cast %183 : vector<1x256xf32> to vector<256xf32>
    %185 = vector.shape_cast %184 : vector<256xf32> to vector<1x256xf32>
    %186 = arith.mulf %177, %185 : vector<1x256xf32>
    %187 = arith.addf %182, %186 : vector<1x256xf32>
    %c29_i32 = arith.constant 29 : i32
    %188 = tpu.dynamic_rotate %26 by %c29_i32 dim 1 : vector<1x256xf32>, i32 -> vector<1x256xf32>
    %c29_i32_75 = arith.constant 29 : i32
    %189 = tpu.dynamic_rotate %27 by %c29_i32_75 dim 1 : vector<1x256xf32>, i32 -> vector<1x256xf32>
    %c13 = arith.constant 13 : index
    %c0_76 = arith.constant 0 : index
    %190 = vector.load %arg5[%c13, %c0_76] : memref<49x256xf32, #tpu.memory_space<vmem>>, vector<1x256xf32>
    %191 = vector.shape_cast %190 : vector<1x256xf32> to vector<256xf32>
    %192 = vector.shape_cast %191 : vector<256xf32> to vector<1x256xf32>
    %193 = arith.mulf %188, %192 : vector<1x256xf32>
    %194 = arith.addf %151, %193 : vector<1x256xf32>
    %c13_77 = arith.constant 13 : index
    %c0_78 = arith.constant 0 : index
    %195 = vector.load %arg6[%c13_77, %c0_78] : memref<49x256xf32, #tpu.memory_space<vmem>>, vector<1x256xf32>
    %196 = vector.shape_cast %195 : vector<1x256xf32> to vector<256xf32>
    %197 = vector.shape_cast %196 : vector<256xf32> to vector<1x256xf32>
    %198 = arith.mulf %189, %197 : vector<1x256xf32>
    %199 = arith.addf %194, %198 : vector<1x256xf32>
    %c19_i32 = arith.constant 19 : i32
    %200 = tpu.dynamic_rotate %26 by %c19_i32 dim 1 : vector<1x256xf32>, i32 -> vector<1x256xf32>
    %c19_i32_79 = arith.constant 19 : i32
    %201 = tpu.dynamic_rotate %27 by %c19_i32_79 dim 1 : vector<1x256xf32>, i32 -> vector<1x256xf32>
    %c14 = arith.constant 14 : index
    %c0_80 = arith.constant 0 : index
    %202 = vector.load %arg5[%c14, %c0_80] : memref<49x256xf32, #tpu.memory_space<vmem>>, vector<1x256xf32>
    %203 = vector.shape_cast %202 : vector<1x256xf32> to vector<256xf32>
    %204 = vector.shape_cast %203 : vector<256xf32> to vector<1x256xf32>
    %205 = arith.mulf %200, %204 : vector<1x256xf32>
    %206 = arith.addf %163, %205 : vector<1x256xf32>
    %c14_81 = arith.constant 14 : index
    %c0_82 = arith.constant 0 : index
    %207 = vector.load %arg6[%c14_81, %c0_82] : memref<49x256xf32, #tpu.memory_space<vmem>>, vector<1x256xf32>
    %208 = vector.shape_cast %207 : vector<1x256xf32> to vector<256xf32>
    %209 = vector.shape_cast %208 : vector<256xf32> to vector<1x256xf32>
    %210 = arith.mulf %201, %209 : vector<1x256xf32>
    %211 = arith.addf %206, %210 : vector<1x256xf32>
    %c18_i32 = arith.constant 18 : i32
    %212 = tpu.dynamic_rotate %26 by %c18_i32 dim 1 : vector<1x256xf32>, i32 -> vector<1x256xf32>
    %c18_i32_83 = arith.constant 18 : i32
    %213 = tpu.dynamic_rotate %27 by %c18_i32_83 dim 1 : vector<1x256xf32>, i32 -> vector<1x256xf32>
    %c15 = arith.constant 15 : index
    %c0_84 = arith.constant 0 : index
    %214 = vector.load %arg5[%c15, %c0_84] : memref<49x256xf32, #tpu.memory_space<vmem>>, vector<1x256xf32>
    %215 = vector.shape_cast %214 : vector<1x256xf32> to vector<256xf32>
    %216 = vector.shape_cast %215 : vector<256xf32> to vector<1x256xf32>
    %217 = arith.mulf %212, %216 : vector<1x256xf32>
    %218 = arith.addf %175, %217 : vector<1x256xf32>
    %c15_85 = arith.constant 15 : index
    %c0_86 = arith.constant 0 : index
    %219 = vector.load %arg6[%c15_85, %c0_86] : memref<49x256xf32, #tpu.memory_space<vmem>>, vector<1x256xf32>
    %220 = vector.shape_cast %219 : vector<1x256xf32> to vector<256xf32>
    %221 = vector.shape_cast %220 : vector<256xf32> to vector<1x256xf32>
    %222 = arith.mulf %213, %221 : vector<1x256xf32>
    %223 = arith.addf %218, %222 : vector<1x256xf32>
    %c17_i32 = arith.constant 17 : i32
    %224 = tpu.dynamic_rotate %26 by %c17_i32 dim 1 : vector<1x256xf32>, i32 -> vector<1x256xf32>
    %c17_i32_87 = arith.constant 17 : i32
    %225 = tpu.dynamic_rotate %27 by %c17_i32_87 dim 1 : vector<1x256xf32>, i32 -> vector<1x256xf32>
    %c16 = arith.constant 16 : index
    %c0_88 = arith.constant 0 : index
    %226 = vector.load %arg5[%c16, %c0_88] : memref<49x256xf32, #tpu.memory_space<vmem>>, vector<1x256xf32>
    %227 = vector.shape_cast %226 : vector<1x256xf32> to vector<256xf32>
    %228 = vector.shape_cast %227 : vector<256xf32> to vector<1x256xf32>
    %229 = arith.mulf %224, %228 : vector<1x256xf32>
    %230 = arith.addf %187, %229 : vector<1x256xf32>
    %c16_89 = arith.constant 16 : index
    %c0_90 = arith.constant 0 : index
    %231 = vector.load %arg6[%c16_89, %c0_90] : memref<49x256xf32, #tpu.memory_space<vmem>>, vector<1x256xf32>
    %232 = vector.shape_cast %231 : vector<1x256xf32> to vector<256xf32>
    %233 = vector.shape_cast %232 : vector<256xf32> to vector<1x256xf32>
    %234 = arith.mulf %225, %233 : vector<1x256xf32>
    %235 = arith.addf %230, %234 : vector<1x256xf32>
    %c16_i32 = arith.constant 16 : i32
    %236 = tpu.dynamic_rotate %26 by %c16_i32 dim 1 : vector<1x256xf32>, i32 -> vector<1x256xf32>
    %c16_i32_91 = arith.constant 16 : i32
    %237 = tpu.dynamic_rotate %27 by %c16_i32_91 dim 1 : vector<1x256xf32>, i32 -> vector<1x256xf32>
    %c17 = arith.constant 17 : index
    %c0_92 = arith.constant 0 : index
    %238 = vector.load %arg5[%c17, %c0_92] : memref<49x256xf32, #tpu.memory_space<vmem>>, vector<1x256xf32>
    %239 = vector.shape_cast %238 : vector<1x256xf32> to vector<256xf32>
    %240 = vector.shape_cast %239 : vector<256xf32> to vector<1x256xf32>
    %241 = arith.mulf %236, %240 : vector<1x256xf32>
    %242 = arith.addf %199, %241 : vector<1x256xf32>
    %c17_93 = arith.constant 17 : index
    %c0_94 = arith.constant 0 : index
    %243 = vector.load %arg6[%c17_93, %c0_94] : memref<49x256xf32, #tpu.memory_space<vmem>>, vector<1x256xf32>
    %244 = vector.shape_cast %243 : vector<1x256xf32> to vector<256xf32>
    %245 = vector.shape_cast %244 : vector<256xf32> to vector<1x256xf32>
    %246 = arith.mulf %237, %245 : vector<1x256xf32>
    %247 = arith.addf %242, %246 : vector<1x256xf32>
    %c15_i32 = arith.constant 15 : i32
    %248 = tpu.dynamic_rotate %26 by %c15_i32 dim 1 : vector<1x256xf32>, i32 -> vector<1x256xf32>
    %c15_i32_95 = arith.constant 15 : i32
    %249 = tpu.dynamic_rotate %27 by %c15_i32_95 dim 1 : vector<1x256xf32>, i32 -> vector<1x256xf32>
    %c18 = arith.constant 18 : index
    %c0_96 = arith.constant 0 : index
    %250 = vector.load %arg5[%c18, %c0_96] : memref<49x256xf32, #tpu.memory_space<vmem>>, vector<1x256xf32>
    %251 = vector.shape_cast %250 : vector<1x256xf32> to vector<256xf32>
    %252 = vector.shape_cast %251 : vector<256xf32> to vector<1x256xf32>
    %253 = arith.mulf %248, %252 : vector<1x256xf32>
    %254 = arith.addf %211, %253 : vector<1x256xf32>
    %c18_97 = arith.constant 18 : index
    %c0_98 = arith.constant 0 : index
    %255 = vector.load %arg6[%c18_97, %c0_98] : memref<49x256xf32, #tpu.memory_space<vmem>>, vector<1x256xf32>
    %256 = vector.shape_cast %255 : vector<1x256xf32> to vector<256xf32>
    %257 = vector.shape_cast %256 : vector<256xf32> to vector<1x256xf32>
    %258 = arith.mulf %249, %257 : vector<1x256xf32>
    %259 = arith.addf %254, %258 : vector<1x256xf32>
    %c14_i32 = arith.constant 14 : i32
    %260 = tpu.dynamic_rotate %26 by %c14_i32 dim 1 : vector<1x256xf32>, i32 -> vector<1x256xf32>
    %c14_i32_99 = arith.constant 14 : i32
    %261 = tpu.dynamic_rotate %27 by %c14_i32_99 dim 1 : vector<1x256xf32>, i32 -> vector<1x256xf32>
    %c19 = arith.constant 19 : index
    %c0_100 = arith.constant 0 : index
    %262 = vector.load %arg5[%c19, %c0_100] : memref<49x256xf32, #tpu.memory_space<vmem>>, vector<1x256xf32>
    %263 = vector.shape_cast %262 : vector<1x256xf32> to vector<256xf32>
    %264 = vector.shape_cast %263 : vector<256xf32> to vector<1x256xf32>
    %265 = arith.mulf %260, %264 : vector<1x256xf32>
    %266 = arith.addf %223, %265 : vector<1x256xf32>
    %c19_101 = arith.constant 19 : index
    %c0_102 = arith.constant 0 : index
    %267 = vector.load %arg6[%c19_101, %c0_102] : memref<49x256xf32, #tpu.memory_space<vmem>>, vector<1x256xf32>
    %268 = vector.shape_cast %267 : vector<1x256xf32> to vector<256xf32>
    %269 = vector.shape_cast %268 : vector<256xf32> to vector<1x256xf32>
    %270 = arith.mulf %261, %269 : vector<1x256xf32>
    %271 = arith.addf %266, %270 : vector<1x256xf32>
    %c13_i32 = arith.constant 13 : i32
    %272 = tpu.dynamic_rotate %26 by %c13_i32 dim 1 : vector<1x256xf32>, i32 -> vector<1x256xf32>
    %c13_i32_103 = arith.constant 13 : i32
    %273 = tpu.dynamic_rotate %27 by %c13_i32_103 dim 1 : vector<1x256xf32>, i32 -> vector<1x256xf32>
    %c20 = arith.constant 20 : index
    %c0_104 = arith.constant 0 : index
    %274 = vector.load %arg5[%c20, %c0_104] : memref<49x256xf32, #tpu.memory_space<vmem>>, vector<1x256xf32>
    %275 = vector.shape_cast %274 : vector<1x256xf32> to vector<256xf32>
    %276 = vector.shape_cast %275 : vector<256xf32> to vector<1x256xf32>
    %277 = arith.mulf %272, %276 : vector<1x256xf32>
    %278 = arith.addf %235, %277 : vector<1x256xf32>
    %c20_105 = arith.constant 20 : index
    %c0_106 = arith.constant 0 : index
    %279 = vector.load %arg6[%c20_105, %c0_106] : memref<49x256xf32, #tpu.memory_space<vmem>>, vector<1x256xf32>
    %280 = vector.shape_cast %279 : vector<1x256xf32> to vector<256xf32>
    %281 = vector.shape_cast %280 : vector<256xf32> to vector<1x256xf32>
    %282 = arith.mulf %273, %281 : vector<1x256xf32>
    %283 = arith.addf %278, %282 : vector<1x256xf32>
    %c3_i32 = arith.constant 3 : i32
    %284 = tpu.dynamic_rotate %26 by %c3_i32 dim 1 : vector<1x256xf32>, i32 -> vector<1x256xf32>
    %c3_i32_107 = arith.constant 3 : i32
    %285 = tpu.dynamic_rotate %27 by %c3_i32_107 dim 1 : vector<1x256xf32>, i32 -> vector<1x256xf32>
    %c21 = arith.constant 21 : index
    %c0_108 = arith.constant 0 : index
    %286 = vector.load %arg5[%c21, %c0_108] : memref<49x256xf32, #tpu.memory_space<vmem>>, vector<1x256xf32>
    %287 = vector.shape_cast %286 : vector<1x256xf32> to vector<256xf32>
    %288 = vector.shape_cast %287 : vector<256xf32> to vector<1x256xf32>
    %289 = arith.mulf %284, %288 : vector<1x256xf32>
    %290 = arith.addf %247, %289 : vector<1x256xf32>
    %c21_109 = arith.constant 21 : index
    %c0_110 = arith.constant 0 : index
    %291 = vector.load %arg6[%c21_109, %c0_110] : memref<49x256xf32, #tpu.memory_space<vmem>>, vector<1x256xf32>
    %292 = vector.shape_cast %291 : vector<1x256xf32> to vector<256xf32>
    %293 = vector.shape_cast %292 : vector<256xf32> to vector<1x256xf32>
    %294 = arith.mulf %285, %293 : vector<1x256xf32>
    %295 = arith.addf %290, %294 : vector<1x256xf32>
    %c2_i32 = arith.constant 2 : i32
    %296 = tpu.dynamic_rotate %26 by %c2_i32 dim 1 : vector<1x256xf32>, i32 -> vector<1x256xf32>
    %c2_i32_111 = arith.constant 2 : i32
    %297 = tpu.dynamic_rotate %27 by %c2_i32_111 dim 1 : vector<1x256xf32>, i32 -> vector<1x256xf32>
    %c22 = arith.constant 22 : index
    %c0_112 = arith.constant 0 : index
    %298 = vector.load %arg5[%c22, %c0_112] : memref<49x256xf32, #tpu.memory_space<vmem>>, vector<1x256xf32>
    %299 = vector.shape_cast %298 : vector<1x256xf32> to vector<256xf32>
    %300 = vector.shape_cast %299 : vector<256xf32> to vector<1x256xf32>
    %301 = arith.mulf %296, %300 : vector<1x256xf32>
    %302 = arith.addf %259, %301 : vector<1x256xf32>
    %c22_113 = arith.constant 22 : index
    %c0_114 = arith.constant 0 : index
    %303 = vector.load %arg6[%c22_113, %c0_114] : memref<49x256xf32, #tpu.memory_space<vmem>>, vector<1x256xf32>
    %304 = vector.shape_cast %303 : vector<1x256xf32> to vector<256xf32>
    %305 = vector.shape_cast %304 : vector<256xf32> to vector<1x256xf32>
    %306 = arith.mulf %297, %305 : vector<1x256xf32>
    %307 = arith.addf %302, %306 : vector<1x256xf32>
    %c1_i32 = arith.constant 1 : i32
    %308 = tpu.dynamic_rotate %26 by %c1_i32 dim 1 : vector<1x256xf32>, i32 -> vector<1x256xf32>
    %c1_i32_115 = arith.constant 1 : i32
    %309 = tpu.dynamic_rotate %27 by %c1_i32_115 dim 1 : vector<1x256xf32>, i32 -> vector<1x256xf32>
    %c23 = arith.constant 23 : index
    %c0_116 = arith.constant 0 : index
    %310 = vector.load %arg5[%c23, %c0_116] : memref<49x256xf32, #tpu.memory_space<vmem>>, vector<1x256xf32>
    %311 = vector.shape_cast %310 : vector<1x256xf32> to vector<256xf32>
    %312 = vector.shape_cast %311 : vector<256xf32> to vector<1x256xf32>
    %313 = arith.mulf %308, %312 : vector<1x256xf32>
    %314 = arith.addf %271, %313 : vector<1x256xf32>
    %c23_117 = arith.constant 23 : index
    %c0_118 = arith.constant 0 : index
    %315 = vector.load %arg6[%c23_117, %c0_118] : memref<49x256xf32, #tpu.memory_space<vmem>>, vector<1x256xf32>
    %316 = vector.shape_cast %315 : vector<1x256xf32> to vector<256xf32>
    %317 = vector.shape_cast %316 : vector<256xf32> to vector<1x256xf32>
    %318 = arith.mulf %309, %317 : vector<1x256xf32>
    %319 = arith.addf %314, %318 : vector<1x256xf32>
    %c24 = arith.constant 24 : index
    %c0_119 = arith.constant 0 : index
    %320 = vector.load %arg5[%c24, %c0_119] : memref<49x256xf32, #tpu.memory_space<vmem>>, vector<1x256xf32>
    %321 = vector.shape_cast %320 : vector<1x256xf32> to vector<256xf32>
    %322 = vector.shape_cast %321 : vector<256xf32> to vector<1x256xf32>
    %323 = arith.mulf %26, %322 : vector<1x256xf32>
    %324 = arith.addf %283, %323 : vector<1x256xf32>
    %c24_120 = arith.constant 24 : index
    %c0_121 = arith.constant 0 : index
    %325 = vector.load %arg6[%c24_120, %c0_121] : memref<49x256xf32, #tpu.memory_space<vmem>>, vector<1x256xf32>
    %326 = vector.shape_cast %325 : vector<1x256xf32> to vector<256xf32>
    %327 = vector.shape_cast %326 : vector<256xf32> to vector<1x256xf32>
    %328 = arith.mulf %27, %327 : vector<1x256xf32>
    %329 = arith.addf %324, %328 : vector<1x256xf32>
    %c255_i32 = arith.constant 255 : i32
    %330 = tpu.dynamic_rotate %26 by %c255_i32 dim 1 : vector<1x256xf32>, i32 -> vector<1x256xf32>
    %c255_i32_122 = arith.constant 255 : i32
    %331 = tpu.dynamic_rotate %27 by %c255_i32_122 dim 1 : vector<1x256xf32>, i32 -> vector<1x256xf32>
    %c25 = arith.constant 25 : index
    %c0_123 = arith.constant 0 : index
    %332 = vector.load %arg5[%c25, %c0_123] : memref<49x256xf32, #tpu.memory_space<vmem>>, vector<1x256xf32>
    %333 = vector.shape_cast %332 : vector<1x256xf32> to vector<256xf32>
    %334 = vector.shape_cast %333 : vector<256xf32> to vector<1x256xf32>
    %335 = arith.mulf %330, %334 : vector<1x256xf32>
    %336 = arith.addf %295, %335 : vector<1x256xf32>
    %c25_124 = arith.constant 25 : index
    %c0_125 = arith.constant 0 : index
    %337 = vector.load %arg6[%c25_124, %c0_125] : memref<49x256xf32, #tpu.memory_space<vmem>>, vector<1x256xf32>
    %338 = vector.shape_cast %337 : vector<1x256xf32> to vector<256xf32>
    %339 = vector.shape_cast %338 : vector<256xf32> to vector<1x256xf32>
    %340 = arith.mulf %331, %339 : vector<1x256xf32>
    %341 = arith.addf %336, %340 : vector<1x256xf32>
    %c254_i32 = arith.constant 254 : i32
    %342 = tpu.dynamic_rotate %26 by %c254_i32 dim 1 : vector<1x256xf32>, i32 -> vector<1x256xf32>
    %c254_i32_126 = arith.constant 254 : i32
    %343 = tpu.dynamic_rotate %27 by %c254_i32_126 dim 1 : vector<1x256xf32>, i32 -> vector<1x256xf32>
    %c26 = arith.constant 26 : index
    %c0_127 = arith.constant 0 : index
    %344 = vector.load %arg5[%c26, %c0_127] : memref<49x256xf32, #tpu.memory_space<vmem>>, vector<1x256xf32>
    %345 = vector.shape_cast %344 : vector<1x256xf32> to vector<256xf32>
    %346 = vector.shape_cast %345 : vector<256xf32> to vector<1x256xf32>
    %347 = arith.mulf %342, %346 : vector<1x256xf32>
    %348 = arith.addf %307, %347 : vector<1x256xf32>
    %c26_128 = arith.constant 26 : index
    %c0_129 = arith.constant 0 : index
    %349 = vector.load %arg6[%c26_128, %c0_129] : memref<49x256xf32, #tpu.memory_space<vmem>>, vector<1x256xf32>
    %350 = vector.shape_cast %349 : vector<1x256xf32> to vector<256xf32>
    %351 = vector.shape_cast %350 : vector<256xf32> to vector<1x256xf32>
    %352 = arith.mulf %343, %351 : vector<1x256xf32>
    %353 = arith.addf %348, %352 : vector<1x256xf32>
    %c253_i32 = arith.constant 253 : i32
    %354 = tpu.dynamic_rotate %26 by %c253_i32 dim 1 : vector<1x256xf32>, i32 -> vector<1x256xf32>
    %c253_i32_130 = arith.constant 253 : i32
    %355 = tpu.dynamic_rotate %27 by %c253_i32_130 dim 1 : vector<1x256xf32>, i32 -> vector<1x256xf32>
    %c27 = arith.constant 27 : index
    %c0_131 = arith.constant 0 : index
    %356 = vector.load %arg5[%c27, %c0_131] : memref<49x256xf32, #tpu.memory_space<vmem>>, vector<1x256xf32>
    %357 = vector.shape_cast %356 : vector<1x256xf32> to vector<256xf32>
    %358 = vector.shape_cast %357 : vector<256xf32> to vector<1x256xf32>
    %359 = arith.mulf %354, %358 : vector<1x256xf32>
    %360 = arith.addf %319, %359 : vector<1x256xf32>
    %c27_132 = arith.constant 27 : index
    %c0_133 = arith.constant 0 : index
    %361 = vector.load %arg6[%c27_132, %c0_133] : memref<49x256xf32, #tpu.memory_space<vmem>>, vector<1x256xf32>
    %362 = vector.shape_cast %361 : vector<1x256xf32> to vector<256xf32>
    %363 = vector.shape_cast %362 : vector<256xf32> to vector<1x256xf32>
    %364 = arith.mulf %355, %363 : vector<1x256xf32>
    %365 = arith.addf %360, %364 : vector<1x256xf32>
    %c243_i32 = arith.constant 243 : i32
    %366 = tpu.dynamic_rotate %26 by %c243_i32 dim 1 : vector<1x256xf32>, i32 -> vector<1x256xf32>
    %c243_i32_134 = arith.constant 243 : i32
    %367 = tpu.dynamic_rotate %27 by %c243_i32_134 dim 1 : vector<1x256xf32>, i32 -> vector<1x256xf32>
    %c28 = arith.constant 28 : index
    %c0_135 = arith.constant 0 : index
    %368 = vector.load %arg5[%c28, %c0_135] : memref<49x256xf32, #tpu.memory_space<vmem>>, vector<1x256xf32>
    %369 = vector.shape_cast %368 : vector<1x256xf32> to vector<256xf32>
    %370 = vector.shape_cast %369 : vector<256xf32> to vector<1x256xf32>
    %371 = arith.mulf %366, %370 : vector<1x256xf32>
    %372 = arith.addf %329, %371 : vector<1x256xf32>
    %c28_136 = arith.constant 28 : index
    %c0_137 = arith.constant 0 : index
    %373 = vector.load %arg6[%c28_136, %c0_137] : memref<49x256xf32, #tpu.memory_space<vmem>>, vector<1x256xf32>
    %374 = vector.shape_cast %373 : vector<1x256xf32> to vector<256xf32>
    %375 = vector.shape_cast %374 : vector<256xf32> to vector<1x256xf32>
    %376 = arith.mulf %367, %375 : vector<1x256xf32>
    %377 = arith.addf %372, %376 : vector<1x256xf32>
    %c242_i32 = arith.constant 242 : i32
    %378 = tpu.dynamic_rotate %26 by %c242_i32 dim 1 : vector<1x256xf32>, i32 -> vector<1x256xf32>
    %c242_i32_138 = arith.constant 242 : i32
    %379 = tpu.dynamic_rotate %27 by %c242_i32_138 dim 1 : vector<1x256xf32>, i32 -> vector<1x256xf32>
    %c29 = arith.constant 29 : index
    %c0_139 = arith.constant 0 : index
    %380 = vector.load %arg5[%c29, %c0_139] : memref<49x256xf32, #tpu.memory_space<vmem>>, vector<1x256xf32>
    %381 = vector.shape_cast %380 : vector<1x256xf32> to vector<256xf32>
    %382 = vector.shape_cast %381 : vector<256xf32> to vector<1x256xf32>
    %383 = arith.mulf %378, %382 : vector<1x256xf32>
    %384 = arith.addf %341, %383 : vector<1x256xf32>
    %c29_140 = arith.constant 29 : index
    %c0_141 = arith.constant 0 : index
    %385 = vector.load %arg6[%c29_140, %c0_141] : memref<49x256xf32, #tpu.memory_space<vmem>>, vector<1x256xf32>
    %386 = vector.shape_cast %385 : vector<1x256xf32> to vector<256xf32>
    %387 = vector.shape_cast %386 : vector<256xf32> to vector<1x256xf32>
    %388 = arith.mulf %379, %387 : vector<1x256xf32>
    %389 = arith.addf %384, %388 : vector<1x256xf32>
    %c241_i32 = arith.constant 241 : i32
    %390 = tpu.dynamic_rotate %26 by %c241_i32 dim 1 : vector<1x256xf32>, i32 -> vector<1x256xf32>
    %c241_i32_142 = arith.constant 241 : i32
    %391 = tpu.dynamic_rotate %27 by %c241_i32_142 dim 1 : vector<1x256xf32>, i32 -> vector<1x256xf32>
    %c30 = arith.constant 30 : index
    %c0_143 = arith.constant 0 : index
    %392 = vector.load %arg5[%c30, %c0_143] : memref<49x256xf32, #tpu.memory_space<vmem>>, vector<1x256xf32>
    %393 = vector.shape_cast %392 : vector<1x256xf32> to vector<256xf32>
    %394 = vector.shape_cast %393 : vector<256xf32> to vector<1x256xf32>
    %395 = arith.mulf %390, %394 : vector<1x256xf32>
    %396 = arith.addf %353, %395 : vector<1x256xf32>
    %c30_144 = arith.constant 30 : index
    %c0_145 = arith.constant 0 : index
    %397 = vector.load %arg6[%c30_144, %c0_145] : memref<49x256xf32, #tpu.memory_space<vmem>>, vector<1x256xf32>
    %398 = vector.shape_cast %397 : vector<1x256xf32> to vector<256xf32>
    %399 = vector.shape_cast %398 : vector<256xf32> to vector<1x256xf32>
    %400 = arith.mulf %391, %399 : vector<1x256xf32>
    %401 = arith.addf %396, %400 : vector<1x256xf32>
    %c240_i32 = arith.constant 240 : i32
    %402 = tpu.dynamic_rotate %26 by %c240_i32 dim 1 : vector<1x256xf32>, i32 -> vector<1x256xf32>
    %c240_i32_146 = arith.constant 240 : i32
    %403 = tpu.dynamic_rotate %27 by %c240_i32_146 dim 1 : vector<1x256xf32>, i32 -> vector<1x256xf32>
    %c31 = arith.constant 31 : index
    %c0_147 = arith.constant 0 : index
    %404 = vector.load %arg5[%c31, %c0_147] : memref<49x256xf32, #tpu.memory_space<vmem>>, vector<1x256xf32>
    %405 = vector.shape_cast %404 : vector<1x256xf32> to vector<256xf32>
    %406 = vector.shape_cast %405 : vector<256xf32> to vector<1x256xf32>
    %407 = arith.mulf %402, %406 : vector<1x256xf32>
    %408 = arith.addf %365, %407 : vector<1x256xf32>
    %c31_148 = arith.constant 31 : index
    %c0_149 = arith.constant 0 : index
    %409 = vector.load %arg6[%c31_148, %c0_149] : memref<49x256xf32, #tpu.memory_space<vmem>>, vector<1x256xf32>
    %410 = vector.shape_cast %409 : vector<1x256xf32> to vector<256xf32>
    %411 = vector.shape_cast %410 : vector<256xf32> to vector<1x256xf32>
    %412 = arith.mulf %403, %411 : vector<1x256xf32>
    %413 = arith.addf %408, %412 : vector<1x256xf32>
    %c239_i32 = arith.constant 239 : i32
    %414 = tpu.dynamic_rotate %26 by %c239_i32 dim 1 : vector<1x256xf32>, i32 -> vector<1x256xf32>
    %c239_i32_150 = arith.constant 239 : i32
    %415 = tpu.dynamic_rotate %27 by %c239_i32_150 dim 1 : vector<1x256xf32>, i32 -> vector<1x256xf32>
    %c32 = arith.constant 32 : index
    %c0_151 = arith.constant 0 : index
    %416 = vector.load %arg5[%c32, %c0_151] : memref<49x256xf32, #tpu.memory_space<vmem>>, vector<1x256xf32>
    %417 = vector.shape_cast %416 : vector<1x256xf32> to vector<256xf32>
    %418 = vector.shape_cast %417 : vector<256xf32> to vector<1x256xf32>
    %419 = arith.mulf %414, %418 : vector<1x256xf32>
    %420 = arith.addf %377, %419 : vector<1x256xf32>
    %c32_152 = arith.constant 32 : index
    %c0_153 = arith.constant 0 : index
    %421 = vector.load %arg6[%c32_152, %c0_153] : memref<49x256xf32, #tpu.memory_space<vmem>>, vector<1x256xf32>
    %422 = vector.shape_cast %421 : vector<1x256xf32> to vector<256xf32>
    %423 = vector.shape_cast %422 : vector<256xf32> to vector<1x256xf32>
    %424 = arith.mulf %415, %423 : vector<1x256xf32>
    %425 = arith.addf %420, %424 : vector<1x256xf32>
    %c238_i32 = arith.constant 238 : i32
    %426 = tpu.dynamic_rotate %26 by %c238_i32 dim 1 : vector<1x256xf32>, i32 -> vector<1x256xf32>
    %c238_i32_154 = arith.constant 238 : i32
    %427 = tpu.dynamic_rotate %27 by %c238_i32_154 dim 1 : vector<1x256xf32>, i32 -> vector<1x256xf32>
    %c33 = arith.constant 33 : index
    %c0_155 = arith.constant 0 : index
    %428 = vector.load %arg5[%c33, %c0_155] : memref<49x256xf32, #tpu.memory_space<vmem>>, vector<1x256xf32>
    %429 = vector.shape_cast %428 : vector<1x256xf32> to vector<256xf32>
    %430 = vector.shape_cast %429 : vector<256xf32> to vector<1x256xf32>
    %431 = arith.mulf %426, %430 : vector<1x256xf32>
    %432 = arith.addf %389, %431 : vector<1x256xf32>
    %c33_156 = arith.constant 33 : index
    %c0_157 = arith.constant 0 : index
    %433 = vector.load %arg6[%c33_156, %c0_157] : memref<49x256xf32, #tpu.memory_space<vmem>>, vector<1x256xf32>
    %434 = vector.shape_cast %433 : vector<1x256xf32> to vector<256xf32>
    %435 = vector.shape_cast %434 : vector<256xf32> to vector<1x256xf32>
    %436 = arith.mulf %427, %435 : vector<1x256xf32>
    %437 = arith.addf %432, %436 : vector<1x256xf32>
    %c237_i32 = arith.constant 237 : i32
    %438 = tpu.dynamic_rotate %26 by %c237_i32 dim 1 : vector<1x256xf32>, i32 -> vector<1x256xf32>
    %c237_i32_158 = arith.constant 237 : i32
    %439 = tpu.dynamic_rotate %27 by %c237_i32_158 dim 1 : vector<1x256xf32>, i32 -> vector<1x256xf32>
    %c34 = arith.constant 34 : index
    %c0_159 = arith.constant 0 : index
    %440 = vector.load %arg5[%c34, %c0_159] : memref<49x256xf32, #tpu.memory_space<vmem>>, vector<1x256xf32>
    %441 = vector.shape_cast %440 : vector<1x256xf32> to vector<256xf32>
    %442 = vector.shape_cast %441 : vector<256xf32> to vector<1x256xf32>
    %443 = arith.mulf %438, %442 : vector<1x256xf32>
    %444 = arith.addf %401, %443 : vector<1x256xf32>
    %c34_160 = arith.constant 34 : index
    %c0_161 = arith.constant 0 : index
    %445 = vector.load %arg6[%c34_160, %c0_161] : memref<49x256xf32, #tpu.memory_space<vmem>>, vector<1x256xf32>
    %446 = vector.shape_cast %445 : vector<1x256xf32> to vector<256xf32>
    %447 = vector.shape_cast %446 : vector<256xf32> to vector<1x256xf32>
    %448 = arith.mulf %439, %447 : vector<1x256xf32>
    %449 = arith.addf %444, %448 : vector<1x256xf32>
    %c227_i32 = arith.constant 227 : i32
    %450 = tpu.dynamic_rotate %26 by %c227_i32 dim 1 : vector<1x256xf32>, i32 -> vector<1x256xf32>
    %c227_i32_162 = arith.constant 227 : i32
    %451 = tpu.dynamic_rotate %27 by %c227_i32_162 dim 1 : vector<1x256xf32>, i32 -> vector<1x256xf32>
    %c35 = arith.constant 35 : index
    %c0_163 = arith.constant 0 : index
    %452 = vector.load %arg5[%c35, %c0_163] : memref<49x256xf32, #tpu.memory_space<vmem>>, vector<1x256xf32>
    %453 = vector.shape_cast %452 : vector<1x256xf32> to vector<256xf32>
    %454 = vector.shape_cast %453 : vector<256xf32> to vector<1x256xf32>
    %455 = arith.mulf %450, %454 : vector<1x256xf32>
    %456 = arith.addf %413, %455 : vector<1x256xf32>
    %c35_164 = arith.constant 35 : index
    %c0_165 = arith.constant 0 : index
    %457 = vector.load %arg6[%c35_164, %c0_165] : memref<49x256xf32, #tpu.memory_space<vmem>>, vector<1x256xf32>
    %458 = vector.shape_cast %457 : vector<1x256xf32> to vector<256xf32>
    %459 = vector.shape_cast %458 : vector<256xf32> to vector<1x256xf32>
    %460 = arith.mulf %451, %459 : vector<1x256xf32>
    %461 = arith.addf %456, %460 : vector<1x256xf32>
    %c226_i32 = arith.constant 226 : i32
    %462 = tpu.dynamic_rotate %26 by %c226_i32 dim 1 : vector<1x256xf32>, i32 -> vector<1x256xf32>
    %c226_i32_166 = arith.constant 226 : i32
    %463 = tpu.dynamic_rotate %27 by %c226_i32_166 dim 1 : vector<1x256xf32>, i32 -> vector<1x256xf32>
    %c36 = arith.constant 36 : index
    %c0_167 = arith.constant 0 : index
    %464 = vector.load %arg5[%c36, %c0_167] : memref<49x256xf32, #tpu.memory_space<vmem>>, vector<1x256xf32>
    %465 = vector.shape_cast %464 : vector<1x256xf32> to vector<256xf32>
    %466 = vector.shape_cast %465 : vector<256xf32> to vector<1x256xf32>
    %467 = arith.mulf %462, %466 : vector<1x256xf32>
    %468 = arith.addf %425, %467 : vector<1x256xf32>
    %c36_168 = arith.constant 36 : index
    %c0_169 = arith.constant 0 : index
    %469 = vector.load %arg6[%c36_168, %c0_169] : memref<49x256xf32, #tpu.memory_space<vmem>>, vector<1x256xf32>
    %470 = vector.shape_cast %469 : vector<1x256xf32> to vector<256xf32>
    %471 = vector.shape_cast %470 : vector<256xf32> to vector<1x256xf32>
    %472 = arith.mulf %463, %471 : vector<1x256xf32>
    %473 = arith.addf %468, %472 : vector<1x256xf32>
    %c225_i32 = arith.constant 225 : i32
    %474 = tpu.dynamic_rotate %26 by %c225_i32 dim 1 : vector<1x256xf32>, i32 -> vector<1x256xf32>
    %c225_i32_170 = arith.constant 225 : i32
    %475 = tpu.dynamic_rotate %27 by %c225_i32_170 dim 1 : vector<1x256xf32>, i32 -> vector<1x256xf32>
    %c37 = arith.constant 37 : index
    %c0_171 = arith.constant 0 : index
    %476 = vector.load %arg5[%c37, %c0_171] : memref<49x256xf32, #tpu.memory_space<vmem>>, vector<1x256xf32>
    %477 = vector.shape_cast %476 : vector<1x256xf32> to vector<256xf32>
    %478 = vector.shape_cast %477 : vector<256xf32> to vector<1x256xf32>
    %479 = arith.mulf %474, %478 : vector<1x256xf32>
    %480 = arith.addf %437, %479 : vector<1x256xf32>
    %c37_172 = arith.constant 37 : index
    %c0_173 = arith.constant 0 : index
    %481 = vector.load %arg6[%c37_172, %c0_173] : memref<49x256xf32, #tpu.memory_space<vmem>>, vector<1x256xf32>
    %482 = vector.shape_cast %481 : vector<1x256xf32> to vector<256xf32>
    %483 = vector.shape_cast %482 : vector<256xf32> to vector<1x256xf32>
    %484 = arith.mulf %475, %483 : vector<1x256xf32>
    %485 = arith.addf %480, %484 : vector<1x256xf32>
    %c224_i32 = arith.constant 224 : i32
    %486 = tpu.dynamic_rotate %26 by %c224_i32 dim 1 : vector<1x256xf32>, i32 -> vector<1x256xf32>
    %c224_i32_174 = arith.constant 224 : i32
    %487 = tpu.dynamic_rotate %27 by %c224_i32_174 dim 1 : vector<1x256xf32>, i32 -> vector<1x256xf32>
    %c38 = arith.constant 38 : index
    %c0_175 = arith.constant 0 : index
    %488 = vector.load %arg5[%c38, %c0_175] : memref<49x256xf32, #tpu.memory_space<vmem>>, vector<1x256xf32>
    %489 = vector.shape_cast %488 : vector<1x256xf32> to vector<256xf32>
    %490 = vector.shape_cast %489 : vector<256xf32> to vector<1x256xf32>
    %491 = arith.mulf %486, %490 : vector<1x256xf32>
    %492 = arith.addf %449, %491 : vector<1x256xf32>
    %c38_176 = arith.constant 38 : index
    %c0_177 = arith.constant 0 : index
    %493 = vector.load %arg6[%c38_176, %c0_177] : memref<49x256xf32, #tpu.memory_space<vmem>>, vector<1x256xf32>
    %494 = vector.shape_cast %493 : vector<1x256xf32> to vector<256xf32>
    %495 = vector.shape_cast %494 : vector<256xf32> to vector<1x256xf32>
    %496 = arith.mulf %487, %495 : vector<1x256xf32>
    %497 = arith.addf %492, %496 : vector<1x256xf32>
    %c223_i32 = arith.constant 223 : i32
    %498 = tpu.dynamic_rotate %26 by %c223_i32 dim 1 : vector<1x256xf32>, i32 -> vector<1x256xf32>
    %c223_i32_178 = arith.constant 223 : i32
    %499 = tpu.dynamic_rotate %27 by %c223_i32_178 dim 1 : vector<1x256xf32>, i32 -> vector<1x256xf32>
    %c39 = arith.constant 39 : index
    %c0_179 = arith.constant 0 : index
    %500 = vector.load %arg5[%c39, %c0_179] : memref<49x256xf32, #tpu.memory_space<vmem>>, vector<1x256xf32>
    %501 = vector.shape_cast %500 : vector<1x256xf32> to vector<256xf32>
    %502 = vector.shape_cast %501 : vector<256xf32> to vector<1x256xf32>
    %503 = arith.mulf %498, %502 : vector<1x256xf32>
    %504 = arith.addf %461, %503 : vector<1x256xf32>
    %c39_180 = arith.constant 39 : index
    %c0_181 = arith.constant 0 : index
    %505 = vector.load %arg6[%c39_180, %c0_181] : memref<49x256xf32, #tpu.memory_space<vmem>>, vector<1x256xf32>
    %506 = vector.shape_cast %505 : vector<1x256xf32> to vector<256xf32>
    %507 = vector.shape_cast %506 : vector<256xf32> to vector<1x256xf32>
    %508 = arith.mulf %499, %507 : vector<1x256xf32>
    %509 = arith.addf %504, %508 : vector<1x256xf32>
    %c222_i32 = arith.constant 222 : i32
    %510 = tpu.dynamic_rotate %26 by %c222_i32 dim 1 : vector<1x256xf32>, i32 -> vector<1x256xf32>
    %c222_i32_182 = arith.constant 222 : i32
    %511 = tpu.dynamic_rotate %27 by %c222_i32_182 dim 1 : vector<1x256xf32>, i32 -> vector<1x256xf32>
    %c40 = arith.constant 40 : index
    %c0_183 = arith.constant 0 : index
    %512 = vector.load %arg5[%c40, %c0_183] : memref<49x256xf32, #tpu.memory_space<vmem>>, vector<1x256xf32>
    %513 = vector.shape_cast %512 : vector<1x256xf32> to vector<256xf32>
    %514 = vector.shape_cast %513 : vector<256xf32> to vector<1x256xf32>
    %515 = arith.mulf %510, %514 : vector<1x256xf32>
    %516 = arith.addf %473, %515 : vector<1x256xf32>
    %c40_184 = arith.constant 40 : index
    %c0_185 = arith.constant 0 : index
    %517 = vector.load %arg6[%c40_184, %c0_185] : memref<49x256xf32, #tpu.memory_space<vmem>>, vector<1x256xf32>
    %518 = vector.shape_cast %517 : vector<1x256xf32> to vector<256xf32>
    %519 = vector.shape_cast %518 : vector<256xf32> to vector<1x256xf32>
    %520 = arith.mulf %511, %519 : vector<1x256xf32>
    %521 = arith.addf %516, %520 : vector<1x256xf32>
    %c221_i32 = arith.constant 221 : i32
    %522 = tpu.dynamic_rotate %26 by %c221_i32 dim 1 : vector<1x256xf32>, i32 -> vector<1x256xf32>
    %c221_i32_186 = arith.constant 221 : i32
    %523 = tpu.dynamic_rotate %27 by %c221_i32_186 dim 1 : vector<1x256xf32>, i32 -> vector<1x256xf32>
    %c41 = arith.constant 41 : index
    %c0_187 = arith.constant 0 : index
    %524 = vector.load %arg5[%c41, %c0_187] : memref<49x256xf32, #tpu.memory_space<vmem>>, vector<1x256xf32>
    %525 = vector.shape_cast %524 : vector<1x256xf32> to vector<256xf32>
    %526 = vector.shape_cast %525 : vector<256xf32> to vector<1x256xf32>
    %527 = arith.mulf %522, %526 : vector<1x256xf32>
    %528 = arith.addf %485, %527 : vector<1x256xf32>
    %c41_188 = arith.constant 41 : index
    %c0_189 = arith.constant 0 : index
    %529 = vector.load %arg6[%c41_188, %c0_189] : memref<49x256xf32, #tpu.memory_space<vmem>>, vector<1x256xf32>
    %530 = vector.shape_cast %529 : vector<1x256xf32> to vector<256xf32>
    %531 = vector.shape_cast %530 : vector<256xf32> to vector<1x256xf32>
    %532 = arith.mulf %523, %531 : vector<1x256xf32>
    %533 = arith.addf %528, %532 : vector<1x256xf32>
    %c211_i32 = arith.constant 211 : i32
    %534 = tpu.dynamic_rotate %26 by %c211_i32 dim 1 : vector<1x256xf32>, i32 -> vector<1x256xf32>
    %c211_i32_190 = arith.constant 211 : i32
    %535 = tpu.dynamic_rotate %27 by %c211_i32_190 dim 1 : vector<1x256xf32>, i32 -> vector<1x256xf32>
    %c42 = arith.constant 42 : index
    %c0_191 = arith.constant 0 : index
    %536 = vector.load %arg5[%c42, %c0_191] : memref<49x256xf32, #tpu.memory_space<vmem>>, vector<1x256xf32>
    %537 = vector.shape_cast %536 : vector<1x256xf32> to vector<256xf32>
    %538 = vector.shape_cast %537 : vector<256xf32> to vector<1x256xf32>
    %539 = arith.mulf %534, %538 : vector<1x256xf32>
    %540 = arith.addf %497, %539 : vector<1x256xf32>
    %c42_192 = arith.constant 42 : index
    %c0_193 = arith.constant 0 : index
    %541 = vector.load %arg6[%c42_192, %c0_193] : memref<49x256xf32, #tpu.memory_space<vmem>>, vector<1x256xf32>
    %542 = vector.shape_cast %541 : vector<1x256xf32> to vector<256xf32>
    %543 = vector.shape_cast %542 : vector<256xf32> to vector<1x256xf32>
    %544 = arith.mulf %535, %543 : vector<1x256xf32>
    %545 = arith.addf %540, %544 : vector<1x256xf32>
    %c210_i32 = arith.constant 210 : i32
    %546 = tpu.dynamic_rotate %26 by %c210_i32 dim 1 : vector<1x256xf32>, i32 -> vector<1x256xf32>
    %c210_i32_194 = arith.constant 210 : i32
    %547 = tpu.dynamic_rotate %27 by %c210_i32_194 dim 1 : vector<1x256xf32>, i32 -> vector<1x256xf32>
    %c43 = arith.constant 43 : index
    %c0_195 = arith.constant 0 : index
    %548 = vector.load %arg5[%c43, %c0_195] : memref<49x256xf32, #tpu.memory_space<vmem>>, vector<1x256xf32>
    %549 = vector.shape_cast %548 : vector<1x256xf32> to vector<256xf32>
    %550 = vector.shape_cast %549 : vector<256xf32> to vector<1x256xf32>
    %551 = arith.mulf %546, %550 : vector<1x256xf32>
    %552 = arith.addf %509, %551 : vector<1x256xf32>
    %c43_196 = arith.constant 43 : index
    %c0_197 = arith.constant 0 : index
    %553 = vector.load %arg6[%c43_196, %c0_197] : memref<49x256xf32, #tpu.memory_space<vmem>>, vector<1x256xf32>
    %554 = vector.shape_cast %553 : vector<1x256xf32> to vector<256xf32>
    %555 = vector.shape_cast %554 : vector<256xf32> to vector<1x256xf32>
    %556 = arith.mulf %547, %555 : vector<1x256xf32>
    %557 = arith.addf %552, %556 : vector<1x256xf32>
    %c209_i32 = arith.constant 209 : i32
    %558 = tpu.dynamic_rotate %26 by %c209_i32 dim 1 : vector<1x256xf32>, i32 -> vector<1x256xf32>
    %c209_i32_198 = arith.constant 209 : i32
    %559 = tpu.dynamic_rotate %27 by %c209_i32_198 dim 1 : vector<1x256xf32>, i32 -> vector<1x256xf32>
    %c44 = arith.constant 44 : index
    %c0_199 = arith.constant 0 : index
    %560 = vector.load %arg5[%c44, %c0_199] : memref<49x256xf32, #tpu.memory_space<vmem>>, vector<1x256xf32>
    %561 = vector.shape_cast %560 : vector<1x256xf32> to vector<256xf32>
    %562 = vector.shape_cast %561 : vector<256xf32> to vector<1x256xf32>
    %563 = arith.mulf %558, %562 : vector<1x256xf32>
    %564 = arith.addf %521, %563 : vector<1x256xf32>
    %c44_200 = arith.constant 44 : index
    %c0_201 = arith.constant 0 : index
    %565 = vector.load %arg6[%c44_200, %c0_201] : memref<49x256xf32, #tpu.memory_space<vmem>>, vector<1x256xf32>
    %566 = vector.shape_cast %565 : vector<1x256xf32> to vector<256xf32>
    %567 = vector.shape_cast %566 : vector<256xf32> to vector<1x256xf32>
    %568 = arith.mulf %559, %567 : vector<1x256xf32>
    %569 = arith.addf %564, %568 : vector<1x256xf32>
    %c208_i32 = arith.constant 208 : i32
    %570 = tpu.dynamic_rotate %26 by %c208_i32 dim 1 : vector<1x256xf32>, i32 -> vector<1x256xf32>
    %c208_i32_202 = arith.constant 208 : i32
    %571 = tpu.dynamic_rotate %27 by %c208_i32_202 dim 1 : vector<1x256xf32>, i32 -> vector<1x256xf32>
    %c45 = arith.constant 45 : index
    %c0_203 = arith.constant 0 : index
    %572 = vector.load %arg5[%c45, %c0_203] : memref<49x256xf32, #tpu.memory_space<vmem>>, vector<1x256xf32>
    %573 = vector.shape_cast %572 : vector<1x256xf32> to vector<256xf32>
    %574 = vector.shape_cast %573 : vector<256xf32> to vector<1x256xf32>
    %575 = arith.mulf %570, %574 : vector<1x256xf32>
    %576 = arith.addf %533, %575 : vector<1x256xf32>
    %c45_204 = arith.constant 45 : index
    %c0_205 = arith.constant 0 : index
    %577 = vector.load %arg6[%c45_204, %c0_205] : memref<49x256xf32, #tpu.memory_space<vmem>>, vector<1x256xf32>
    %578 = vector.shape_cast %577 : vector<1x256xf32> to vector<256xf32>
    %579 = vector.shape_cast %578 : vector<256xf32> to vector<1x256xf32>
    %580 = arith.mulf %571, %579 : vector<1x256xf32>
    %581 = arith.addf %576, %580 : vector<1x256xf32>
    %c207_i32 = arith.constant 207 : i32
    %582 = tpu.dynamic_rotate %26 by %c207_i32 dim 1 : vector<1x256xf32>, i32 -> vector<1x256xf32>
    %c207_i32_206 = arith.constant 207 : i32
    %583 = tpu.dynamic_rotate %27 by %c207_i32_206 dim 1 : vector<1x256xf32>, i32 -> vector<1x256xf32>
    %c46 = arith.constant 46 : index
    %c0_207 = arith.constant 0 : index
    %584 = vector.load %arg5[%c46, %c0_207] : memref<49x256xf32, #tpu.memory_space<vmem>>, vector<1x256xf32>
    %585 = vector.shape_cast %584 : vector<1x256xf32> to vector<256xf32>
    %586 = vector.shape_cast %585 : vector<256xf32> to vector<1x256xf32>
    %587 = arith.mulf %582, %586 : vector<1x256xf32>
    %588 = arith.addf %545, %587 : vector<1x256xf32>
    %c46_208 = arith.constant 46 : index
    %c0_209 = arith.constant 0 : index
    %589 = vector.load %arg6[%c46_208, %c0_209] : memref<49x256xf32, #tpu.memory_space<vmem>>, vector<1x256xf32>
    %590 = vector.shape_cast %589 : vector<1x256xf32> to vector<256xf32>
    %591 = vector.shape_cast %590 : vector<256xf32> to vector<1x256xf32>
    %592 = arith.mulf %583, %591 : vector<1x256xf32>
    %593 = arith.addf %588, %592 : vector<1x256xf32>
    %c206_i32 = arith.constant 206 : i32
    %594 = tpu.dynamic_rotate %26 by %c206_i32 dim 1 : vector<1x256xf32>, i32 -> vector<1x256xf32>
    %c206_i32_210 = arith.constant 206 : i32
    %595 = tpu.dynamic_rotate %27 by %c206_i32_210 dim 1 : vector<1x256xf32>, i32 -> vector<1x256xf32>
    %c47 = arith.constant 47 : index
    %c0_211 = arith.constant 0 : index
    %596 = vector.load %arg5[%c47, %c0_211] : memref<49x256xf32, #tpu.memory_space<vmem>>, vector<1x256xf32>
    %597 = vector.shape_cast %596 : vector<1x256xf32> to vector<256xf32>
    %598 = vector.shape_cast %597 : vector<256xf32> to vector<1x256xf32>
    %599 = arith.mulf %594, %598 : vector<1x256xf32>
    %600 = arith.addf %557, %599 : vector<1x256xf32>
    %c47_212 = arith.constant 47 : index
    %c0_213 = arith.constant 0 : index
    %601 = vector.load %arg6[%c47_212, %c0_213] : memref<49x256xf32, #tpu.memory_space<vmem>>, vector<1x256xf32>
    %602 = vector.shape_cast %601 : vector<1x256xf32> to vector<256xf32>
    %603 = vector.shape_cast %602 : vector<256xf32> to vector<1x256xf32>
    %604 = arith.mulf %595, %603 : vector<1x256xf32>
    %605 = arith.addf %600, %604 : vector<1x256xf32>
    %c205_i32 = arith.constant 205 : i32
    %606 = tpu.dynamic_rotate %26 by %c205_i32 dim 1 : vector<1x256xf32>, i32 -> vector<1x256xf32>
    %c205_i32_214 = arith.constant 205 : i32
    %607 = tpu.dynamic_rotate %27 by %c205_i32_214 dim 1 : vector<1x256xf32>, i32 -> vector<1x256xf32>
    %c48 = arith.constant 48 : index
    %c0_215 = arith.constant 0 : index
    %608 = vector.load %arg5[%c48, %c0_215] : memref<49x256xf32, #tpu.memory_space<vmem>>, vector<1x256xf32>
    %609 = vector.shape_cast %608 : vector<1x256xf32> to vector<256xf32>
    %610 = vector.shape_cast %609 : vector<256xf32> to vector<1x256xf32>
    %611 = arith.mulf %606, %610 : vector<1x256xf32>
    %612 = arith.addf %569, %611 : vector<1x256xf32>
    %c48_216 = arith.constant 48 : index
    %c0_217 = arith.constant 0 : index
    %613 = vector.load %arg6[%c48_216, %c0_217] : memref<49x256xf32, #tpu.memory_space<vmem>>, vector<1x256xf32>
    %614 = vector.shape_cast %613 : vector<1x256xf32> to vector<256xf32>
    %615 = vector.shape_cast %614 : vector<256xf32> to vector<1x256xf32>
    %616 = arith.mulf %607, %615 : vector<1x256xf32>
    %617 = arith.addf %612, %616 : vector<1x256xf32>
    %618 = arith.addf %617, %581 : vector<1x256xf32>
    %619 = arith.addf %593, %605 : vector<1x256xf32>
    %620 = arith.addf %618, %619 : vector<1x256xf32>
    %c0_218 = arith.constant 0 : index
    %621 = memref.load %arg1[%c0_218] : memref<1xf32, #tpu.memory_space<smem>>
    %622 = vector.broadcast %621 : f32 to vector<1x256xf32>
    %623 = arith.addf %620, %622 : vector<1x256xf32>
    %624 = arith.negf %623 : vector<1x256xf32>
    %625 = math.exp %624 : vector<1x256xf32>
    %cst_219 = arith.constant 1.000000e+00 : f32
    %626 = vector.broadcast %cst_219 : f32 to vector<1x256xf32>
    %627 = arith.addf %626, %625 : vector<1x256xf32>
    %628 = arith.divf %626, %627 : vector<1x256xf32>
    %629 = vector.shape_cast %628 : vector<1x256xf32> to vector<1x1x256xf32>
    %630 = vector.broadcast %629 : vector<1x1x256xf32> to vector<1x32x256xf32>
    %631 = arith.mulf %23, %630 : vector<1x32x256xf32>
    %c0_220 = arith.constant 0 : index
    %c0_221 = arith.constant 0 : index
    %c0_222 = arith.constant 0 : index
    %632 = vector.load %arg7[%c0_220, %c0_221, %c0_222] : memref<1x32x256xf32, #tpu.memory_space<vmem>>, vector<1x32x256xf32>
    tpu.vector_store %arg7[%c0_220, %c0_221, %c0_222], %631 {strides = array<i32>} : memref<1x32x256xf32, #tpu.memory_space<vmem>>, vector<1x32x256xf32>,
    return
  }
  func.func @transform_0(%arg0: i32) -> i32 {
    %c0_i32 = arith.constant 0 : i32
    %c0_i32_0 = arith.constant 0 : i32
    return %c0_i32 : i32
  }
  func.func @transform_1(%arg0: i32) -> (i32, i32, i32) {
    %c0_i32 = arith.constant 0 : i32
    %c0_i32_0 = arith.constant 0 : i32
    %c0_i32_1 = arith.constant 0 : i32
    return %arg0, %c0_i32, %c0_i32_0 : i32, i32, i32
  }
  func.func @transform_2(%arg0: i32) -> (i32, i32) {
    %c0_i32 = arith.constant 0 : i32
    %c0_i32_0 = arith.constant 0 : i32
    %c0_i32_1 = arith.constant 0 : i32
    return %c0_i32, %c0_i32_0 : i32, i32
  }
  func.func @transform_3(%arg0: i32) -> (i32, i32) {
    %c0_i32 = arith.constant 0 : i32
    %c0_i32_0 = arith.constant 0 : i32
    %c0_i32_1 = arith.constant 0 : i32
    return %c0_i32, %c0_i32_0 : i32, i32
  }
  func.func @transform_4(%arg0: i32) -> (i32, i32) {
    %c0_i32 = arith.constant 0 : i32
    %c0_i32_0 = arith.constant 0 : i32
    %c0_i32_1 = arith.constant 0 : i32
    return %c0_i32, %c0_i32_0 : i32, i32
  }
  func.func @transform_5(%arg0: i32) -> (i32, i32) {
    %c0_i32 = arith.constant 0 : i32
    %c0_i32_0 = arith.constant 0 : i32
    %c0_i32_1 = arith.constant 0 : i32
    return %c0_i32, %c0_i32_0 : i32, i32
  }
  func.func @transform_6(%arg0: i32) -> (i32, i32, i32) {
    %c0_i32 = arith.constant 0 : i32
    %c0_i32_0 = arith.constant 0 : i32
    %c0_i32_1 = arith.constant 0 : i32
    return %arg0, %c0_i32, %c0_i32_0 : i32, i32, i32
  }
}

</mosaic_0001>

<bundles_post_ra>
// kernel: tpu_custom_call.1
= control target key start
LH: loop header
LB: loop body
LE: loop exit
PB: predicated region body
PF: predicated region fallthrough
CT: control target
= control target key end

     0   :  { %s6376_s0 = inlined_call_operand.<no memory space> [shape: f32[1], index: 0, kind: input, shape index: {}]   ;;  %s6377_s1 = inlined_call_operand.hbm [shape: f32[2,32,256], index: 1, kind: input, shape index: {}]   ;;  %s6378_s2 = inlined_call_operand.vmem [shape: f32[32,8], index: 2, kind: input, shape index: {}]   ;;  %s6379_s3 = inlined_call_operand.vmem [shape: f32[8,32], index: 3, kind: input, shape index: {}]   ;;  %s6380_s4 = inlined_call_operand.hbm [shape: f32[49,256], index: 4, kind: input, shape index: {}]   ;;  %s6381_s5 = inlined_call_operand.hbm [shape: f32[49,256], index: 5, kind: input, shape index: {}]   ;;  %s6382_s6 = inlined_call_operand.hbm [shape: f32[2,32,256], index: 6, kind: output, shape index: {}]  }
   0x1   :  { %11 = sst [smem:[#allocation2]] %s6376_s0 }
   0x2   :  { %12 = vsyncpa [#allocation4], 0 }
   0x3   :  { %14 = vsyncpa [#allocation4 + $0x1], 0 }
   0x4   :  { %15 = vsyncpa [#allocation7], 0 }
   0x5   :  { %16 = vsyncpa [#allocation5], 0 }
   0x6   :  { %18 = vsyncpa [#allocation5 + $0x1], 0  ;;  %s3652_s23 = smov 0   ;;  %s3654_s24 = smov 0  }
   0x7   :  { %s3656_s25 = smov 0   ;;  %s3658_s26 = smov 0  }
   0x8 LB: > { %s3673_s0 = sadd.s32 4294967295, %s3555_s26   ;;  %s3202_s27 = sadd.s32 4294967294, %s3555_s26   ;;  %s3555_s26 = sphi %s3658_s26, %s6943_s26   ;;  %s3551_s25 = sphi %s3656_s25, %s6942_s25   ;;  %s3547_s24 = sphi %s3654_s24, %s6941_s24   ;;  %s3543_s23 = sphi %s3652_s23, %s6940_s23  }
   0x9   : > { %p65_p0 = scmp.ne.s32.totalorder %s3547_s24, %s3543_s23  ;;  %p6383_p1 = scmp.eq.s32.totalorder %s3673_s0, 0 }
   0xa   : > { %p173_p2 = scmp.eq.s32.totalorder %s3673_s0, 1  ;;  %p179_p3 = scmp.eq.s32.totalorder %s3202_s27, 1 }
   0xb   : > { %p3682_p4 = por %p6383_p1, %p65_p0  ;;  %p3203_p5 = scmp.ge.s32.totalorder %s3555_s26, 1 }
   0xc   : > { %p3687_p6 = por %p179_p3, %p65_p0  ;;  %p186_p7 = scmp.lt.s32.totalorder %s3555_s26, 3 }
   0xd   : > { %s6558_s28 = scalar_select %p3682_p4, 1, 0 }
   0xe   : > { %s6559_s29 = scalar_select %p3687_p6, 1, 0 }
   0xf   : > { %p3692_p8 = pnand %p3203_p5, %p186_p7  ;;  %s3557_s7 = smov [#allocation6]  }
  0x10   : > { %s207_s8 = sshll.u32 %s3557_s7, 4  ;;  %s3558_s10 = smov [#allocation8]   ;;  %s208_s8 = int_to_ptr.vmem [resolvable:$true] %s207_s8 }
  0x11   : > { %s6560_s30 = scalar_select %p3692_p8, 1, 0 }
  0x12   : > { %p3287_p9 = pneg %p3692_p8  ;;  %s220_s11 = sshll.u32 %s3558_s10, 4  ;;  %s221_s11 = int_to_ptr.vmem [resolvable:$true] %s220_s11 }
  0x13   : > { %s3418_s12 = scalar_lea.vmem %s208_s8, 1792  ;;  %p3426_p5 = scmp.lt.s32.totalorder %s208_s8, %s208_s8 }
  0x14   : > { %p3701_p11 = pnand %p3287_p9, %p6383_p1  ;;  %p3419_p13 = scmp.ne.s32.totalorder %s208_s8, %s3418_s12 }
  0x15   : > { %p3427_p7 = scmp.lt.s32.totalorder %s3418_s12, %s3418_s12 }
  0x16   : > { %p3409_p12 = pneg %p3701_p11 }
  0x17   : > { %p3428_p10 = por %p3427_p7, %p3426_p5 }
  0x18   : > { %p3421_p0 = pnand %p3419_p13, %p3409_p12 }
  0x1a   : > { %p3422_p3 = pneg %p3421_p0 }
  0x1c   : > { %p3429_p9 = pnand %p3428_p10, %p3422_p3 }
  0x1e   : > { %3432 = shalt.err (!%p3429_p9)
}
  0x1f   : > { %s6384_s13 = smov 256   ;;  %s3560_s14 = smov 16  }
  0x20   : > { %3290 = dma.hbm_to_vmem [thread:$0]  (!%p3701_p11), %s6380_s4, 1792, %s208_s8, [#allocation7], %s6384_s13, %s6384_s13, %s3560_s14  }
  0x21   : > { %s3444_s17 = scalar_lea.vmem %s221_s11, 1792  ;;  %p3452_p10 = scmp.lt.s32.totalorder %s221_s11, %s221_s11 }
  0x22   : > { %p3445_p13 = scmp.ne.s32.totalorder %s221_s11, %s3444_s17  ;;  %p3453_p3 = scmp.lt.s32.totalorder %s3444_s17, %s3444_s17 }
  0x24   : > { %p3447_p0 = pnand %p3445_p13, %p3409_p12  ;;  %p3454_p7 = por %p3453_p3, %p3452_p10 }
  0x26   : > { %p3448_p5 = pneg %p3447_p0 }
  0x28   : > { %p3455_p9 = pnand %p3454_p7, %p3448_p5 }
  0x2a   : > { %3458 = shalt.err (!%p3455_p9)
}
  0x2b   : > { %3293 = dma.hbm_to_vmem [thread:$0]  (!%p3701_p11), %s6381_s5, 1792, %s221_s11, [#allocation7], %s6384_s13, %s6384_s13, %s3560_s14  }
  0x2c   : > { %s3730_s20 = sadd.s32 1, %s3555_s26   ;;  %s52_s21 = sadd.s32 1, %s3551_s25 }
  0x2d   : > { %s49_s22 = ssub.s32 %s3555_s26, %s3730_s20  ;;  %p59_p12 = scmp.ne.s32.totalorder %s3551_s25, %s3547_s24 }
  0x2e   : > { %p50_p13 = scmp.eq.s32.totalorder %s49_s22, 0  ;;  %p60_p0 = scmp.eq.s32.totalorder %s3555_s26, 0 }
  0x2f   : > { %p3740_p5 = por %p173_p2, %p59_p12  ;;  %p3304_p10 = scmp.lt.s32.totalorder %s3555_s26, 2 }
  0x30   : > { %s3746_s7 = scalar_select %p50_p13, %s3551_s25, %s52_s21  }
  0x31   : > { %s6562_s27 = scalar_select %p3740_p5, 1, 0 }
  0x32   : > { %p61_p3 = por %p60_p0, %p59_p12  ;;  %s234_s8 = sand.u32 1, %s3551_s25  }
  0x33   : > { %s3207_s9 = sshll.u32 %s234_s8, 6  ;;  %s3227_s10 = sshll.u32 %s3555_s26, 10 }
  0x34   : > { %s3753_s15 = scalar_lea.hbm %s6377_s1, %s3227_s10  ;;  %s238_s16 = scalar_lea.vmem [#allocation3], %s3207_s9 }
  0x35   : > { %s245_s17 = sshll.u32 %s238_s16, 4  ;;  %p3757_p2 = pnand %p3304_p10, %p61_p3  ;;  %s3755_s17 = int_to_ptr.vmem [resolvable:$true] %s245_s17 }
  0x36   : > { %s3761_s19 = scalar_lea.sflag [#allocation4], %s234_s8  ;;  %s3459_s21 = scalar_lea.hbm %s3753_s15, 1024 }
  0x37   : > { %p3460_p11 = scmp.ne.s32.totalorder %s3753_s15, %s3459_s21  ;;  %p3461_p7 = pneg %p3757_p2 }
  0x38   : > { %s3464_s9 = scalar_lea.hbm %s6377_s1, 2048  ;;  %p3465_p13 = scmp.lt.s32.totalorder %s3753_s15, %s6377_s1 }
  0x39   : > { %p3462_p9 = pnand %p3461_p7, %p3460_p11  ;;  %p3466_p0 = scmp.lt.s32.totalorder %s3464_s9, %s3459_s21 }
  0x3b   : > { %p3463_p12 = pneg %p3462_p9  ;;  %p3467_p10 = por %p3466_p0, %p3465_p13 }
  0x3d   : > { %p3468_p3 = pnand %p3467_p10, %p3463_p12 }
  0x3f   : > { %3471 = shalt.err (!%p3468_p3)
}
  0x40   : > { %s3472_s8 = scalar_lea.vmem %s3755_s17, 1024  ;;  %s3561_s16 = smov [#allocation3]  }
  0x41   : > { %p3473_p1 = scmp.ne.s32.totalorder %s3755_s17, %s3472_s8  ;;  %s3477_s13 = sshll.u32 %s3561_s16, 4  ;;  %s3478_s13 = int_to_ptr.vmem [resolvable:$false] %s3477_s13 }
  0x42   : > { %s3479_s22 = scalar_lea.vmem %s3478_s13, 2048  ;;  %p3480_p9 = scmp.lt.s32.totalorder %s3755_s17, %s3478_s13 }
  0x43   : > { %p3475_p6 = pnand %p3473_p1, %p3461_p7  ;;  %p3481_p5 = scmp.lt.s32.totalorder %s3479_s22, %s3472_s8 }
  0x45   : > { %p3476_p11 = pneg %p3475_p6  ;;  %p3482_p4 = por %p3481_p5, %p3480_p9 }
  0x47   : > { %p3483_p8 = pnand %p3482_p4, %p3476_p11 }
  0x49   : > { %3486 = shalt.err (!%p3483_p8)
}
  0x4a   : > { %s6564_s21 = smov 256   ;;  %p6565_p1 = scmp.ne.s32.totalorder %s6560_s30, 0 }
  0x4b   : > { %3297 = dma.hbm_to_vmem [thread:$0]  (!%p3757_p2), %s3753_s15, 1024, %s3755_s17, %s3761_s19, %s6564_s21, %s6564_s21, %s3560_s14  }
  0x4c   : > { %257 = sbr.rel (%p6565_p1) target bundleno = 1385 (0x569), region = 44 }
  0x51   : > { %s3788_s10 = sand.u32 1, %s3547_s24   ;;  %p6566_p4 = scmp.ne.s32.totalorder %s6558_s28, 0 }
  0x52   : > { %s6388_s13 = sshll.u32 %s3788_s10, 6  ;;  %s260_s9 = scalar_lea.sflag [#allocation4], %s3788_s10 }
  0x53   : > { %s263_s18 = scalar_lea.vmem [#allocation3], %s6388_s13 }
  0x54   : > { %3530 = dma.done.wait (%p6566_p4), %s260_s9, 1024  }
  0x55   : > { %3532 = vsyncadd (%p6566_p4), %s260_s9, 4294966272  ;;  %p6567_p6 = scmp.eq.s32.totalorder %s3673_s0, 0 }
  0x57   : > { %3534 = dma.done.wait (%p6567_p6), [#allocation7], 3584   ;;  %p6568_p8 = pmov %p6567_p6 }
  0x58   : > { %v3802_v0 = vld [vmem:[%s263_s18 + $0x20] sm:$0xff]  ;;  %v3804_v1 = vld [vmem:[%s263_s18 + $0x28] sm:$0xff]  ;;  %v3812_v5 = vld [vmem:[%s263_s18 + $0x30] sm:$0xff]  ;;  %v3562_v16 = vmov 0.0   ;;  %vm3563_vm0 = vmmov 0   ;;  %v346_v21 = vlaneseq  ;;  %vm357_vm1 = vcmask 130112  }
  0x59   : > { %3536 = vsyncadd (%p6568_p8), [#allocation7], 4294963712  ;;  %v3806_v2 = vld [vmem:[%s263_s18] sm:$0xff]  ;;  %v314_v3 = vadd.f32 %v3804_v1, %v3802_v0  ;;  %v3810_v4 = vld [vmem:[%s263_s18 + $0x8] sm:$0xff]  ;;  %v331_v15 = vmax.f32 %v3802_v0, %v3804_v1  ;;  %3243 = vmatprep.subr.mxu0 %v3562_v16  ;;  %3254 = vmatprep.subr.mxu1 %v3562_v16  ;;  %vm364_vm2 = vcmask 195712   ;;  %vm371_vm3 = vcmask 261312  }
  0x5a   : > { %v3814_v6 = vld [vmem:[%s263_s18 + $0x38] sm:$0xff]  ;;  %v308_v7 = vadd.f32 %v3810_v4, %v3806_v2  ;;  %v3818_v8 = vld [vmem:[%s263_s18 + $0x10] sm:$0xff]  ;;  %v325_v13 = vmax.f32 %v3806_v2, %v3810_v4  ;;  %v338_v19 = vld [vmem:[%s6378_s2 + $0x8] sm:$0xff]  ;;  %3251 = vmatprep.mubr.msk.f32.mxu0 %vm3563_vm0, %v3562_v16  ;;  %3262 = vmatprep.mubr.msk.f32.mxu1 %vm3563_vm0, %v3562_v16  ;;  %v3860_v22 = vand.u32 127, %v346_v21  ;;  %v3862_v23 = vshrl.u32 %v346_v21, 7  ;;  %s3564_s22 = smov 51  }
  0x5b   : > { %v3820_v9 = vld [vmem:[%s263_s18 + $0x18] sm:$0xff]  ;;  %315 = vadd.xlane.f32.xlu1 %v314_v3  ;;  %v317_v10 = vadd.f32 %v3814_v6, %v3812_v5  ;;  %v334_v14 = vmax.f32 %v3812_v5, %v3814_v6  ;;  %v339_v18 = vld [vmem:[%s6378_s2 + $0x10] sm:$0xff]  ;;  %v337_v20 = vld [vmem:[%s6378_s2] sm:$0xff]  ;;  %vm373_vm4 = vcmask 261120   ;;  %vm543_vm5 = vcmask 64512   ;;  %s3565_s21 = smov 50  }
  0x5c   : > { %309 = vadd.xlane.f32.xlu0 %v308_v7  ;;  %v311_v11 = vadd.f32 %v3820_v9, %v3818_v8  ;;  %v328_v12 = vmax.f32 %v3818_v8, %v3820_v9  ;;  %v340_v17 = vld [vmem:[%s6378_s2 + $0x18] sm:$0xff]  ;;  %v366_v25 = vadd.s32 4294967272, %v3860_v22  ;;  %v352_v26 = vadd.s32 4294967288, %v3860_v22  ;;  %v341_v57 = vld [vmem:[%s6379_s3] sm:$0xff]  ;;  %s3566_s9 = smov 49   ;;  %s3567_s18 = smov 48  }
  0x5d   : > { %3244 = vmatpush3.msra.mxu0 %v340_v17  ;;  %3255 = vmatpush3.msra.mxu1 %v340_v17  ;;  %v359_v27 = vadd.s32 4294967280, %v3860_v22  ;;  %v350_v29 = vsub.s32 %v3860_v22, %v3862_v23  ;;  %s3568_s28 = smov 47   ;;  %s3569_s30 = smov 46   ;;  %vm766_vm6 = vcmp.lt.s32.totalorder %v3860_v22, 51  ;;  %vm811_vm7 = vcmp.lt.s32.totalorder %v3860_v22, 50 }
  0x5e   : > { %3245 = vmatprep.subr.mxu0 %v3562_v16  ;;  %3256 = vmatprep.subr.mxu1 %v3562_v16  ;;  %v369_v31 = vsub.s32 %v366_v25, %v3862_v23  ;;  %v355_v33 = vsub.s32 %v352_v26, %v3862_v23  ;;  %s3570_s14 = smov 45   ;;  %s3571_s15 = smov 35   ;;  %vm858_vm8 = vcmp.lt.s32.totalorder %v3860_v22, 49  ;;  %vm905_vm9 = vcmp.lt.s32.totalorder %v3860_v22, 48 }
  0x5f   : > { %318 = vadd.xlane.f32.xlu1 %v317_v10  ;;  %3246 = vmatpush3.msra.mxu0 %v339_v18  ;;  %v362_v34 = vsub.s32 %v359_v27, %v3862_v23  ;;  %s3572_s17 = smov 34   ;;  %s3573_s19 = smov 33   ;;  %vm952_vm10 = vcmp.lt.s32.totalorder %v3860_v22, 47  ;;  %vm999_vm11 = vcmp.lt.s32.totalorder %v3860_v22, 46  ;;  %vm1046_vm12 = vcmp.lt.s32.totalorder %v3860_v22, 45 }
  0x60   : > { %312 = vadd.xlane.f32.xlu0 %v311_v11  ;;  %3257 = vmatpush3.msra.mxu1 %v339_v18  ;;  %s3574_s11 = smov 32   ;;  %s6389_s12 = smov 31   ;;  %vm1093_vm13 = vcmp.lt.s32.totalorder %v3860_v22, 35  ;;  %vm1140_vm14 = vcmp.lt.s32.totalorder %v3860_v22, 34  ;;  %vm1187_vm15 = vcmp.lt.s32.totalorder %v3860_v22, 33 }
  0x61   : > { %3247 = vmatprep.subr.mxu0 %v3562_v16  ;;  %3258 = vmatprep.subr.mxu1 %v3562_v16  ;;  %s6391_s8 = smov 30   ;;  %s6393_s16 = smov 29  }
  0x62   : > { %3248 = vmatpush3.msra.mxu0 %v338_v19  ;;  %3259 = vmatpush3.msra.mxu1 %v338_v19  ;;  %s6395_s13 = smov 19   ;;  %p6937_p2 = scmp.ne.s32.totalorder %s6562_s27, 0 }
  0x63   : > { %329 = vmax.xlane.f32.xlu1 %v328_v12  ;;  %3249 = vmatprep.subr.mxu0 %v3562_v16 }
  0x64   : > { %326 = vmax.xlane.f32.xlu0 %v325_v13  ;;  %3260 = vmatprep.subr.mxu1 %v3562_v16 }
  0x65   : > { %3250 = vmatpush3.msra.mxu0 %v337_v20  ;;  %3261 = vmatpush3.msra.mxu1 %v337_v20 }
  0x66   : > { %3270 = vmatprep.subr.mxu1 %v3562_v16  ;;  %3265 = vmatprep.subr.mxu0 %v3562_v16 }
  0x67   : > { %335 = vmax.xlane.f32.xlu1 %v334_v14 }
  0x68   : > { %332 = vmax.xlane.f32.xlu0 %v331_v15 }
  0xe4   : > { %v316_v24 = vpop.xlane.xlu1 %315 }
  0xe5   : > { %v310_v28 = vpop.xlane.xlu0 %309  ;;  %v323_v35 = vmul.f32 0.00390625, %v316_v24 }
  0xe6   : > { %v321_v30 = vmul.f32 0.00390625, %v310_v28 }
  0xe7   : > { %v363_v43 = vrot.slane %v323_v35, %v362_v34 }
  0xe8   : > { %v319_v32 = vpop.xlane.xlu1 %318  ;;  %v351_v39 = vrot.slane %v321_v30, %v350_v29 }
  0xe9   : > { %v324_v36 = vmul.f32 0.00390625, %v319_v32  ;;  %v313_v37 = vpop.xlane.xlu0 %312 }
  0xea   : > { %v322_v38 = vmul.f32 0.00390625, %v313_v37 }
  0xeb   : > { %v370_v40 = vrot.slane %v324_v36, %v369_v31 }
  0xec   : > { %v356_v41 = vrot.slane %v322_v38, %v355_v33  ;;  %v330_v42 = vpop.xlane.xlu1 %329 }
  0xed   : > { %v327_v44 = vpop.xlane.xlu0 %326  ;;  %v458_v46 = vrot.slane %v330_v42, %v355_v33 }
  0xee   : > { %v358_v45 = vsel %vm357_vm1, %v356_v41, %v351_v39  ;;  %v454_v47 = vrot.slane %v327_v44, %v350_v29 }
  0xef   : > { %v365_v48 = vsel %vm364_vm2, %v363_v43, %v358_v45 }
  0xf0   : > { %v372_v49 = vsel %vm371_vm3, %v370_v40, %v365_v48  ;;  %v336_v50 = vpop.xlane.xlu1 %335  ;;  %v459_v54 = vsel %vm357_vm1, %v458_v46, %v454_v47  ;;  %vm1281_vm1 = vcmp.lt.s32.totalorder %v3860_v22, 31 }
  0xf1   : > { %3252 = vmatmul.mubr.msk.f32.vlgmr.msra.gmra.mxu0 %vm373_vm4, %v372_v49  ;;  %v333_v51 = vpop.xlane.xlu0 %332  ;;  %v468_v52 = vrot.slane %v336_v50, %v369_v31 }
  0xf2   : > { %v463_v53 = vrot.slane %v333_v51, %v362_v34  ;;  %3267 = vmatprep.mubr.msk.f32.mxu0 %vm3563_vm0, %v3562_v16  ;;  %3266 = vmatpush3.msra.mxu0 %v341_v57 }
  0xf4   : > { %v464_v55 = vsel %vm364_vm2, %v463_v53, %v459_v54  ;;  %vm1328_vm2 = vcmp.lt.s32.totalorder %v3860_v22, 30 }
  0xf5   : > { %v469_v56 = vsel %vm371_vm3, %v468_v52, %v464_v55  ;;  %vm1375_vm3 = vcmp.lt.s32.totalorder %v3860_v22, 29 }
  0xf6   : > { %3263 = vmatmul.mubr.msk.f32.vlgmr.msra.gmra.mxu1 %vm373_vm4, %v469_v56  ;;  %vm1422_vm4 = vcmp.lt.s32.totalorder %v3860_v22, 19 }
  0xf7   : > { %3272 = vmatprep.mubr.msk.f32.mxu1 %vm3563_vm0, %v3562_v16  ;;  %3271 = vmatpush3.msra.mxu1 %v341_v57  ;;  %v3884_v16 = vsub.s32 0, %v3862_v23  ;;  %vm1234_vm0 = vcmp.lt.s32.totalorder %v3860_v22, 32 }
 0x1b1   : > { %v442_v58 = vpop.f32.mrf.mxu0 }
 0x1b2   : > { %v446_v59 = vmax.f32 %v442_v58, 0.0 }
 0x1b3   : > { %v3253_v60 = vpop.f32.mrf.mxu0 }
 0x1b4   : > { %3273 = vmatmul.mubr.msk.f32.vlgmr.msra.gmra.mxu1 %vm543_vm5, %v446_v59 }
 0x1b6   : > { %v538_v61 = vpop.f32.mrf.mxu1 }
 0x1b7   : > { %v542_v62 = vmax.f32 %v538_v61, 0.0 }
 0x1b8   : > { %v3264_v63 = vpop.f32.mrf.mxu1 }
 0x1b9   : > { %3268 = vmatmul.mubr.msk.f32.vlgmr.msra.gmra.mxu0 %vm543_vm5, %v542_v62  ;;  %vm1469_vm5 = vcmp.lt.s32.totalorder %v3860_v22, 18 }
 0x274   : > { %v686_v3 = vpop.f32.mrf.mxu1 }
 0x276   : > { %v3274_v7 = vpop.f32.mrf.mxu1 }
 0x279   : > { %v613_v10 = vpop.f32.mrf.mxu0 }
 0x27a   : > { %v687_v11 = vadd.f32 %v686_v3, %v613_v10 }
 0x27b   : > { %v3269_v12 = vpop.f32.mrf.mxu0 }
 0x27c   : > { %v3219_v13 = vmul.f32 -1.442695, %v687_v11 }
 0x27e   : > { %3395 = vpow2.f32 %v3219_v13 }
 0x28b   : > { %v3396_v14 = vpop.eup %3395 }
 0x28c   : > { %v693_v15 = vadd.f32 1.0, %v3396_v14 }
 0x28e   : > { %3397 = vrcp.f32 %v693_v15 }
 0x29b   : > { %v3398_v17 = vpop.eup %3397 }
 0x29c   : > { %v699_v18 = vrot.slane %v3398_v17, %v3884_v16 }
 0x29e   : > { %705 = vbcast.lane.b32.xlu1 %v699_v18, 264  ;;  %701 = vbcast.lane.b32.xlu0 %v699_v18, 256 }
 0x2a2   : > { %709 = vbcast.lane.b32.xlu1 %v699_v18, 272 }
 0x2a6   : > { %713 = vbcast.lane.b32.xlu1 %v699_v18, 280 }
 0x310   : > { %v706_v19 = vpop.permute.xlu1 %705  ;;  %v702_v21 = vpop.permute.xlu0 %701 }
 0x311   : > { %v3894_v26 = vmul.f32 %v706_v19, %v3818_v8  ;;  %v3897_v27 = vmul.f32 %v706_v19, %v3820_v9  ;;  %v3900_v29 = vmul.f32 %v702_v21, %v3806_v2  ;;  %v3903_v30 = vmul.f32 %v702_v21, %v3810_v4 }
 0x313   : > { %6571 = vst [vmem:[#allocation15_spill] sm:$0xff] %v3894_v26  ;;  %6572 = vst [vmem:[#allocation16_spill] sm:$0xff] %v3897_v27  ;;  %v723_v63 = vadd.f32 %v3894_v26, %v3900_v29  ;;  %v732_v3 = vadd.f32 %v3897_v27, %v3903_v30 }
 0x314   : > { %v710_v20 = vpop.permute.xlu1 %709  ;;  %6573 = vst [vmem:[#allocation17_spill] sm:$0xff] %v3900_v29  ;;  %6574 = vst [vmem:[#allocation18_spill] sm:$0xff] %v3903_v30 }
 0x315   : > { %v3888_v24 = vmul.f32 %v710_v20, %v3802_v0  ;;  %v3891_v25 = vmul.f32 %v710_v20, %v3804_v1 }
 0x317   : > { %6569 = vst [vmem:[#allocation13_spill] sm:$0xff] %v3888_v24  ;;  %6570 = vst [vmem:[#allocation14_spill] sm:$0xff] %v3891_v25  ;;  %v744_v1 = vmax.f32 %v3900_v29, %v3888_v24  ;;  %v753_v8 = vmax.f32 %v3903_v30, %v3891_v25  ;;  %v724_v11 = vadd.f32 %v723_v63, %v3888_v24 }
 0x318   : > { %v714_v28 = vpop.permute.xlu1 %713  ;;  %v733_v12 = vadd.f32 %v732_v3, %v3891_v25 }
 0x319   : > { %v3906_v31 = vmul.f32 %v714_v28, %v3812_v5  ;;  %v3909_v0 = vmul.f32 %v714_v28, %v3814_v6 }
 0x31b   : > { %6575 = vst [vmem:[#allocation19_spill] sm:$0xff] %v3906_v31  ;;  %6576 = vst [vmem:[#allocation20_spill] sm:$0xff] %v3909_v0  ;;  %v745_v9 = vmax.f32 %v3894_v26, %v3906_v31  ;;  %v754_v2 = vmax.f32 %v3897_v27, %v3909_v0  ;;  %v725_v13 = vadd.f32 %v724_v11, %v3906_v31 }
 0x31c   : > { %v734_v14 = vadd.f32 %v733_v12, %v3909_v0 }
 0x31d   : > { %v746_v4 = vmax.f32 %v744_v1, %v745_v9  ;;  %v755_v32 = vmax.f32 %v753_v8, %v754_v2  ;;  %v726_v18 = vrot.slane %v725_v13, 4 }
 0x31e   : > { %v735_v19 = vrot.slane %v734_v14, 4 }
 0x31f   : > { %v747_v33 = vrot.slane %v746_v4, 4  ;;  %v756_v5 = vrot.slane %v755_v32, 4  ;;  %v727_v28 = vadd.f32 %v726_v18, %v725_v13 }
 0x320   : > { %v736_v1 = vadd.f32 %v735_v19, %v734_v14 }
 0x321   : > { %v748_v34 = vmax.f32 %v746_v4, %v747_v33  ;;  %v757_v35 = vmax.f32 %v755_v32, %v756_v5  ;;  %v728_v2 = vrot.slane %v727_v28, 2 }
 0x322   : > { %v737_v4 = vrot.slane %v736_v1, 2 }
 0x323   : > { %v749_v6 = vrot.slane %v748_v34, 2  ;;  %v758_v36 = vrot.slane %v757_v35, 2  ;;  %v729_v5 = vadd.f32 %v728_v2, %v727_v28 }
 0x325   : > { %v750_v37 = vmax.f32 %v748_v34, %v749_v6  ;;  %v759_v38 = vmax.f32 %v757_v35, %v758_v36  ;;  %v738_v34 = vadd.f32 %v737_v4, %v736_v1  ;;  %v730_v36 = vrot.slane %v729_v5, 1 }
 0x327   : > { %v751_v39 = vrot.slane %v750_v37, 1  ;;  %v760_v40 = vrot.slane %v759_v38, 1 }
 0x329   : > { %v3919_v41 = vmax.f32 %v750_v37, %v751_v39  ;;  %v3921_v42 = vmax.f32 %v759_v38, %v760_v40  ;;  %v739_v37 = vrot.slane %v738_v34, 1  ;;  %v731_v40 = vadd.f32 %v730_v36, %v729_v5 }
 0x32b   : > { %6577 = vst [vmem:[#allocation21_spill] sm:$0xff] %v3919_v41  ;;  %6578 = vst [vmem:[#allocation22_spill] sm:$0xff] %v3921_v42  ;;  %771 = vrot.lane.b32.xlu1 %v3921_v42, %s3564_s22  ;;  %769 = vrot.lane.b32.xlu0 %v3919_v41, %s3564_s22  ;;  %v740_v63 = vadd.f32 %v739_v37, %v738_v34  ;;  %v4191_v12 = vmul.f32 0.03125, %v731_v40 }
 0x32d   : > { %v4193_v13 = vmul.f32 0.03125, %v740_v63 }
 0x32f   : > { %816 = vrot.lane.b32.xlu1 %v3921_v42, %s3565_s21  ;;  %814 = vrot.lane.b32.xlu0 %v3919_v41, %s3565_s21 }
 0x333   : > { %863 = vrot.lane.b32.xlu1 %v3921_v42, %s3566_s9  ;;  %861 = vrot.lane.b32.xlu0 %v3919_v41, %s3566_s9 }
 0x337   : > { %910 = vrot.lane.b32.xlu1 %v3921_v42, %s3567_s18  ;;  %908 = vrot.lane.b32.xlu0 %v3919_v41, %s3567_s18 }
 0x33b   : > { %957 = vrot.lane.b32.xlu1 %v3921_v42, %s3568_s28  ;;  %955 = vrot.lane.b32.xlu0 %v3919_v41, %s3568_s28 }
 0x33f   : > { %1004 = vrot.lane.b32.xlu1 %v3921_v42, %s3569_s30  ;;  %1002 = vrot.lane.b32.xlu0 %v3919_v41, %s3569_s30 }
 0x343   : > { %1051 = vrot.lane.b32.xlu1 %v3921_v42, %s3570_s14  ;;  %1049 = vrot.lane.b32.xlu0 %v3919_v41, %s3570_s14 }
 0x347   : > { %1098 = vrot.lane.b32.xlu1 %v3921_v42, %s3571_s15  ;;  %1096 = vrot.lane.b32.xlu0 %v3919_v41, %s3571_s15 }
 0x34b   : > { %1145 = vrot.lane.b32.xlu1 %v3921_v42, %s3572_s17  ;;  %1143 = vrot.lane.b32.xlu0 %v3919_v41, %s3572_s17 }
 0x34f   : > { %1192 = vrot.lane.b32.xlu1 %v3921_v42, %s3573_s19  ;;  %1190 = vrot.lane.b32.xlu0 %v3919_v41, %s3573_s19 }
 0x353   : > { %1239 = vrot.lane.b32.xlu1 %v3921_v42, %s3574_s11  ;;  %1237 = vrot.lane.b32.xlu0 %v3919_v41, %s3574_s11 }
 0x357   : > { %1286 = vrot.lane.b32.xlu1 %v3921_v42, %s6389_s12  ;;  %1284 = vrot.lane.b32.xlu0 %v3919_v41, %s6389_s12  ;;  %s6397_s12 = smov 18  }
 0x35b   : > { %1333 = vrot.lane.b32.xlu1 %v3921_v42, %s6391_s8  ;;  %1331 = vrot.lane.b32.xlu0 %v3919_v41, %s6391_s8  ;;  %s6399_s8 = smov 17  }
 0x35f   : > { %1380 = vrot.lane.b32.xlu1 %v3921_v42, %s6393_s16  ;;  %1378 = vrot.lane.b32.xlu0 %v3919_v41, %s6393_s16  ;;  %s6401_s16 = smov 16  }
 0x363   : > { %1427 = vrot.lane.b32.xlu1 %v3921_v42, %s6395_s13  ;;  %1425 = vrot.lane.b32.xlu0 %v3919_v41, %s6395_s13  ;;  %s6403_s13 = smov 15  }
 0x367   : > { %1474 = vrot.lane.b32.xlu1 %v3921_v42, %s6397_s12  ;;  %1472 = vrot.lane.b32.xlu0 %v3919_v41, %s6397_s12  ;;  %s6405_s12 = smov 14  }
 0x36b   : > { %1521 = vrot.lane.b32.xlu1 %v3921_v42, %s6399_s8  ;;  %1519 = vrot.lane.b32.xlu0 %v3919_v41, %s6399_s8  ;;  %s6407_s8 = smov 13  }
 0x36f   : > { %1568 = vrot.lane.b32.xlu1 %v3921_v42, %s6401_s16  ;;  %1566 = vrot.lane.b32.xlu0 %v3919_v41, %s6401_s16  ;;  %s6409_s16 = smov 3  }
 0x373   : > { %1615 = vrot.lane.b32.xlu1 %v3921_v42, %s6403_s13  ;;  %1613 = vrot.lane.b32.xlu0 %v3919_v41, %s6403_s13  ;;  %s6411_s13 = smov 2  }
 0x377   : > { %1662 = vrot.lane.b32.xlu1 %v3921_v42, %s6405_s12  ;;  %1660 = vrot.lane.b32.xlu0 %v3919_v41, %s6405_s12  ;;  %s6413_s12 = smov 1  }
 0x37b   : > { %1709 = vrot.lane.b32.xlu1 %v3921_v42, %s6407_s8  ;;  %1707 = vrot.lane.b32.xlu0 %v3919_v41, %s6407_s8  ;;  %s6415_s8 = smov 127  }
 0x37f   : > { %1756 = vrot.lane.b32.xlu1 %v3921_v42, %s6409_s16  ;;  %1754 = vrot.lane.b32.xlu0 %v3919_v41, %s6409_s16  ;;  %s6417_s16 = smov 126  }
 0x383   : > { %1803 = vrot.lane.b32.xlu1 %v3921_v42, %s6411_s13  ;;  %1801 = vrot.lane.b32.xlu0 %v3919_v41, %s6411_s13  ;;  %s3590_s13 = smov 125  }
 0x387   : > { %1850 = vrot.lane.b32.xlu1 %v3921_v42, %s6413_s12  ;;  %1848 = vrot.lane.b32.xlu0 %v3919_v41, %s6413_s12  ;;  %s6419_s12 = smov 115  }
 0x38b   : > { %1931 = vrot.lane.b32.xlu1 %v3921_v42, %s6415_s8  ;;  %1929 = vrot.lane.b32.xlu0 %v3919_v41, %s6415_s8  ;;  %s6421_s8 = smov 114  }
 0x38f   : > { %1978 = vrot.lane.b32.xlu1 %v3921_v42, %s6417_s16  ;;  %1976 = vrot.lane.b32.xlu0 %v3919_v41, %s6417_s16  ;;  %s6423_s16 = smov 113  }
 0x393   : > { %2025 = vrot.lane.b32.xlu1 %v3921_v42, %s3590_s13  ;;  %2023 = vrot.lane.b32.xlu0 %v3919_v41, %s3590_s13 }
 0x397   : > { %2072 = vrot.lane.b32.xlu1 %v3921_v42, %s6419_s12  ;;  %2070 = vrot.lane.b32.xlu0 %v3919_v41, %s6419_s12  ;;  %s6425_s12 = smov 112  }
 0x39b   : > { %2119 = vrot.lane.b32.xlu1 %v3921_v42, %s6421_s8  ;;  %2117 = vrot.lane.b32.xlu0 %v3919_v41, %s6421_s8  ;;  %s6427_s8 = smov 111  }
 0x39d   : > { %v4039_v43 = vpop.permute.xlu1 %771  ;;  %v4041_v44 = vpop.permute.xlu0 %769 }
 0x39f   : > { %2166 = vrot.lane.b32.xlu1 %v3921_v42, %s6423_s16  ;;  %2164 = vrot.lane.b32.xlu0 %v3919_v41, %s6423_s16  ;;  %s6429_s16 = smov 110  }
 0x3a1   : > { %v4047_v45 = vpop.permute.xlu1 %816  ;;  %v4049_v46 = vpop.permute.xlu0 %814 }
 0x3a3   : > { %2213 = vrot.lane.b32.xlu1 %v3921_v42, %s6425_s12  ;;  %2211 = vrot.lane.b32.xlu0 %v3919_v41, %s6425_s12  ;;  %s6431_s12 = smov 109  }
 0x3a5   : > { %v4055_v47 = vpop.permute.xlu1 %863  ;;  %v4057_v48 = vpop.permute.xlu0 %861 }
 0x3a7   : > { %2260 = vrot.lane.b32.xlu1 %v3921_v42, %s6427_s8  ;;  %2258 = vrot.lane.b32.xlu0 %v3919_v41, %s6427_s8  ;;  %s6433_s8 = smov 99  }
 0x3a9   : > { %v4063_v49 = vpop.permute.xlu1 %910  ;;  %v4065_v50 = vpop.permute.xlu0 %908 }
 0x3ab   : > { %2307 = vrot.lane.b32.xlu1 %v3921_v42, %s6429_s16  ;;  %2305 = vrot.lane.b32.xlu0 %v3919_v41, %s6429_s16  ;;  %s6435_s16 = smov 98  }
 0x3ad   : > { %v4071_v51 = vpop.permute.xlu1 %957  ;;  %v4073_v52 = vpop.permute.xlu0 %955 }
 0x3af   : > { %2354 = vrot.lane.b32.xlu1 %v3921_v42, %s6431_s12  ;;  %2352 = vrot.lane.b32.xlu0 %v3919_v41, %s6431_s12  ;;  %s3600_s12 = smov 97  }
 0x3b1   : > { %v4079_v53 = vpop.permute.xlu1 %1004  ;;  %v4081_v54 = vpop.permute.xlu0 %1002 }
 0x3b3   : > { %2401 = vrot.lane.b32.xlu1 %v3921_v42, %s6433_s8  ;;  %2399 = vrot.lane.b32.xlu0 %v3919_v41, %s6433_s8  ;;  %s6437_s8 = smov 96  }
 0x3b5   : > { %v4087_v55 = vpop.permute.xlu1 %1051  ;;  %v4089_v56 = vpop.permute.xlu0 %1049 }
 0x3b7   : > { %2448 = vrot.lane.b32.xlu1 %v3921_v42, %s6435_s16  ;;  %2446 = vrot.lane.b32.xlu0 %v3919_v41, %s6435_s16  ;;  %s6439_s16 = smov 95  }
 0x3b9   : > { %v4095_v57 = vpop.permute.xlu1 %1098  ;;  %v4097_v58 = vpop.permute.xlu0 %1096 }
 0x3bb   : > { %2495 = vrot.lane.b32.xlu1 %v3921_v42, %s3600_s12  ;;  %2493 = vrot.lane.b32.xlu0 %v3919_v41, %s3600_s12 }
 0x3bd   : > { %v4103_v59 = vpop.permute.xlu1 %1145  ;;  %v4105_v60 = vpop.permute.xlu0 %1143 }
 0x3bf   : > { %2542 = vrot.lane.b32.xlu1 %v3921_v42, %s6437_s8  ;;  %2540 = vrot.lane.b32.xlu0 %v3919_v41, %s6437_s8  ;;  %s6441_s8 = smov 94  }
 0x3c1   : > { %v4111_v61 = vpop.permute.xlu1 %1192  ;;  %v4113_v62 = vpop.permute.xlu0 %1190 }
 0x3c3   : > { %2589 = vrot.lane.b32.xlu1 %v3921_v42, %s6439_s16  ;;  %2587 = vrot.lane.b32.xlu0 %v3919_v41, %s6439_s16  ;;  %s6443_s16 = smov 93  }
 0x3c5   : > { %v4123_v7 = vpop.permute.xlu1 %1239  ;;  %v4125_v10 = vpop.permute.xlu0 %1237 }
 0x3c7   : > { %2636 = vrot.lane.b32.xlu1 %v3921_v42, %s6441_s8  ;;  %2634 = vrot.lane.b32.xlu0 %v3919_v41, %s6441_s8  ;;  %s6445_s8 = smov 83  }
 0x3c9   : > { %v4135_v15 = vpop.permute.xlu1 %1286  ;;  %v4137_v17 = vpop.permute.xlu0 %1284 }
 0x3ca   : > { %6579 = vst [vmem:[#allocation23_spill] sm:$0xff] %v4137_v17 }
 0x3cb   : > { %2683 = vrot.lane.b32.xlu1 %v3921_v42, %s6443_s16  ;;  %2681 = vrot.lane.b32.xlu0 %v3919_v41, %s6443_s16  ;;  %s6447_s16 = smov 82  }
 0x3cd   : > { %v4143_v20 = vpop.permute.xlu1 %1333  ;;  %v4145_v21 = vpop.permute.xlu0 %1331 }
 0x3ce   : > { %6580 = vst [vmem:[#allocation24_spill] sm:$0xff] %v4143_v20  ;;  %6581 = vst [vmem:[#allocation25_spill] sm:$0xff] %v4145_v21  ;;  %v1056_v20 = vld [vmem:[#allocation6 + $0x6] ss:$8 sm:$0x3] }
 0x3cf   : > { %2730 = vrot.lane.b32.xlu1 %v3921_v42, %s6445_s8  ;;  %2728 = vrot.lane.b32.xlu0 %v3919_v41, %s6445_s8  ;;  %s6449_s8 = smov 81  }
 0x3d1   : > { %v4151_v8 = vpop.permute.xlu1 %1380  ;;  %v4153_v9 = vpop.permute.xlu0 %1378 }
 0x3d2   : > { %6582 = vst [vmem:[#allocation26_spill] sm:$0xff] %v4151_v8  ;;  %6583 = vst [vmem:[#allocation27_spill] sm:$0xff] %v4153_v9  ;;  %v4581_v9 = vld [vmem:[#allocation8 + $0x16] ss:$8 sm:$0x3] }
 0x3d3   : > { %2777 = vrot.lane.b32.xlu1 %v3921_v42, %s6447_s16  ;;  %2775 = vrot.lane.b32.xlu0 %v3919_v41, %s6447_s16  ;;  %s6451_s16 = smov 80   ;;  %6676 = vst [vmem:[#allocation101_spill] sm:$0xff] %v4581_v9 }
 0x3d5   : > { %v4159_v32 = vpop.permute.xlu1 %1427  ;;  %v4161_v33 = vpop.permute.xlu0 %1425 }
 0x3d6   : > { %6584 = vst [vmem:[#allocation28_spill] sm:$0xff] %v4159_v32  ;;  %6585 = vst [vmem:[#allocation29_spill] sm:$0xff] %v4161_v33  ;;  %v4546_v33 = vld [vmem:[#allocation8 + $0x14] ss:$8 sm:$0x3] }
 0x3d7   : > { %2824 = vrot.lane.b32.xlu1 %v3921_v42, %s6449_s8  ;;  %2822 = vrot.lane.b32.xlu0 %v3919_v41, %s6449_s8  ;;  %s3609_s8 = smov 79   ;;  %6673 = vst [vmem:[#allocation99_spill] sm:$0xff] %v4546_v33 }
 0x3d9   : > { %v4167_v35 = vpop.permute.xlu1 %1474  ;;  %v4169_v6 = vpop.permute.xlu0 %1472 }
 0x3da   : > { %6586 = vst [vmem:[#allocation30_spill] sm:$0xff] %v4167_v35  ;;  %6587 = vst [vmem:[#allocation31_spill] sm:$0xff] %v4169_v6 }
 0x3db   : > { %2871 = vrot.lane.b32.xlu1 %v3921_v42, %s6451_s16  ;;  %2869 = vrot.lane.b32.xlu0 %v3919_v41, %s6451_s16  ;;  %s3610_s16 = smov 78  }
 0x3dd   : > { %v4175_v38 = vpop.permute.xlu1 %1521  ;;  %v4177_v39 = vpop.permute.xlu0 %1519 }
 0x3de   : > { %6588 = vst [vmem:[#allocation32_spill] sm:$0xff] %v4175_v38  ;;  %6589 = vst [vmem:[#allocation33_spill] sm:$0xff] %v4177_v39  ;;  %v4492_v39 = vld [vmem:[#allocation8 + $0x7] ss:$8 sm:$0x3] }
 0x3df   : > { %2918 = vrot.lane.b32.xlu1 %v3921_v42, %s3609_s8  ;;  %2916 = vrot.lane.b32.xlu0 %v3919_v41, %s3609_s8 }
 0x3e1   : > { %v4183_v3 = vpop.permute.xlu1 %1568  ;;  %v4185_v11 = vpop.permute.xlu0 %1566 }
 0x3e2   : > { %6590 = vst [vmem:[#allocation34_spill] sm:$0xff] %v4183_v3  ;;  %6591 = vst [vmem:[#allocation35_spill] sm:$0xff] %v4185_v11 }
 0x3e3   : > { %2965 = vrot.lane.b32.xlu1 %v3921_v42, %s3610_s16  ;;  %2963 = vrot.lane.b32.xlu0 %v3919_v41, %s3610_s16 }
 0x3e5   : > { %v4195_v14 = vpop.permute.xlu1 %1615  ;;  %v4197_v18 = vpop.permute.xlu0 %1613 }
 0x3e6   : > { %6592 = vst [vmem:[#allocation36_spill] sm:$0xff] %v4195_v14  ;;  %6593 = vst [vmem:[#allocation37_spill] sm:$0xff] %v4197_v18  ;;  %v4501_v14 = vld [vmem:[#allocation8 + $0x10] ss:$8 sm:$0x3] }
 0x3e7   : > { %764 = vrot.lane.b32.xlu1 %v4193_v13, %s3564_s22  ;;  %762 = vrot.lane.b32.xlu0 %v4191_v12, %s3564_s22  ;;  %s6616_s22 = smov 31  }
 0x3e9   : > { %v4203_v19 = vpop.permute.xlu1 %1662  ;;  %v4205_v28 = vpop.permute.xlu0 %1660 }
 0x3ea   : > { %6594 = vst [vmem:[#allocation38_spill] sm:$0xff] %v4203_v19  ;;  %6595 = vst [vmem:[#allocation39_spill] sm:$0xff] %v4205_v28  ;;  %v4456_v28 = vld [vmem:[#allocation8 + $0x5] ss:$8 sm:$0x3] }
 0x3eb   : > { %809 = vrot.lane.b32.xlu1 %v4193_v13, %s3565_s21  ;;  %807 = vrot.lane.b32.xlu0 %v4191_v12, %s3565_s21  ;;  %s6619_s21 = smov 30  }
 0x3ed   : > { %v4211_v1 = vpop.permute.xlu1 %1709  ;;  %v4213_v2 = vpop.permute.xlu0 %1707 }
 0x3ee   : > { %6596 = vst [vmem:[#allocation40_spill] sm:$0xff] %v4211_v1  ;;  %6597 = vst [vmem:[#allocation41_spill] sm:$0xff] %v4213_v2  ;;  %v4454_v1 = vld [vmem:[#allocation8 + $0x4] ss:$8 sm:$0x3] }
 0x3ef   : > { %856 = vrot.lane.b32.xlu1 %v4193_v13, %s3566_s9  ;;  %854 = vrot.lane.b32.xlu0 %v4191_v12, %s3566_s9  ;;  %s6622_s9 = smov 29  }
 0x3f1   : > { %v4219_v4 = vpop.permute.xlu1 %1756  ;;  %v4221_v5 = vpop.permute.xlu0 %1754 }
 0x3f2   : > { %6598 = vst [vmem:[#allocation42_spill] sm:$0xff] %v4219_v4  ;;  %6599 = vst [vmem:[#allocation43_spill] sm:$0xff] %v4221_v5 }
 0x3f3   : > { %903 = vrot.lane.b32.xlu1 %v4193_v13, %s3567_s18  ;;  %901 = vrot.lane.b32.xlu0 %v4191_v12, %s3567_s18  ;;  %s6625_s18 = smov 19  }
 0x3f5   : > { %v4227_v34 = vpop.permute.xlu1 %1803  ;;  %v4229_v36 = vpop.permute.xlu0 %1801 }
 0x3f6   : > { %6600 = vst [vmem:[#allocation44_spill] sm:$0xff] %v4227_v34  ;;  %6601 = vst [vmem:[#allocation45_spill] sm:$0xff] %v4229_v36  ;;  %v773_v36 = vsel %vm766_vm6, %v4041_v44, %v4039_v43 }
 0x3f7   : > { %950 = vrot.lane.b32.xlu1 %v4193_v13, %s3568_s28  ;;  %948 = vrot.lane.b32.xlu0 %v4191_v12, %s3568_s28  ;;  %s6628_s28 = smov 18  }
 0x3f9   : > { %v4235_v37 = vpop.permute.xlu1 %1850  ;;  %v4237_v40 = vpop.permute.xlu0 %1848 }
 0x3fa   : > { %6602 = vst [vmem:[#allocation46_spill] sm:$0xff] %v4235_v37  ;;  %6603 = vst [vmem:[#allocation47_spill] sm:$0xff] %v4237_v40 }
 0x3fb   : > { %997 = vrot.lane.b32.xlu1 %v4193_v13, %s3569_s30  ;;  %995 = vrot.lane.b32.xlu0 %v4191_v12, %s3569_s30  ;;  %s6631_s30 = smov 17  }
 0x3fd   : > { %v4243_v63 = vpop.permute.xlu1 %1931  ;;  %v4245_v0 = vpop.permute.xlu0 %1929 }
 0x3fe   : > { %6604 = vst [vmem:[#allocation48_spill] sm:$0xff] %v4243_v63  ;;  %6605 = vst [vmem:[#allocation49_spill] sm:$0xff] %v4245_v0  ;;  %v4418_v63 = vld [vmem:[#allocation8] ss:$8 sm:$0x3] }
 0x3ff   : > { %1044 = vrot.lane.b32.xlu1 %v4193_v13, %s3570_s14  ;;  %1042 = vrot.lane.b32.xlu0 %v4191_v12, %s3570_s14  ;;  %s6634_s14 = smov 16   ;;  %v4430_v0 = vld [vmem:[#allocation6] ss:$8 sm:$0x3] }
 0x401   : > { %v4251_v25 = vpop.permute.xlu1 %1978  ;;  %v4253_v27 = vpop.permute.xlu0 %1976 }
 0x402   : > { %6606 = vst [vmem:[#allocation50_spill] sm:$0xff] %v4251_v25  ;;  %6607 = vst [vmem:[#allocation51_spill] sm:$0xff] %v4253_v27  ;;  %v1889_v25 = vld [vmem:[#allocation6 + $0x30] ss:$8 sm:$0x3] }
 0x403   : > { %1091 = vrot.lane.b32.xlu1 %v4193_v13, %s3571_s15  ;;  %1089 = vrot.lane.b32.xlu0 %v4191_v12, %s3571_s15  ;;  %s6637_s15 = smov 15   ;;  %v1906_v27 = vld [vmem:[#allocation8 + $0x30] ss:$8 sm:$0x3] }
 0x404   : > { %v1911_v40 = vrot.slane %v1906_v27, %v3884_v16 }
 0x405   : > { %v4259_v30 = vpop.permute.xlu1 %2025  ;;  %v4261_v31 = vpop.permute.xlu0 %2023 }
 0x406   : > { %6608 = vst [vmem:[#allocation52_spill] sm:$0xff] %v4259_v30  ;;  %6609 = vst [vmem:[#allocation53_spill] sm:$0xff] %v4261_v31  ;;  %v4481_v19 = vmul.f32 %v1911_v40, %v3919_v41 }
 0x407   : > { %1138 = vrot.lane.b32.xlu1 %v4193_v13, %s3572_s17  ;;  %1136 = vrot.lane.b32.xlu0 %v4191_v12, %s3572_s17  ;;  %s6640_s17 = smov 14  }
 0x408   : > { %6668 = vst [vmem:[#allocation95_spill] sm:$0xff] %v4481_v19  ;;  %v4503_v19 = vld [vmem:[#allocation8 + $0x11] ss:$8 sm:$0x3] }
 0x409   : > { %v4267_v24 = vpop.permute.xlu1 %2072  ;;  %v4269_v26 = vpop.permute.xlu0 %2070 }
 0x40a   : > { %6610 = vst [vmem:[#allocation54_spill] sm:$0xff] %v4267_v24  ;;  %6611 = vst [vmem:[#allocation55_spill] sm:$0xff] %v4269_v26 }
 0x40b   : > { %1185 = vrot.lane.b32.xlu1 %v4193_v13, %s3573_s19  ;;  %1183 = vrot.lane.b32.xlu0 %v4191_v12, %s3573_s19  ;;  %s6643_s19 = smov 13  }
 0x40d   : > { %v4275_v29 = vpop.permute.xlu1 %2119  ;;  %v4277_v30 = vpop.permute.xlu0 %2117 }
 0x40e   : > { %6612 = vst [vmem:[#allocation56_spill] sm:$0xff] %v4275_v29  ;;  %6613 = vst [vmem:[#allocation57_spill] sm:$0xff] %v4277_v30 }
 0x40f   : > { %1232 = vrot.lane.b32.xlu1 %v4193_v13, %s3574_s11  ;;  %1230 = vrot.lane.b32.xlu0 %v4191_v12, %s3574_s11  ;;  %s6646_s11 = smov 3  }
 0x411   : > { %v4283_v31 = vpop.permute.xlu1 %2166  ;;  %v4285_v24 = vpop.permute.xlu0 %2164 }
 0x412   : > { %6614 = vst [vmem:[#allocation58_spill] sm:$0xff] %v4283_v31  ;;  %6615 = vst [vmem:[#allocation59_spill] sm:$0xff] %v4285_v24 }
 0x413   : > { %1279 = vrot.lane.b32.xlu1 %v4193_v13, %s6616_s22  ;;  %1277 = vrot.lane.b32.xlu0 %v4191_v12, %s6616_s22  ;;  %s6649_s22 = smov 2  }
 0x415   : > { %v4291_v26 = vpop.permute.xlu1 %2213  ;;  %v4293_v29 = vpop.permute.xlu0 %2211 }
 0x416   : > { %6617 = vst [vmem:[#allocation60_spill] sm:$0xff] %v4291_v26  ;;  %6618 = vst [vmem:[#allocation61_spill] sm:$0xff] %v4293_v29 }
 0x417   : > { %1326 = vrot.lane.b32.xlu1 %v4193_v13, %s6619_s21  ;;  %1324 = vrot.lane.b32.xlu0 %v4191_v12, %s6619_s21  ;;  %s6652_s21 = smov 1  }
 0x419   : > { %v4299_v30 = vpop.permute.xlu1 %2260  ;;  %v4301_v31 = vpop.permute.xlu0 %2258 }
 0x41a   : > { %6620 = vst [vmem:[#allocation62_spill] sm:$0xff] %v4299_v30  ;;  %6621 = vst [vmem:[#allocation63_spill] sm:$0xff] %v4301_v31 }
 0x41b   : > { %1373 = vrot.lane.b32.xlu1 %v4193_v13, %s6622_s9  ;;  %1371 = vrot.lane.b32.xlu0 %v4191_v12, %s6622_s9  ;;  %s6655_s9 = smov 127  }
 0x41d   : > { %v4307_v24 = vpop.permute.xlu1 %2307  ;;  %v4309_v26 = vpop.permute.xlu0 %2305 }
 0x41e   : > { %6623 = vst [vmem:[#allocation64_spill] sm:$0xff] %v4307_v24  ;;  %6624 = vst [vmem:[#allocation65_spill] sm:$0xff] %v4309_v26 }
 0x41f   : > { %1420 = vrot.lane.b32.xlu1 %v4193_v13, %s6625_s18  ;;  %1418 = vrot.lane.b32.xlu0 %v4191_v12, %s6625_s18  ;;  %s6658_s18 = smov 126  }
 0x421   : > { %v4315_v29 = vpop.permute.xlu1 %2354  ;;  %v4317_v30 = vpop.permute.xlu0 %2352 }
 0x422   : > { %6626 = vst [vmem:[#allocation66_spill] sm:$0xff] %v4315_v29  ;;  %6627 = vst [vmem:[#allocation67_spill] sm:$0xff] %v4317_v30 }
 0x423   : > { %1467 = vrot.lane.b32.xlu1 %v4193_v13, %s6628_s28  ;;  %1465 = vrot.lane.b32.xlu0 %v4191_v12, %s6628_s28  ;;  %s6663_s28 = smov 115  }
 0x425   : > { %v4323_v31 = vpop.permute.xlu1 %2401  ;;  %v4325_v24 = vpop.permute.xlu0 %2399 }
 0x426   : > { %6629 = vst [vmem:[#allocation68_spill] sm:$0xff] %v4323_v31  ;;  %6630 = vst [vmem:[#allocation69_spill] sm:$0xff] %v4325_v24 }
 0x427   : > { %1514 = vrot.lane.b32.xlu1 %v4193_v13, %s6631_s30  ;;  %1512 = vrot.lane.b32.xlu0 %v4191_v12, %s6631_s30  ;;  %s6671_s30 = smov 113  }
 0x429   : > { %v4331_v26 = vpop.permute.xlu1 %2448  ;;  %v4333_v29 = vpop.permute.xlu0 %2446 }
 0x42a   : > { %6632 = vst [vmem:[#allocation70_spill] sm:$0xff] %v4331_v26  ;;  %6633 = vst [vmem:[#allocation71_spill] sm:$0xff] %v4333_v29 }
 0x42b   : > { %1561 = vrot.lane.b32.xlu1 %v4193_v13, %s6634_s14  ;;  %1559 = vrot.lane.b32.xlu0 %v4191_v12, %s6634_s14 }
 0x42d   : > { %v4339_v30 = vpop.permute.xlu1 %2495  ;;  %v4341_v31 = vpop.permute.xlu0 %2493 }
 0x42e   : > { %6635 = vst [vmem:[#allocation72_spill] sm:$0xff] %v4339_v30  ;;  %6636 = vst [vmem:[#allocation73_spill] sm:$0xff] %v4341_v31 }
 0x42f   : > { %1608 = vrot.lane.b32.xlu1 %v4193_v13, %s6637_s15  ;;  %1606 = vrot.lane.b32.xlu0 %v4191_v12, %s6637_s15  ;;  %s6675_s15 = smov 112  }
 0x431   : > { %v4347_v24 = vpop.permute.xlu1 %2542  ;;  %v4349_v26 = vpop.permute.xlu0 %2540 }
 0x432   : > { %6638 = vst [vmem:[#allocation74_spill] sm:$0xff] %v4347_v24  ;;  %6639 = vst [vmem:[#allocation75_spill] sm:$0xff] %v4349_v26 }
 0x433   : > { %1655 = vrot.lane.b32.xlu1 %v4193_v13, %s6640_s17  ;;  %1653 = vrot.lane.b32.xlu0 %v4191_v12, %s6640_s17  ;;  %s6678_s17 = smov 111  }
 0x435   : > { %v4355_v29 = vpop.permute.xlu1 %2589  ;;  %v4357_v30 = vpop.permute.xlu0 %2587 }
 0x436   : > { %6641 = vst [vmem:[#allocation76_spill] sm:$0xff] %v4355_v29  ;;  %6642 = vst [vmem:[#allocation77_spill] sm:$0xff] %v4357_v30 }
 0x437   : > { %1702 = vrot.lane.b32.xlu1 %v4193_v13, %s6643_s19  ;;  %1700 = vrot.lane.b32.xlu0 %v4191_v12, %s6643_s19  ;;  %s6680_s19 = smov 110  }
 0x439   : > { %v4363_v31 = vpop.permute.xlu1 %2636  ;;  %v4365_v24 = vpop.permute.xlu0 %2634 }
 0x43a   : > { %6644 = vst [vmem:[#allocation78_spill] sm:$0xff] %v4363_v31  ;;  %6645 = vst [vmem:[#allocation79_spill] sm:$0xff] %v4365_v24 }
 0x43b   : > { %1749 = vrot.lane.b32.xlu1 %v4193_v13, %s6646_s11  ;;  %1747 = vrot.lane.b32.xlu0 %v4191_v12, %s6646_s11  ;;  %s6682_s11 = smov 109  }
 0x43d   : > { %v4371_v26 = vpop.permute.xlu1 %2683  ;;  %v4373_v29 = vpop.permute.xlu0 %2681 }
 0x43e   : > { %6647 = vst [vmem:[#allocation80_spill] sm:$0xff] %v4371_v26  ;;  %6648 = vst [vmem:[#allocation81_spill] sm:$0xff] %v4373_v29 }
 0x43f   : > { %1796 = vrot.lane.b32.xlu1 %v4193_v13, %s6649_s22  ;;  %1794 = vrot.lane.b32.xlu0 %v4191_v12, %s6649_s22  ;;  %s6685_s22 = smov 99  }
 0x441   : > { %v4379_v30 = vpop.permute.xlu1 %2730  ;;  %v4381_v31 = vpop.permute.xlu0 %2728 }
 0x442   : > { %6650 = vst [vmem:[#allocation82_spill] sm:$0xff] %v4379_v30  ;;  %6651 = vst [vmem:[#allocation83_spill] sm:$0xff] %v4381_v31 }
 0x443   : > { %1843 = vrot.lane.b32.xlu1 %v4193_v13, %s6652_s21  ;;  %1841 = vrot.lane.b32.xlu0 %v4191_v12, %s6652_s21  ;;  %s6688_s21 = smov 98  }
 0x445   : > { %v4387_v24 = vpop.permute.xlu1 %2777  ;;  %v4389_v26 = vpop.permute.xlu0 %2775 }
 0x446   : > { %6653 = vst [vmem:[#allocation84_spill] sm:$0xff] %v4387_v24  ;;  %6654 = vst [vmem:[#allocation85_spill] sm:$0xff] %v4389_v26 }
 0x447   : > { %1924 = vrot.lane.b32.xlu1 %v4193_v13, %s6655_s9  ;;  %1922 = vrot.lane.b32.xlu0 %v4191_v12, %s6655_s9  ;;  %s6696_s9 = smov 95  }
 0x449   : > { %v4395_v29 = vpop.permute.xlu1 %2824  ;;  %v4397_v30 = vpop.permute.xlu0 %2822 }
 0x44a   : > { %6656 = vst [vmem:[#allocation86_spill] sm:$0xff] %v4395_v29  ;;  %6657 = vst [vmem:[#allocation87_spill] sm:$0xff] %v4397_v30  ;;  %v4412_v29 = vsub.s32 1, %v3862_v23  ;;  %v4428_v23 = vld [vmem:[#allocation8 + $0x3] ss:$8 sm:$0x3] }
 0x44b   : > { %1971 = vrot.lane.b32.xlu1 %v4193_v13, %s6658_s18  ;;  %1969 = vrot.lane.b32.xlu0 %v4191_v12, %s6658_s18  ;;  %s6699_s18 = smov 94  }
 0x44c   : > { %v1915_v37 = vrot.slane %v1906_v27, %v4412_v29  ;;  %v800_v34 = vrot.slane %v4418_v63, %v4412_v29  ;;  %v784_v2 = vrot.slane %v4430_v0, %v4412_v29 }
 0x44d   : > { %v4403_v31 = vpop.permute.xlu1 %2871  ;;  %v4405_v24 = vpop.permute.xlu0 %2869 }
 0x44e   : > { %6659 = vst [vmem:[#allocation88_spill] sm:$0xff] %v4403_v31  ;;  %6660 = vst [vmem:[#allocation89_spill] sm:$0xff] %v4405_v24  ;;  %v4420_v31 = vld [vmem:[#allocation8 + $0x1] ss:$8 sm:$0x3]  ;;  %v4484_v18 = vmul.f32 %v1915_v37, %v3921_v42 }
 0x44f   : > { %2018 = vrot.lane.b32.xlu1 %v4193_v13, %s3590_s13  ;;  %2016 = vrot.lane.b32.xlu0 %v4191_v12, %s3590_s13  ;;  %v4422_v24 = vld [vmem:[#allocation8 + $0x2] ss:$8 sm:$0x3]  ;;  %v847_v27 = vrot.slane %v4420_v31, %v4412_v29  ;;  %s6666_s13 = smov 114  }
 0x450   : > { %6669 = vst [vmem:[#allocation96_spill] sm:$0xff] %v4484_v18  ;;  %v804_v18 = vmul.f32 %v800_v34, %v773_v36  ;;  %v4530_v36 = vld [vmem:[#allocation6 + $0x2] ss:$8 sm:$0x3] }
 0x451   : > { %v4414_v30 = vpop.permute.xlu1 %2918  ;;  %v4416_v26 = vpop.permute.xlu0 %2916  ;;  %v4538_v42 = vld [vmem:[#allocation8 + $0x13] ss:$8 sm:$0x3]  ;;  %v877_v35 = vrot.slane %v4530_v36, %v4412_v29 }
 0x452   : > { %6661 = vst [vmem:[#allocation90_spill] sm:$0xff] %v4414_v30  ;;  %6662 = vst [vmem:[#allocation91_spill] sm:$0xff] %v4416_v26  ;;  %v1894_v26 = vrot.slane %v1889_v25, %v3884_v16  ;;  %v1898_v30 = vrot.slane %v1889_v25, %v4412_v29 }
 0x453   : > { %2065 = vrot.lane.b32.xlu1 %v4193_v13, %s6663_s28  ;;  %2063 = vrot.lane.b32.xlu0 %v4191_v12, %s6663_s28  ;;  %6672 = vst [vmem:[#allocation98_spill] sm:$0xff] %v4538_v42  ;;  %s6703_s28 = smov 93  }
 0x454   : > { %v4478_v25 = vmul.f32 %v1898_v30, %v4193_v13 }
 0x455   : > { %v4442_v5 = vpop.permute.xlu1 %2965  ;;  %v4444_v4 = vpop.permute.xlu0 %2963 }
 0x456   : > { %6664 = vst [vmem:[#allocation92_spill] sm:$0xff] %v4442_v5  ;;  %6665 = vst [vmem:[#allocation93_spill] sm:$0xff] %v4444_v4  ;;  %v4463_v5 = vld [vmem:[#allocation8 + $0x6] ss:$8 sm:$0x3] }
 0x457   : > { %2112 = vrot.lane.b32.xlu1 %v4193_v13, %s6666_s13  ;;  %2110 = vrot.lane.b32.xlu0 %v4191_v12, %s6666_s13  ;;  %v4475_v4 = vld [vmem:[#allocation6 + $0x1] ss:$8 sm:$0x3]  ;;  %6667 = vst [vmem:[#allocation94_spill] sm:$0xff] %v4478_v25  ;;  %v4495_v25 = vmul.f32 %v1894_v26, %v4191_v12  ;;  %s6709_s13 = smov 83  }
 0x458   : > { %v4512_v26 = vld [vmem:[#allocation8 + $0x12] ss:$8 sm:$0x3]  ;;  %v830_v40 = vrot.slane %v4475_v4, %v4412_v29  ;;  %v826_v17 = vrot.slane %v4475_v4, %v3884_v16  ;;  %v6681_v4 = vrot.slane %v4418_v63, %v3884_v16  ;;  %v873_v63 = vrot.slane %v4530_v36, %v3884_v16 }
 0x459   : > { %v765_v38 = vpop.permute.xlu1 %764  ;;  %v763_v30 = vpop.permute.xlu0 %762  ;;  %6670 = vst [vmem:[#allocation97_spill] sm:$0xff] %v4495_v25 }
 0x45a   : > { %v767_v3 = vsel %vm766_vm6, %v763_v30, %v765_v38  ;;  %v4509_v11 = vsel %vm766_vm6, %v765_v38, %v763_v30  ;;  %v818_v38 = vsel %vm811_vm7, %v4049_v46, %v4047_v45  ;;  %v4548_v30 = vld [vmem:[#allocation8 + $0x15] ss:$8 sm:$0x3] }
 0x45b   : > { %v788_v37 = vmul.f32 %v784_v2, %v767_v3  ;;  %2159 = vrot.lane.b32.xlu1 %v4193_v13, %s6671_s30  ;;  %2157 = vrot.lane.b32.xlu0 %v4191_v12, %s6671_s30  ;;  %6674 = vst [vmem:[#allocation100_spill] sm:$0xff] %v4548_v30  ;;  %v865_v2 = vsel %vm858_vm8, %v4057_v48, %v4055_v47  ;;  %s6715_s30 = smov 82  }
 0x45d   : > { %v4540_v34 = vadd.f32 %v804_v18, %v788_v37  ;;  %v810_v6 = vpop.permute.xlu1 %809  ;;  %v808_v3 = vpop.permute.xlu0 %807  ;;  %v851_v18 = vmul.f32 %v847_v27, %v818_v38  ;;  %v912_v27 = vsel %vm905_vm9, %v4065_v50, %v4063_v49  ;;  %v780_v38 = vrot.slane %v4430_v0, %v3884_v16 }
 0x45e   : > { %v812_v25 = vsel %vm811_vm7, %v808_v3, %v810_v6  ;;  %v4554_v41 = vsel %vm811_vm7, %v810_v6, %v808_v3  ;;  %v4583_v6 = vld [vmem:[#allocation8 + $0x17] ss:$8 sm:$0x3] }
 0x45f   : > { %v834_v37 = vmul.f32 %v830_v40, %v812_v25  ;;  %2206 = vrot.lane.b32.xlu1 %v4193_v13, %s6675_s15  ;;  %2204 = vrot.lane.b32.xlu0 %v4191_v12, %s6675_s15  ;;  %v4573_v40 = vld [vmem:[#allocation6 + $0x3] ss:$8 sm:$0x3]  ;;  %v833_v36 = vmul.f32 %v826_v17, %v4554_v41  ;;  %v6684_v41 = vrot.slane %v4454_v1, %v4412_v29  ;;  %s6721_s15 = smov 81  }
 0x460   : > { %v924_v0 = vrot.slane %v4573_v40, %v4412_v29 }
 0x461   : > { %v4585_v8 = vadd.f32 %v851_v18, %v834_v37  ;;  %v857_v25 = vpop.permute.xlu1 %856  ;;  %v855_v21 = vpop.permute.xlu0 %854  ;;  %v6677_v18 = vrot.slane %v4422_v24, %v4412_v29 }
 0x462   : > { %v859_v3 = vsel %vm858_vm8, %v855_v21, %v857_v25  ;;  %v860_v32 = vsel %vm858_vm8, %v857_v25, %v855_v21  ;;  %v962_v25 = vld [vmem:[#allocation6 + $0x4] ss:$8 sm:$0x3]  ;;  %v4624_v21 = vld [vmem:[#allocation8 + $0x20] ss:$8 sm:$0x3] }
 0x463   : > { %v898_v37 = vmul.f32 %v6677_v18, %v865_v2  ;;  %v881_v33 = vmul.f32 %v877_v35, %v859_v3  ;;  %2253 = vrot.lane.b32.xlu1 %v4193_v13, %s6678_s17  ;;  %2251 = vrot.lane.b32.xlu0 %v4191_v12, %s6678_s17  ;;  %v774_v3 = vsel %vm766_vm6, %v4039_v43, %v4041_v44  ;;  %vm1516_vm6 = vcmp.lt.s32.totalorder %v3860_v22, 17  ;;  %s6727_s17 = smov 80  }
 0x464   : > { %v6679_v18 = vrot.slane %v4428_v23, %v4412_v29  ;;  %v787_v35 = vmul.f32 %v780_v38, %v4509_v11  ;;  %v971_v11 = vrot.slane %v962_v25, %v4412_v29  ;;  %v803_v38 = vmul.f32 %v6681_v4, %v774_v3 }
 0x465   : > { %v4626_v30 = vadd.f32 %v898_v37, %v881_v33  ;;  %v904_v2 = vpop.permute.xlu1 %903  ;;  %v902_v9 = vpop.permute.xlu0 %901  ;;  %v967_v33 = vrot.slane %v962_v25, %v3884_v16 }
 0x466   : > { %v945_v42 = vmul.f32 %v6679_v18, %v912_v27  ;;  %v906_v43 = vsel %vm905_vm9, %v902_v9, %v904_v2  ;;  %v4635_v44 = vsel %vm905_vm9, %v904_v2, %v902_v9  ;;  %v1009_v27 = vld [vmem:[#allocation6 + $0x5] ss:$8 sm:$0x3]  ;;  %v819_v9 = vsel %vm811_vm7, %v4047_v45, %v4049_v46 }
 0x467   : > { %v928_v18 = vmul.f32 %v924_v0, %v906_v43  ;;  %2300 = vrot.lane.b32.xlu1 %v4193_v13, %s6680_s19  ;;  %2298 = vrot.lane.b32.xlu0 %v4191_v12, %s6680_s19  ;;  %v959_v2 = vsel %vm952_vm10, %v4073_v52, %v4071_v51  ;;  %v1014_v45 = vrot.slane %v1009_v27, %v3884_v16  ;;  %vm1563_vm7 = vcmp.lt.s32.totalorder %v3860_v22, 16  ;;  %s3228_s19 = sshll.u32 %s3673_s0, 10 }
 0x468   : > { %v805_v46 = vadd.f32 %v803_v38, %v787_v35  ;;  %v1018_v0 = vrot.slane %v1009_v27, %v4412_v29  ;;  %v6683_v35 = vrot.slane %v4420_v31, %v3884_v16  ;;  %v866_v27 = vsel %vm858_vm8, %v4055_v47, %v4057_v48  ;;  %s6326_s0 = scalar_lea.hbm %s6382_s6, %s3228_s19 }
 0x469   : > { %v4661_v25 = vadd.f32 %v945_v42, %v928_v18  ;;  %v951_v3 = vpop.permute.xlu1 %950  ;;  %v949_v43 = vpop.permute.xlu0 %948  ;;  %v992_v17 = vmul.f32 %v6684_v41, %v959_v2  ;;  %v1061_v47 = vrot.slane %v1056_v20, %v3884_v16  ;;  %v880_v48 = vmul.f32 %v873_v63, %v860_v32 }
 0x46a   : > { %v953_v4 = vsel %vm952_vm10, %v949_v43, %v951_v3  ;;  %v954_v37 = vsel %vm952_vm10, %v951_v3, %v949_v43  ;;  %v850_v38 = vmul.f32 %v6683_v35, %v819_v9  ;;  %v1103_v35 = vld [vmem:[#allocation6 + $0x7] ss:$8 sm:$0x3]  ;;  %v6686_v32 = vrot.slane %v4422_v24, %v3884_v16 }
 0x46b   : > { %v974_v42 = vmul.f32 %v967_v33, %v954_v37  ;;  %v975_v18 = vmul.f32 %v971_v11, %v953_v4  ;;  %2347 = vrot.lane.b32.xlu1 %v4193_v13, %s6682_s11  ;;  %2345 = vrot.lane.b32.xlu0 %v4191_v12, %s6682_s11  ;;  %v1006_v33 = vsel %vm999_vm11, %v4081_v54, %v4079_v53  ;;  %vm1610_vm8 = vcmp.lt.s32.totalorder %v3860_v22, 15  ;;  %s6928_s11 = sshll.u32 %s3788_s10, 6 }
 0x46c   : > { %v920_v11 = vrot.slane %v4573_v40, %v3884_v16  ;;  %v1065_v4 = vrot.slane %v1056_v20, %v4412_v29  ;;  %v852_v40 = vadd.f32 %v850_v38, %v833_v36  ;;  %v913_v20 = vsel %vm905_vm9, %v4063_v49, %v4065_v50 }
 0x46d   : > { %v4691_v37 = vadd.f32 %v974_v42, %v805_v46  ;;  %v977_v31 = vadd.f32 %v975_v18, %v4540_v34  ;;  %v998_v9 = vpop.permute.xlu1 %997  ;;  %v996_v3 = vpop.permute.xlu0 %995  ;;  %v897_v34 = vmul.f32 %v6686_v32, %v866_v27  ;;  %v6687_v63 = vrot.slane %v4456_v28, %v4412_v29  ;;  %v4721_v18 = vld [vmem:[#allocation8 + $0x21] ss:$8 sm:$0x3] }
 0x46e   : > { %v1000_v2 = vsel %vm999_vm11, %v996_v3, %v998_v9  ;;  %v1001_v43 = vsel %vm999_vm11, %v998_v9, %v996_v3  ;;  %v1053_v36 = vsel %vm1046_vm12, %v4089_v56, %v4087_v55  ;;  %v1108_v49 = vrot.slane %v1103_v35, %v3884_v16 }
 0x46f   : > { %v1021_v46 = vmul.f32 %v1014_v45, %v1001_v43  ;;  %v1022_v42 = vmul.f32 %v1018_v0, %v1000_v2  ;;  %2394 = vrot.lane.b32.xlu1 %v4193_v13, %s6685_s22  ;;  %2392 = vrot.lane.b32.xlu0 %v4191_v12, %s6685_s22  ;;  %v1039_v45 = vmul.f32 %v6687_v63, %v1006_v33  ;;  %vm1657_vm9 = vcmp.lt.s32.totalorder %v3860_v22, 14  ;;  %s299_s22 = scalar_lea.vmem [#allocation9], %s6928_s11 }
 0x470   : > { %v4715_v0 = vadd.f32 %v992_v17, %v977_v31  ;;  %v899_v50 = vadd.f32 %v897_v34, %v880_v48  ;;  %v1112_v31 = vrot.slane %v1103_v35, %v4412_v29  ;;  %v927_v9 = vmul.f32 %v920_v11, %v4635_v44 }
 0x471   : > { %v4723_v24 = vadd.f32 %v1021_v46, %v852_v40  ;;  %v1024_v38 = vadd.f32 %v1022_v42, %v4585_v8  ;;  %v1045_v27 = vpop.permute.xlu1 %1044  ;;  %v1043_v41 = vpop.permute.xlu0 %1042  ;;  %v1150_v8 = vld [vmem:[#allocation6 + $0x10] ss:$8 sm:$0x3]  ;;  %v6689_v48 = vrot.slane %v4428_v23, %v3884_v16  ;;  %v960_v35 = vsel %vm952_vm10, %v4071_v51, %v4073_v52 }
 0x472   : > { %v1047_v17 = vsel %vm1046_vm12, %v1043_v41, %v1045_v27  ;;  %v1048_v33 = vsel %vm1046_vm12, %v1045_v27, %v1043_v41  ;;  %v1595_v44 = vrot.slane %v4721_v18, %v3884_v16  ;;  %v1100_v23 = vsel %vm1093_vm13, %v4097_v58, %v4095_v57 }
 0x473   : > { %v1068_v3 = vmul.f32 %v1061_v47, %v1048_v33  ;;  %v1069_v2 = vmul.f32 %v1065_v4, %v1047_v17  ;;  %2441 = vrot.lane.b32.xlu1 %v4193_v13, %s6688_s21  ;;  %2439 = vrot.lane.b32.xlu0 %v4191_v12, %s6688_s21  ;;  %v944_v43 = vmul.f32 %v6689_v48, %v913_v20  ;;  %vm1704_vm10 = vcmp.lt.s32.totalorder %v3860_v22, 13  ;;  %s3110_s21 = sshll.u32 %s299_s22, 4  ;;  %s6332_s21 = int_to_ptr.vmem [resolvable:$true] %s3110_s21 }
 0x474   : > { %v4747_v11 = vadd.f32 %v1039_v45, %v1024_v38  ;;  %v6690_v47 = vrot.slane %v4463_v5, %v4412_v29  ;;  %v1155_v34 = vrot.slane %v1150_v8, %v3884_v16  ;;  %v1159_v20 = vrot.slane %v1150_v8, %v4412_v29 }
 0x475   : > { %v4756_v40 = vadd.f32 %v1068_v3, %v899_v50  ;;  %v1071_v46 = vadd.f32 %v1069_v2, %v4626_v30  ;;  %v1092_v42 = vpop.permute.xlu1 %1091  ;;  %v1090_v51 = vpop.permute.xlu0 %1089  ;;  %v946_v63 = vadd.f32 %v944_v43, %v927_v9  ;;  %v1197_v30 = vld [vmem:[#allocation6 + $0x11] ss:$8 sm:$0x3]  ;;  %v6691_v38 = vrot.slane %v4454_v1, %v3884_v16 }
 0x476   : > { %v1086_v4 = vmul.f32 %v6690_v47, %v1053_v36  ;;  %v1094_v52 = vsel %vm1093_vm13, %v1090_v51, %v1092_v42  ;;  %v1095_v32 = vsel %vm1093_vm13, %v1092_v42, %v1090_v51  ;;  %v1007_v41 = vsel %vm999_vm11, %v4079_v53, %v4081_v54 }
 0x477   : > { %v1115_v45 = vmul.f32 %v1108_v49, %v1095_v32  ;;  %v1116_v36 = vmul.f32 %v1112_v31, %v1094_v52  ;;  %2488 = vrot.lane.b32.xlu1 %v4193_v13, %s3600_s12  ;;  %2486 = vrot.lane.b32.xlu0 %v4191_v12, %s3600_s12  ;;  %v991_v27 = vmul.f32 %v6691_v38, %v960_v35  ;;  %v4788_v31 = vld [vmem:[#allocation8 + $0x22] ss:$8 sm:$0x3]  ;;  %s6693_s12 = smov 96   ;;  %vm1751_vm11 = vcmp.lt.s32.totalorder %v3860_v22, 3 }
 0x478   : > { %v1599_v49 = vrot.slane %v4721_v18, %v4412_v29  ;;  %v4779_v50 = vadd.f32 %v1086_v4, %v1071_v46  ;;  %v6692_v17 = vrot.slane %v4492_v39, %v4412_v29  ;;  %v1147_v1 = vsel %vm1140_vm14, %v4105_v60, %v4103_v59 }
 0x479   : > { %v4790_v9 = vadd.f32 %v1115_v45, %v946_v63  ;;  %v1118_v53 = vadd.f32 %v1116_v36, %v4661_v25  ;;  %v1139_v54 = vpop.permute.xlu1 %1138  ;;  %v1137_v3 = vpop.permute.xlu0 %1136  ;;  %v1202_v48 = vrot.slane %v1197_v30, %v3884_v16  ;;  %v1206_v43 = vrot.slane %v1197_v30, %v4412_v29  ;;  %v1244_v25 = vld [vmem:[#allocation6 + $0x12] ss:$8 sm:$0x3] }
 0x47a   : > { %v1133_v33 = vmul.f32 %v6692_v17, %v1100_v23  ;;  %v1141_v2 = vsel %vm1140_vm14, %v1137_v3, %v1139_v54  ;;  %v1142_v8 = vsel %vm1140_vm14, %v1139_v54, %v1137_v3  ;;  %v993_v35 = vadd.f32 %v991_v27, %v4691_v37 }
 0x47b   : > { %v1162_v47 = vmul.f32 %v1155_v34, %v1142_v8  ;;  %v1163_v4 = vmul.f32 %v1159_v20, %v1141_v2  ;;  %2535 = vrot.lane.b32.xlu1 %v4193_v13, %s6693_s12  ;;  %2533 = vrot.lane.b32.xlu0 %v4191_v12, %s6693_s12  ;;  %v6694_v23 = vrot.slane %v4456_v28, %v3884_v16  ;;  %v4856_v2 = vld [vmem:[#allocation8 + $0x23] ss:$8 sm:$0x3] }
 0x47c   : > { %v1054_v42 = vsel %vm1046_vm12, %v4087_v55, %v4089_v56  ;;  %v1642_v37 = vrot.slane %v4788_v31, %v3884_v16  ;;  %v4814_v51 = vadd.f32 %v1133_v33, %v1118_v53  ;;  %v6695_v52 = vrot.slane %v4501_v14, %v4412_v29 }
 0x47d   : > { %v1038_v46 = vmul.f32 %v6694_v23, %v1007_v41  ;;  %v1194_v28 = vsel %vm1187_vm15, %v4113_v62, %v4111_v61  ;;  %v4823_v34 = vadd.f32 %v1162_v47, %v993_v35  ;;  %v1165_v20 = vadd.f32 %v1163_v4, %v4715_v0  ;;  %v1186_v63 = vpop.permute.xlu1 %1185  ;;  %v1184_v55 = vpop.permute.xlu0 %1183  ;;  %v1291_v0 = vld [vmem:[#allocation6 + $0x13] ss:$8 sm:$0x3] }
 0x47e   : > { %v1180_v32 = vmul.f32 %v6695_v52, %v1147_v1  ;;  %v1188_v56 = vsel %vm1187_vm15, %v1184_v55, %v1186_v63  ;;  %v1189_v45 = vsel %vm1187_vm15, %v1186_v63, %v1184_v55  ;;  %v1249_v36 = vrot.slane %v1244_v25, %v3884_v16  ;;  %v6702_v55 = vld [vmem:[#allocation23_spill] sm:$0xff] }
 0x47f   : > { %v1253_v30 = vrot.slane %v1244_v25, %v4412_v29  ;;  %v1040_v38 = vadd.f32 %v1038_v46, %v4723_v24  ;;  %v1209_v27 = vmul.f32 %v1202_v48, %v1189_v45  ;;  %v1210_v41 = vmul.f32 %v1206_v43, %v1188_v56  ;;  %2582 = vrot.lane.b32.xlu1 %v4193_v13, %s6696_s9 }
 0x480   : > { %2580 = vrot.lane.b32.xlu0 %v4191_v12, %s6696_s9  ;;  %v6697_v17 = vrot.slane %v4463_v5, %v3884_v16  ;;  %v1101_v1 = vsel %vm1093_vm13, %v4095_v57, %v4097_v58  ;;  %v1646_v24 = vrot.slane %v4788_v31, %v4412_v29  ;;  %v4847_v53 = vadd.f32 %v1180_v32, %v1165_v20 }
 0x481   : > { %v6698_v54 = vrot.slane %v4503_v19, %v4412_v29  ;;  %v1241_v5 = vsel %vm1234_vm0, %v4125_v10, %v4123_v7  ;;  %v4858_v8 = vadd.f32 %v1209_v27, %v1040_v38  ;;  %v1212_v57 = vadd.f32 %v1210_v41, %v4747_v11  ;;  %v1233_v58 = vpop.permute.xlu1 %1232  ;;  %v1231_v48 = vpop.permute.xlu0 %1230  ;;  %v1338_v11 = vld [vmem:[#allocation6 + $0x14] ss:$8 sm:$0x3] }
 0x482   : > { %v1085_v33 = vmul.f32 %v6697_v17, %v1054_v42  ;;  %v1235_v43 = vsel %vm1234_vm0, %v1231_v48, %v1233_v58  ;;  %v1236_v35 = vsel %vm1234_vm0, %v1233_v58, %v1231_v48  ;;  %v1296_v47 = vrot.slane %v1291_v0, %v3884_v16  ;;  %v6707_v48 = vld [vmem:[#allocation24_spill] sm:$0xff] }
 0x483   : > { %v1227_v3 = vmul.f32 %v6698_v54, %v1194_v28  ;;  %v1300_v4 = vrot.slane %v1291_v0, %v4412_v29  ;;  %v1256_v23 = vmul.f32 %v1249_v36, %v1236_v35  ;;  %v1257_v46 = vmul.f32 %v1253_v30, %v1235_v43  ;;  %2629 = vrot.lane.b32.xlu1 %v4193_v13, %s6699_s18  ;;  %v6708_v43 = vld [vmem:[#allocation25_spill] sm:$0xff]  ;;  %v4924_v35 = vld [vmem:[#allocation8 + $0x24] ss:$8 sm:$0x3] }
 0x484   : > { %v1087_v25 = vadd.f32 %v1085_v33, %v4756_v40  ;;  %2627 = vrot.lane.b32.xlu0 %v4191_v12, %s6699_s18  ;;  %v6700_v42 = vrot.slane %v4492_v39, %v3884_v16  ;;  %v1148_v32 = vsel %vm1140_vm14, %v4103_v59, %v4105_v60  ;;  %v1689_v40 = vrot.slane %v4856_v2, %v3884_v16  ;;  %s3097_s18 = scalar_lea.sflag [#allocation5], %s3788_s10 }
 0x485   : > { %v4882_v28 = vadd.f32 %v1227_v3, %v1212_v57  ;;  %v6701_v20 = vrot.slane %v4512_v26, %v4412_v29  ;;  %v1288_v39 = vsel %vm1281_vm1, %v6702_v55, %v4135_v15  ;;  %v1259_v45 = vadd.f32 %v1257_v46, %v4779_v50  ;;  %v1280_v36 = vpop.permute.xlu1 %1279  ;;  %v1278_v59 = vpop.permute.xlu0 %1277  ;;  %v1385_v50 = vld [vmem:[#allocation6 + $0x15] ss:$8 sm:$0x3] }
 0x486   : > { %v1132_v52 = vmul.f32 %v6700_v42, %v1101_v1  ;;  %v4891_v56 = vadd.f32 %v1256_v23, %v1087_v25  ;;  %v1282_v60 = vsel %vm1281_vm1, %v1278_v59, %v1280_v36  ;;  %v1283_v30 = vsel %vm1281_vm1, %v1280_v36, %v1278_v59  ;;  %v6711_v36 = vld [vmem:[#allocation99_spill] sm:$0xff] }
 0x487   : > { %v1274_v63 = vmul.f32 %v6701_v20, %v1241_v5  ;;  %v1343_v38 = vrot.slane %v1338_v11, %v3884_v16  ;;  %v1347_v27 = vrot.slane %v1338_v11, %v4412_v29  ;;  %v1303_v0 = vmul.f32 %v1296_v47, %v1283_v30  ;;  %2676 = vrot.lane.b32.xlu1 %v4193_v13, %s6703_s28  ;;  %v6705_v5 = vld [vmem:[#allocation98_spill] sm:$0xff] }
 0x488   : > { %v1134_v41 = vadd.f32 %v1132_v52, %v4790_v9  ;;  %v1304_v17 = vmul.f32 %v1300_v4, %v1282_v60  ;;  %2674 = vrot.lane.b32.xlu0 %v4191_v12, %s6703_s28  ;;  %v6704_v33 = vrot.slane %v4501_v14, %v3884_v16  ;;  %v1195_v54 = vsel %vm1187_vm15, %v4111_v61, %v4113_v62  ;;  %v6713_v30 = vld [vmem:[#allocation26_spill] sm:$0xff]  ;;  %s3487_s28 = scalar_lea.vmem %s6332_s21, 1024 }
 0x489   : > { %v1693_v9 = vrot.slane %v4856_v2, %v4412_v29  ;;  %v4915_v3 = vadd.f32 %v1274_v63, %v1259_v45  ;;  %v6706_v57 = vrot.slane %v6705_v5, %v4412_v29  ;;  %v1335_v14 = vsel %vm1328_vm2, %v6708_v43, %v6707_v48  ;;  %v1327_v62 = vpop.permute.xlu1 %1326  ;;  %v1325_v4 = vpop.permute.xlu0 %1324  ;;  %p3488_p5 = scmp.ne.s32.totalorder %s6332_s21, %s3487_s28 }
 0x48a   : > { %v1179_v1 = vmul.f32 %v6704_v33, %v1148_v32  ;;  %v4926_v47 = vadd.f32 %v1303_v0, %v1134_v41  ;;  %v1306_v61 = vadd.f32 %v1304_v17, %v4814_v51  ;;  %v1329_v25 = vsel %vm1328_vm2, %v1325_v4, %v1327_v62  ;;  %v1432_v51 = vld [vmem:[#allocation6 + $0x16] ss:$8 sm:$0x3] }
 0x48b   : > { %v1321_v58 = vmul.f32 %v6706_v57, %v1288_v39  ;;  %v1330_v23 = vsel %vm1328_vm2, %v1327_v62, %v1325_v4  ;;  %v1390_v46 = vrot.slane %v1385_v50, %v3884_v16  ;;  %v1394_v11 = vrot.slane %v1385_v50, %v4412_v29  ;;  %2723 = vrot.lane.b32.xlu1 %v4193_v13, %s6709_s13  ;;  %v6717_v4 = vld [vmem:[#allocation100_spill] sm:$0xff]  ;;  %p3489_p7 = pnand %p3488_p5, %p6937_p2 }
 0x48c   : > { %v1181_v42 = vadd.f32 %v1179_v1, %v4823_v34  ;;  %v1350_v52 = vmul.f32 %v1343_v38, %v1330_v23  ;;  %v1351_v32 = vmul.f32 %v1347_v27, %v1329_v25  ;;  %2721 = vrot.lane.b32.xlu0 %v4191_v12, %s6709_s13  ;;  %v6710_v20 = vrot.slane %v4503_v19, %v3884_v16  ;;  %v6714_v38 = vld [vmem:[#allocation27_spill] sm:$0xff]  ;;  %s3612_s13 = smov [#allocation9]  }
 0x48d   : > { %v1242_v39 = vsel %vm1234_vm0, %v4123_v7, %v4125_v10  ;;  %v4950_v45 = vadd.f32 %v1321_v58, %v1306_v61  ;;  %v6712_v59 = vrot.slane %v6711_v36, %v4412_v29  ;;  %v1382_v19 = vsel %vm1375_vm3, %v6714_v38, %v6713_v30  ;;  %v1374_v0 = vpop.permute.xlu1 %1373  ;;  %v1372_v7 = vpop.permute.xlu0 %1371  ;;  %p3490_p12 = pneg %p3489_p7 }
 0x48e   : > { %v1226_v63 = vmul.f32 %v6710_v20, %v1195_v54  ;;  %v4959_v27 = vadd.f32 %v1350_v52, %v1181_v42  ;;  %v1353_v41 = vadd.f32 %v1351_v32, %v4847_v53  ;;  %v1376_v10 = vsel %vm1375_vm3, %v1372_v7, %v1374_v0  ;;  %v1479_v53 = vld [vmem:[#allocation6 + $0x17] ss:$8 sm:$0x3]  ;;  %v4992_v42 = vld [vmem:[#allocation8 + $0x25] ss:$8 sm:$0x3] }
 0x48f   : > { %v1368_v60 = vmul.f32 %v6712_v59, %v1335_v14  ;;  %v1377_v17 = vsel %vm1375_vm3, %v1374_v0, %v1372_v7  ;;  %v1437_v50 = vrot.slane %v1432_v51, %v3884_v16  ;;  %v1441_v33 = vrot.slane %v1432_v51, %v4412_v29  ;;  %2770 = vrot.lane.b32.xlu1 %v4193_v13, %s6715_s30 }
 0x490   : > { %v1228_v1 = vadd.f32 %v1226_v63, %v4858_v8  ;;  %v1397_v54 = vmul.f32 %v1390_v46, %v1377_v17  ;;  %v1398_v57 = vmul.f32 %v1394_v11, %v1376_v10  ;;  %2768 = vrot.lane.b32.xlu0 %v4191_v12, %s6715_s30  ;;  %v6716_v58 = vrot.slane %v4512_v26, %v3884_v16  ;;  %v6719_v46 = vld [vmem:[#allocation28_spill] sm:$0xff]  ;;  %v6720_v11 = vld [vmem:[#allocation29_spill] sm:$0xff]  ;;  %s3491_s30 = sshll.u32 %s3612_s13, 4  ;;  %s3492_s30 = int_to_ptr.vmem [resolvable:$false] %s3491_s30 }
 0x491   : > { %v1289_v61 = vsel %vm1281_vm1, %v4135_v15, %v6702_v55  ;;  %v1740_v8 = vrot.slane %v4924_v35, %v4412_v29  ;;  %v4983_v62 = vadd.f32 %v1368_v60, %v1353_v41  ;;  %v6718_v25 = vrot.slane %v6717_v4, %v4412_v29  ;;  %v1421_v55 = vpop.permute.xlu1 %1420  ;;  %v1419_v32 = vpop.permute.xlu0 %1418  ;;  %v6723_v17 = vld [vmem:[#allocation101_spill] sm:$0xff]  ;;  %p3494_p13 = scmp.lt.s32.totalorder %s6332_s21, %s3492_s30 }
 0x492   : > { %v1273_v14 = vmul.f32 %v6716_v58, %v1242_v39  ;;  %v1429_v26 = vsel %vm1422_vm4, %v6720_v11, %v6719_v46  ;;  %v4994_v52 = vadd.f32 %v1397_v54, %v1228_v1  ;;  %v1400_v15 = vadd.f32 %v1398_v57, %v4882_v28  ;;  %v1526_v28 = vld [vmem:[#allocation6 + $0x20] ss:$8 sm:$0x3]  ;;  %v6726_v54 = vld [vmem:[#allocation31_spill] sm:$0xff] }
 0x493   : > { %v1415_v23 = vmul.f32 %v6718_v25, %v1382_v19  ;;  %v1423_v51 = vsel %vm1422_vm4, %v1419_v32, %v1421_v55  ;;  %v1424_v20 = vsel %vm1422_vm4, %v1421_v55, %v1419_v32  ;;  %v1484_v63 = vrot.slane %v1479_v53, %v3884_v16  ;;  %2817 = vrot.lane.b32.xlu1 %v4193_v13, %s6721_s15  ;;  %v6725_v1 = vld [vmem:[#allocation30_spill] sm:$0xff] }
 0x494   : > { %v1488_v39 = vrot.slane %v1479_v53, %v4412_v29  ;;  %v1275_v59 = vadd.f32 %v1273_v14, %v4891_v56  ;;  %v1444_v60 = vmul.f32 %v1437_v50, %v1424_v20  ;;  %v1445_v19 = vmul.f32 %v1441_v33, %v1423_v51  ;;  %2815 = vrot.lane.b32.xlu0 %v4191_v12, %s6721_s15  ;;  %s3493_s15 = scalar_lea.vmem %s3492_s30, 2048 }
 0x495   : > { %v6722_v41 = vrot.slane %v6705_v5, %v3884_v16  ;;  %v1336_v7 = vsel %vm1328_vm2, %v6707_v48, %v6708_v43  ;;  %v1783_v56 = vrot.slane %v4992_v42, %v3884_v16  ;;  %v5018_v10 = vadd.f32 %v1415_v23, %v1400_v15  ;;  %v1468_v58 = vpop.permute.xlu1 %1467  ;;  %v1466_v48 = vpop.permute.xlu0 %1465  ;;  %p3495_p0 = scmp.lt.s32.totalorder %s3493_s15, %s3487_s28 }
 0x496   : > { %v6724_v50 = vrot.slane %v6723_v17, %v4412_v29  ;;  %v1476_v5 = vsel %vm1469_vm5, %v6726_v54, %v6725_v1  ;;  %v5027_v57 = vadd.f32 %v1444_v60, %v1275_v59  ;;  %v1447_v53 = vadd.f32 %v1445_v19, %v4915_v3  ;;  %v1573_v3 = vld [vmem:[#allocation6 + $0x21] ss:$8 sm:$0x3]  ;;  %v6730_v59 = vld [vmem:[#allocation32_spill] sm:$0xff] }
 0x497   : > { %v1320_v0 = vmul.f32 %v6722_v41, %v1289_v61  ;;  %v1470_v43 = vsel %vm1469_vm5, %v1466_v48, %v1468_v58  ;;  %v1471_v14 = vsel %vm1469_vm5, %v1468_v58, %v1466_v48  ;;  %v1531_v61 = vrot.slane %v1526_v28, %v3884_v16  ;;  %2864 = vrot.lane.b32.xlu1 %v4193_v13, %s6727_s17  ;;  %v6731_v60 = vld [vmem:[#allocation33_spill] sm:$0xff]  ;;  %v5060_v19 = vld [vmem:[#allocation8 + $0x26] ss:$8 sm:$0x3]  ;;  %p3496_p10 = por %p3495_p0, %p3494_p13 }
 0x498   : > { %v1462_v33 = vmul.f32 %v6724_v50, %v1429_v26  ;;  %v1535_v25 = vrot.slane %v1526_v28, %v4412_v29  ;;  %v1491_v26 = vmul.f32 %v1484_v63, %v1471_v14  ;;  %v1492_v15 = vmul.f32 %v1488_v39, %v1470_v43  ;;  %2862 = vrot.lane.b32.xlu0 %v4191_v12, %s6727_s17 }
 0x499   : > { %v1322_v23 = vadd.f32 %v1320_v0, %v4926_v47  ;;  %v6728_v55 = vrot.slane %v6711_v36, %v3884_v16  ;;  %v1383_v51 = vsel %vm1375_vm3, %v6713_v30, %v6714_v38  ;;  %v1787_v47 = vrot.slane %v4992_v42, %v4412_v29  ;;  %v1515_v38 = vpop.permute.xlu1 %1514  ;;  %v1513_v41 = vpop.permute.xlu0 %1512  ;;  %p3497_p3 = pnand %p3496_p10, %p3490_p12 }
 0x49a   : > { %v5051_v20 = vadd.f32 %v1462_v33, %v1447_v53  ;;  %v6729_v63 = vrot.slane %v4583_v6, %v4412_v29  ;;  %v1523_v36 = vsel %vm1516_vm6, %v6731_v60, %v6730_v59  ;;  %v1494_v30 = vadd.f32 %v1492_v15, %v4950_v45  ;;  %v1620_v45 = vld [vmem:[#allocation6 + $0x22] ss:$8 sm:$0x3]  ;;  %v6735_v15 = vld [vmem:[#allocation35_spill] sm:$0xff] }
 0x49b   : > { %v1367_v32 = vmul.f32 %v6728_v55, %v1336_v7  ;;  %v5062_v28 = vadd.f32 %v1491_v26, %v1322_v23  ;;  %v1517_v0 = vsel %vm1516_vm6, %v1513_v41, %v1515_v38  ;;  %v1518_v7 = vsel %vm1516_vm6, %v1515_v38, %v1513_v41  ;;  %2911 = vrot.lane.b32.xlu1 %v4193_v13, %s3609_s8  ;;  %v6734_v26 = vld [vmem:[#allocation34_spill] sm:$0xff] }
 0x49c   : > { %v1509_v39 = vmul.f32 %v6729_v63, %v1476_v5  ;;  %v1578_v50 = vrot.slane %v1573_v3, %v3884_v16  ;;  %v1582_v33 = vrot.slane %v1573_v3, %v4412_v29  ;;  %v1538_v53 = vmul.f32 %v1531_v61, %v1518_v7  ;;  %2909 = vrot.lane.b32.xlu0 %v4191_v12, %s3609_s8  ;;  %s3611_s8 = smov 77  }
 0x49d   : > { %v1369_v5 = vadd.f32 %v1367_v32, %v4959_v27  ;;  %v1539_v58 = vmul.f32 %v1535_v25, %v1517_v0  ;;  %v6732_v48 = vrot.slane %v6717_v4, %v3884_v16  ;;  %v1430_v14 = vsel %vm1422_vm4, %v6719_v46, %v6720_v11  ;;  %v1562_v32 = vpop.permute.xlu1 %1561  ;;  %v1560_v46 = vpop.permute.xlu0 %1559 }
 0x49e   : > { %v1830_v27 = vrot.slane %v5060_v19, %v3884_v16  ;;  %v5086_v61 = vadd.f32 %v1509_v39, %v1494_v30  ;;  %v6733_v25 = vrot.slane %v4624_v21, %v4412_v29  ;;  %v1570_v4 = vsel %vm1563_vm7, %v6735_v15, %v6734_v26 }
 0x49f   : > { %v1414_v43 = vmul.f32 %v6732_v48, %v1383_v51  ;;  %v5095_v3 = vadd.f32 %v1538_v53, %v1369_v5  ;;  %v1541_v55 = vadd.f32 %v1539_v58, %v4983_v62  ;;  %v1564_v11 = vsel %vm1563_vm7, %v1560_v46, %v1562_v32  ;;  %2958 = vrot.lane.b32.xlu1 %v4193_v13, %s3610_s16  ;;  %v1667_v62 = vld [vmem:[#allocation6 + $0x23] ss:$8 sm:$0x3]  ;;  %v6737_v5 = vld [vmem:[#allocation36_spill] sm:$0xff] }
 0x4a0   : > { %v1556_v23 = vmul.f32 %v6733_v25, %v1523_v36  ;;  %v1565_v51 = vsel %vm1563_vm7, %v1562_v32, %v1560_v46  ;;  %v1625_v63 = vrot.slane %v1620_v45, %v3884_v16  ;;  %v1629_v39 = vrot.slane %v1620_v45, %v4412_v29  ;;  %2956 = vrot.lane.b32.xlu0 %v4191_v12, %s3610_s16  ;;  %v6738_v53 = vld [vmem:[#allocation37_spill] sm:$0xff]  ;;  %v5128_v58 = vld [vmem:[#allocation8 + $0x27] ss:$8 sm:$0x3]  ;;  %s3056_s16 = sld [smem:[#allocation2]] }
 0x4a1   : > { %v1416_v36 = vadd.f32 %v1414_v43, %v4994_v52  ;;  %v1585_v30 = vmul.f32 %v1578_v50, %v1565_v51  ;;  %v1586_v38 = vmul.f32 %v1582_v33, %v1564_v11  ;;  %v6736_v41 = vrot.slane %v6723_v17, %v3884_v16  ;;  %v1607_v48 = vpop.permute.xlu0 %1606 }
 0x4a2   : > { %v1477_v7 = vsel %vm1469_vm5, %v6725_v1, %v6726_v54  ;;  %v1834_v52 = vrot.slane %v5060_v19, %v4412_v29  ;;  %v5119_v50 = vadd.f32 %v1556_v23, %v1541_v55  ;;  %v1603_v33 = vmul.f32 %v1599_v49, %v1570_v4  ;;  %v1609_v54 = vpop.permute.xlu1 %1608 }
 0x4a3   : > { %v1461_v0 = vmul.f32 %v6736_v41, %v1430_v14  ;;  %v1617_v17 = vsel %vm1610_vm8, %v6738_v53, %v6737_v5  ;;  %v5130_v45 = vadd.f32 %v1585_v30, %v1416_v36  ;;  %v1588_v1 = vadd.f32 %v1586_v38, %v5018_v10  ;;  %3005 = vrot.lane.b32.xlu1 %v4193_v13, %s3611_s8  ;;  %v1714_v10 = vld [vmem:[#allocation6 + $0x24] ss:$8 sm:$0x3] }
 0x4a4   : > { %v1611_v43 = vsel %vm1610_vm8, %v1607_v48, %v1609_v54  ;;  %v1612_v14 = vsel %vm1610_vm8, %v1609_v54, %v1607_v48  ;;  %v1672_v49 = vrot.slane %v1667_v62, %v3884_v16  ;;  %v1676_v25 = vrot.slane %v1667_v62, %v4412_v29  ;;  %3003 = vrot.lane.b32.xlu0 %v4191_v12, %s3611_s8  ;;  %v6740_v12 = vld [vmem:[#allocation38_spill] sm:$0xff] }
 0x4a5   : > { %v1463_v23 = vadd.f32 %v1461_v0, %v5027_v57  ;;  %v1632_v4 = vmul.f32 %v1625_v63, %v1612_v14  ;;  %v1633_v55 = vmul.f32 %v1629_v39, %v1611_v43  ;;  %v6739_v32 = vrot.slane %v4583_v6, %v3884_v16  ;;  %v6741_v63 = vld [vmem:[#allocation39_spill] sm:$0xff] }
 0x4a6   : > { %v1524_v11 = vsel %vm1516_vm6, %v6730_v59, %v6731_v60  ;;  %v1877_v57 = vrot.slane %v5128_v58, %v3884_v16  ;;  %v5152_v51 = vadd.f32 %v1603_v33, %v1588_v1  ;;  %v1650_v13 = vmul.f32 %v1646_v24, %v1617_v17  ;;  %v1656_v30 = vpop.permute.xlu1 %1655  ;;  %v1654_v59 = vpop.permute.xlu0 %1653  ;;  %v6742_v33 = vld [vmem:[#allocation22_spill] sm:$0xff] }
 0x4a7   : > { %v1508_v46 = vmul.f32 %v6739_v32, %v1477_v7  ;;  %v1664_v6 = vsel %vm1657_vm9, %v6741_v63, %v6740_v12  ;;  %v5161_v39 = vadd.f32 %v1632_v4, %v1463_v23  ;;  %v1635_v36 = vadd.f32 %v1633_v55, %v5051_v20  ;;  %3012 = vrot.lane.b32.xlu1 %v6742_v33, %s3611_s8  ;;  %v6743_v20 = vld [vmem:[#allocation21_spill] sm:$0xff] }
 0x4a8   : > { %v1658_v60 = vsel %vm1657_vm9, %v1654_v59, %v1656_v30  ;;  %v1659_v38 = vsel %vm1657_vm9, %v1656_v30, %v1654_v59  ;;  %v1719_v62 = vrot.slane %v1714_v10, %v3884_v16  ;;  %v1723_v24 = vrot.slane %v1714_v10, %v4412_v29  ;;  %3010 = vrot.lane.b32.xlu0 %v6743_v20, %s3611_s8  ;;  %v1761_v17 = vld [vmem:[#allocation6 + $0x25] ss:$8 sm:$0x3]  ;;  %v5192_v23 = vld [vmem:[#allocation8 + $0x31] ss:$8 sm:$0x3] }
 0x4a9   : > { %vm1798_vm12 = vcmp.lt.s32.totalorder %v3860_v22, 2  ;;  %v1510_v41 = vadd.f32 %v1508_v46, %v5062_v28  ;;  %v1679_v0 = vmul.f32 %v1672_v49, %v1659_v38  ;;  %v1680_v7 = vmul.f32 %v1676_v25, %v1658_v60  ;;  %v6745_v49 = vld [vmem:[#allocation40_spill] sm:$0xff]  ;;  %v6746_v25 = vld [vmem:[#allocation41_spill] sm:$0xff] }
 0x4aa   : > { %v6744_v1 = vrot.slane %v4624_v21, %v3884_v16  ;;  %v1571_v48 = vsel %vm1563_vm7, %v6734_v26, %v6735_v15  ;;  %v1881_v43 = vrot.slane %v5128_v58, %v4412_v29  ;;  %v5183_v28 = vadd.f32 %v1650_v13, %v1635_v36  ;;  %v1703_v15 = vpop.permute.xlu1 %1702  ;;  %v1701_v55 = vpop.permute.xlu0 %1700  ;;  %v1808_v36 = vld [vmem:[#allocation6 + $0x26] ss:$8 sm:$0x3]  ;;  %v5510_v60 = vld [vmem:[#allocation8 + $0x55] ss:$8 sm:$0x3] }
 0x4ab   : > { %v1697_v14 = vmul.f32 %v1693_v9, %v1664_v6  ;;  %v1711_v21 = vsel %vm1704_vm10, %v6746_v25, %v6745_v49  ;;  %v5194_v4 = vadd.f32 %v1679_v0, %v1510_v41  ;;  %v1682_v26 = vadd.f32 %v1680_v7, %v5086_v61  ;;  %6772 = vst [vmem:[#allocation100_spill] sm:$0xff] %v5510_v60 }
 0x4ac   : > { %v1555_v54 = vmul.f32 %v6744_v1, %v1524_v11  ;;  %vm1845_vm13 = vcmp.lt.s32.totalorder %v3860_v22, 1  ;;  %v1705_v10 = vsel %vm1704_vm10, %v1701_v55, %v1703_v15  ;;  %v1706_v9 = vsel %vm1704_vm10, %v1703_v15, %v1701_v55  ;;  %v6750_v55 = vld [vmem:[#allocation45_spill] sm:$0xff] }
 0x4ad   : > { %v1766_v32 = vrot.slane %v1761_v17, %v3884_v16  ;;  %v1770_v46 = vrot.slane %v1761_v17, %v4412_v29  ;;  %v1726_v13 = vmul.f32 %v1719_v62, %v1706_v9  ;;  %v1727_v6 = vmul.f32 %v1723_v24, %v1705_v10  ;;  %v6747_v62 = vld [vmem:[#allocation42_spill] sm:$0xff]  ;;  %v6748_v24 = vld [vmem:[#allocation43_spill] sm:$0xff] }
 0x4ae   : > { %v1557_v11 = vadd.f32 %v1555_v54, %v5095_v3  ;;  %v5205_v61 = vadd.f32 %v1697_v14, %v1682_v26  ;;  %v1602_v30 = vmul.f32 %v1595_v44, %v1571_v48  ;;  %v1618_v59 = vsel %vm1610_vm8, %v6737_v5, %v6738_v53  ;;  %v5225_v44 = vld [vmem:[#allocation8 + $0x32] ss:$8 sm:$0x3]  ;;  %v1750_v53 = vpop.permute.xlu1 %1749  ;;  %v1748_v0 = vpop.permute.xlu0 %1747  ;;  %v5508_v15 = vld [vmem:[#allocation8 + $0x54] ss:$8 sm:$0x3] }
 0x4af   : > { %v1962_v3 = vrot.slane %v5192_v23, %v4412_v29  ;;  %v1744_v38 = vmul.f32 %v1740_v8, %v1711_v21  ;;  %v1758_v18 = vsel %vm1751_vm11, %v6748_v24, %v6747_v62  ;;  %v1729_v5 = vadd.f32 %v1727_v6, %v5119_v50  ;;  %v1855_v50 = vld [vmem:[#allocation6 + $0x27] ss:$8 sm:$0x3] }
 0x4b0   : > { %v5227_v41 = vadd.f32 %v1726_v13, %v1557_v11  ;;  %vm1926_vm14 = vcmp.lt.s32.totalorder %v3860_v22, 127  ;;  %v1752_v7 = vsel %vm1751_vm11, %v1748_v0, %v1750_v53  ;;  %v1753_v8 = vsel %vm1751_vm11, %v1750_v53, %v1748_v0  ;;  %v6752_v53 = vld [vmem:[#allocation96_spill] sm:$0xff] }
 0x4b1   : > { %v1813_v33 = vrot.slane %v1808_v36, %v3884_v16  ;;  %v1817_v20 = vrot.slane %v1808_v36, %v4412_v29  ;;  %v1746_v17 = vadd.f32 %v1744_v38, %v1729_v5  ;;  %v1604_v1 = vadd.f32 %v1602_v30, %v5130_v45  ;;  %v6749_v45 = vld [vmem:[#allocation44_spill] sm:$0xff] }
 0x4b2   : > { %v1773_v54 = vmul.f32 %v1766_v32, %v1753_v8  ;;  %v1774_v48 = vmul.f32 %v1770_v46, %v1752_v7  ;;  %v1649_v14 = vmul.f32 %v1642_v37, %v1618_v59  ;;  %v1665_v21 = vsel %vm1657_vm9, %v6740_v12, %v6741_v63  ;;  %v1797_v37 = vpop.permute.xlu1 %1796  ;;  %v1795_v32 = vpop.permute.xlu0 %1794  ;;  %v6751_v46 = vld [vmem:[#allocation94_spill] sm:$0xff]  ;;  %v1936_v59 = vld [vmem:[#allocation6 + $0x31] ss:$8 sm:$0x3] }
 0x4b3   : > { %v1791_v26 = vmul.f32 %v1787_v47, %v1758_v18  ;;  %v1805_v10 = vsel %vm1798_vm12, %v6750_v55, %v6749_v45  ;;  %v1904_v11 = vadd.f32 %v6751_v46, %v1746_v17  ;;  %vm1973_vm15 = vcmp.lt.s32.totalorder %v3860_v22, 126  ;;  %v6753_v7 = vld [vmem:[#allocation46_spill] sm:$0xff]  ;;  %v6754_v8 = vld [vmem:[#allocation47_spill] sm:$0xff]  ;;  %v6756_v46 = vld [vmem:[#allocation48_spill] sm:$0xff] }
 0x4b4   : > { %v1775_v9 = vadd.f32 %v1773_v54, %v1604_v1  ;;  %v1776_v31 = vadd.f32 %v1774_v48, %v5152_v51  ;;  %v1799_v47 = vsel %vm1798_vm12, %v1795_v32, %v1797_v37  ;;  %v1800_v12 = vsel %vm1798_vm12, %v1797_v37, %v1795_v32  ;;  %v6755_v32 = vld [vmem:[#allocation49_spill] sm:$0xff] }
 0x4b5   : > { %v1860_v63 = vrot.slane %v1855_v50, %v3884_v16  ;;  %v1864_v13 = vrot.slane %v1855_v50, %v4412_v29  ;;  %v1651_v6 = vadd.f32 %v1649_v14, %v5161_v39  ;;  %v1820_v36 = vmul.f32 %v1813_v33, %v1800_v12 }
 0x4b6   : > { %v1821_v51 = vmul.f32 %v1817_v20, %v1799_v47  ;;  %v1793_v30 = vadd.f32 %v1791_v26, %v1776_v31  ;;  %v1696_v38 = vmul.f32 %v1689_v40, %v1665_v21  ;;  %v1759_v18 = vsel %vm1751_vm11, %v6747_v62, %v6748_v24  ;;  %v5283_v40 = vld [vmem:[#allocation8 + $0x33] ss:$8 sm:$0x3]  ;;  %v1844_v24 = vpop.permute.xlu1 %1843  ;;  %v1842_v20 = vpop.permute.xlu0 %1841 }
 0x4b7   : > { %v2009_v5 = vrot.slane %v5225_v44, %v4412_v29  ;;  %v5274_v0 = vadd.f32 %v6752_v53, %v1904_v11  ;;  %v1838_v39 = vmul.f32 %v1834_v52, %v1805_v10  ;;  %v1852_v2 = vsel %vm1845_vm13, %v6754_v8, %v6753_v7 }
 0x4b8   : > { %v1822_v33 = vadd.f32 %v1820_v36, %v1651_v6  ;;  %v1823_v62 = vadd.f32 %v1821_v51, %v5183_v28  ;;  %v1846_v17 = vsel %vm1845_vm13, %v1842_v20, %v1844_v24  ;;  %v1847_v1 = vsel %vm1845_vm13, %v1844_v24, %v1842_v20  ;;  %v1983_v28 = vld [vmem:[#allocation6 + $0x32] ss:$8 sm:$0x3]  ;;  %v5342_v24 = vld [vmem:[#allocation8 + $0x36] ss:$8 sm:$0x3] }
 0x4b9   : > { %v1941_v52 = vrot.slane %v1936_v59, %v3884_v16  ;;  %v1945_v54 = vrot.slane %v1936_v59, %v4412_v29  ;;  %vm2020_vm0 = vcmp.lt.s32.totalorder %v3860_v22, 125  ;;  %v1698_v48 = vadd.f32 %v1696_v38, %v5194_v4  ;;  %v2030_v38 = vld [vmem:[#allocation6 + $0x33] ss:$8 sm:$0x3] }
 0x4ba   : > { %v1867_v50 = vmul.f32 %v1860_v63, %v1847_v1  ;;  %v1868_v14 = vmul.f32 %v1864_v13, %v1846_v17  ;;  %v1840_v21 = vadd.f32 %v1838_v39, %v1823_v62  ;;  %v1790_v26 = vmul.f32 %v1783_v56, %v1759_v18  ;;  %v5312_v56 = vld [vmem:[#allocation8 + $0x34] ss:$8 sm:$0x3]  ;;  %v1923_v47 = vpop.permute.xlu0 %1922 }
 0x4bb   : > { %v1806_v10 = vsel %vm1798_vm12, %v6749_v45, %v6750_v55  ;;  %v2056_v37 = vrot.slane %v5283_v40, %v4412_v29  ;;  %v1885_v4 = vmul.f32 %v1881_v43, %v1852_v2  ;;  %v1934_v42 = vsel %vm1926_vm14, %v6756_v46, %v6755_v32  ;;  %v1925_v55 = vpop.permute.xlu1 %1924  ;;  %v6757_v2 = vld [vmem:[#allocation51_spill] sm:$0xff]  ;;  %v6758_v62 = vld [vmem:[#allocation50_spill] sm:$0xff] }
 0x4bc   : > { %v1869_v11 = vadd.f32 %v1867_v50, %v1698_v48  ;;  %v1870_v45 = vadd.f32 %v1868_v14, %v5205_v61  ;;  %v1927_v12 = vsel %vm1926_vm14, %v1923_v47, %v1925_v55  ;;  %v1928_v63 = vsel %vm1926_vm14, %v1925_v55, %v1923_v47  ;;  %v5371_v55 = vld [vmem:[#allocation8 + $0x40] ss:$8 sm:$0x3] }
 0x4bd   : > { %v1988_v43 = vrot.slane %v1983_v28, %v3884_v16  ;;  %v1992_v13 = vrot.slane %v1983_v28, %v4412_v29  ;;  %vm2067_vm1 = vcmp.lt.s32.totalorder %v3860_v22, 115  ;;  %v1792_v6 = vadd.f32 %v1790_v26, %v1775_v9  ;;  %v5352_v28 = vld [vmem:[#allocation6 + $0x34] ss:$8 sm:$0x3] }
 0x4be   : > { %v1948_v36 = vmul.f32 %v1941_v52, %v1927_v12  ;;  %v1949_v51 = vmul.f32 %v1945_v54, %v1928_v63  ;;  %v1887_v59 = vadd.f32 %v1885_v4, %v1870_v45  ;;  %v1837_v61 = vmul.f32 %v1830_v27, %v1806_v10  ;;  %v5340_v27 = vld [vmem:[#allocation8 + $0x35] ss:$8 sm:$0x3]  ;;  %v1970_v17 = vpop.permute.xlu0 %1969  ;;  %v5369_v45 = vld [vmem:[#allocation8 + $0x37] ss:$8 sm:$0x3] }
 0x4bf   : > { %v1853_v18 = vsel %vm1845_vm13, %v6753_v7, %v6754_v8  ;;  %v2103_v39 = vrot.slane %v5312_v56, %v4412_v29  ;;  %v1966_v9 = vmul.f32 %v1962_v3, %v1934_v42  ;;  %v1981_v19 = vsel %vm1973_vm15, %v6758_v62, %v6757_v2  ;;  %v1972_v20 = vpop.permute.xlu1 %1971  ;;  %v6770_v4 = vld [vmem:[#allocation57_spill] sm:$0xff] }
 0x4c0   : > { %v5344_v7 = vadd.f32 %v1948_v36, %v1792_v6  ;;  %v1951_v8 = vadd.f32 %v1949_v51, %v1793_v30  ;;  %v1974_v1 = vsel %vm1973_vm15, %v1970_v17, %v1972_v20  ;;  %v1975_v3 = vsel %vm1973_vm15, %v1972_v20, %v1970_v17  ;;  %v6762_v6 = vld [vmem:[#allocation52_spill] sm:$0xff] }
 0x4c1   : > { %v2035_v52 = vrot.slane %v2030_v38, %v3884_v16  ;;  %v2039_v54 = vrot.slane %v2030_v38, %v4412_v29  ;;  %v1839_v48 = vadd.f32 %v1837_v61, %v1822_v33  ;;  %v1995_v50 = vmul.f32 %v1988_v43, %v1974_v1  ;;  %v5386_v51 = vld [vmem:[#allocation8 + $0x41] ss:$8 sm:$0x3]  ;;  %v5398_v17 = vld [vmem:[#allocation8 + $0x42] ss:$8 sm:$0x3] }
 0x4c2   : > { %6759 = vst [vmem:[#allocation23_spill] sm:$0xff] %v5344_v7  ;;  %v1996_v14 = vmul.f32 %v1992_v13, %v1975_v3  ;;  %v5354_v26 = vadd.f32 %v1966_v9, %v1951_v8  ;;  %vm2114_vm2 = vcmp.lt.s32.totalorder %v3860_v22, 114  ;;  %v2150_v10 = vrot.slane %v5340_v27, %v4412_v29  ;;  %v2017_v43 = vpop.permute.xlu0 %2016  ;;  %v6761_v13 = vld [vmem:[#allocation53_spill] sm:$0xff]  ;;  %v5400_v1 = vld [vmem:[#allocation6 + $0x35] ss:$8 sm:$0x3] }
 0x4c3   : > { %v1884_v33 = vmul.f32 %v1877_v57, %v1853_v18  ;;  %v2013_v42 = vmul.f32 %v2009_v5, %v1981_v19  ;;  %v5373_v47 = vadd.f32 %v1995_v50, %v1839_v48  ;;  %v2019_v63 = vpop.permute.xlu1 %2018  ;;  %v2028_v36 = vsel %vm2020_vm0, %v6762_v6, %v6761_v13  ;;  %v5448_v19 = vld [vmem:[#allocation6 + $0x36] ss:$8 sm:$0x3]  ;;  %v5483_v3 = vld [vmem:[#allocation8 + $0x52] ss:$8 sm:$0x3] }
 0x4c4   : > { %v1998_v12 = vadd.f32 %v1996_v14, %v1840_v21  ;;  %v2021_v58 = vsel %vm2020_vm0, %v2017_v43, %v2019_v63  ;;  %v2022_v57 = vsel %vm2020_vm0, %v2019_v63, %v2017_v43  ;;  %v2086_v5 = vrot.slane %v5352_v28, %v4412_v29  ;;  %v5459_v43 = vld [vmem:[#allocation8 + $0x50] ss:$8 sm:$0x3]  ;;  %v6771_v30 = vld [vmem:[#allocation56_spill] sm:$0xff]  ;;  %v6775_v9 = vld [vmem:[#allocation59_spill] sm:$0xff] }
 0x4c5   : > { %6760 = vst [vmem:[#allocation98_spill] sm:$0xff] %v5373_v47  ;;  %vm2161_vm3 = vcmp.lt.s32.totalorder %v3860_v22, 113  ;;  %v1886_v21 = vadd.f32 %v1884_v33, %v1869_v11  ;;  %v2042_v38 = vmul.f32 %v2035_v52, %v2021_v58  ;;  %v2043_v61 = vmul.f32 %v2039_v54, %v2022_v57  ;;  %v5407_v52 = vld [vmem:[#allocation8 + $0x43] ss:$8 sm:$0x3]  ;;  %v6776_v7 = vld [vmem:[#allocation58_spill] sm:$0xff] }
 0x4c6   : > { %v5388_v18 = vadd.f32 %v2013_v42, %v1998_v12  ;;  %v2060_v11 = vmul.f32 %v2056_v37, %v2028_v36  ;;  %v5409_v54 = vld [vmem:[#allocation8 + $0x44] ss:$8 sm:$0x3]  ;;  %v5415_v33 = vpop.permute.xlu0 %2063  ;;  %v6767_v12 = vld [vmem:[#allocation54_spill] sm:$0xff]  ;;  %vm2208_vm4 = vcmp.lt.s32.totalorder %v3860_v22, 112  ;;  %vm6552_vm5 = vcmp.lt.s32.totalorder %v3860_v22, 111 }
 0x4c7   : > { %v5411_v48 = vadd.f32 %v2042_v38, %v1886_v21  ;;  %v2045_v50 = vadd.f32 %v2043_v61, %v1887_v59  ;;  %v5413_v14 = vpop.permute.xlu1 %2065  ;;  %6765 = vst [vmem:[#allocation99_spill] sm:$0xff] %v5415_v33  ;;  %v6766_v42 = vld [vmem:[#allocation55_spill] sm:$0xff]  ;;  %v2133_v38 = vrot.slane %v5400_v1, %v4412_v29  ;;  %v5497_v8 = vld [vmem:[#allocation8 + $0x53] ss:$8 sm:$0x3]  ;;  %vm6549_vm6 = vcmp.lt.s32.totalorder %v3860_v22, 110 }
 0x4c8   : > { %6764 = vst [vmem:[#allocation25_spill] sm:$0xff] %v5413_v14  ;;  %v2075_v63 = vsel %vm2067_vm1, %v6767_v12, %v6766_v42  ;;  %v5425_v36 = vld [vmem:[#allocation8 + $0x45] ss:$8 sm:$0x3]  ;;  %v2069_v59 = vsel %vm2067_vm1, %v5413_v14, %v5415_v33  ;;  %vm6553_vm7 = vcmp.lt.s32.totalorder %v3860_v22, 109  ;;  %vm6554_vm8 = vcmp.lt.s32.totalorder %v3860_v22, 99 }
 0x4c9   : > { %6763 = vst [vmem:[#allocation24_spill] sm:$0xff] %v5411_v48  ;;  %v5434_v57 = vld [vmem:[#allocation8 + $0x46] ss:$8 sm:$0x3]  ;;  %v2090_v21 = vmul.f32 %v2086_v5, %v2069_v59  ;;  %v5438_v61 = vadd.f32 %v2060_v11, %v2045_v50  ;;  %v2107_v5 = vmul.f32 %v2103_v39, %v2075_v63  ;;  %v2122_v39 = vsel %vm2114_vm2, %v6771_v30, %v6770_v4 }
 0x4ca   : > { %v5457_v59 = vld [vmem:[#allocation8 + $0x47] ss:$8 sm:$0x3]  ;;  %v5464_v58 = vpop.permute.xlu0 %2110  ;;  %v5474_v11 = vld [vmem:[#allocation8 + $0x51] ss:$8 sm:$0x3]  ;;  %v2180_v63 = vrot.slane %v5448_v19, %v4412_v29 }
 0x4cb   : > { %v2092_v20 = vadd.f32 %v2090_v21, %v5274_v0  ;;  %v5462_v37 = vpop.permute.xlu1 %2112  ;;  %6769 = vst [vmem:[#allocation27_spill] sm:$0xff] %v5464_v58  ;;  %v6781_v33 = vld [vmem:[#allocation60_spill] sm:$0xff]  ;;  %vm2443_vm9 = vcmp.lt.s32.totalorder %v3860_v22, 98  ;;  %vm2537_vm11 = vcmp.lt.s32.totalorder %v3860_v22, 96  ;;  %vm2584_vm12 = vcmp.lt.s32.totalorder %v3860_v22, 95 }
 0x4cc   : > { %6768 = vst [vmem:[#allocation26_spill] sm:$0xff] %v5462_v37  ;;  %v2116_v0 = vsel %vm2114_vm2, %v5462_v37, %v5464_v58  ;;  %vm2631_vm13 = vcmp.lt.s32.totalorder %v3860_v22, 94 }
 0x4cd   : > { %v2137_v53 = vmul.f32 %v2133_v38, %v2116_v0  ;;  %v5487_v31 = vadd.f32 %v2107_v5, %v2092_v20  ;;  %v5499_v38 = vld [vmem:[#allocation6 + $0x37] ss:$8 sm:$0x3]  ;;  %v2154_v20 = vmul.f32 %v2150_v10, %v2122_v39  ;;  %v2169_v10 = vsel %vm2161_vm3, %v6776_v7, %v6775_v9  ;;  %v5532_v5 = vld [vmem:[#allocation8 + $0x56] ss:$8 sm:$0x3] }
 0x4ce   : > { %v5515_v34 = vpop.permute.xlu0 %2157  ;;  %v2227_v47 = vrot.slane %v5499_v38, %v4412_v29  ;;  %v5558_v0 = vld [vmem:[#allocation8 + $0x57] ss:$8 sm:$0x3] }
 0x4cf   : > { %v2139_v21 = vadd.f32 %v2137_v53, %v5354_v26  ;;  %v5513_v50 = vpop.permute.xlu1 %2159  ;;  %6774 = vst [vmem:[#allocation29_spill] sm:$0xff] %v5515_v34  ;;  %6778 = vst [vmem:[#allocation101_spill] sm:$0xff] %v5558_v0  ;;  %v6813_v0 = vrot.slane %v5407_v52, %v3884_v16 }
 0x4d0   : > { %6773 = vst [vmem:[#allocation28_spill] sm:$0xff] %v5513_v50  ;;  %v2163_v53 = vsel %vm2161_vm3, %v5513_v50, %v5515_v34  ;;  %v6780_v50 = vld [vmem:[#allocation61_spill] sm:$0xff] }
 0x4d1   : > { %v2184_v48 = vmul.f32 %v2180_v63, %v2163_v53  ;;  %v5536_v58 = vadd.f32 %v2154_v20, %v2139_v21  ;;  %v5547_v63 = vld [vmem:[#allocation6 + $0x40] ss:$8 sm:$0x3]  ;;  %v1712_v21 = vsel %vm1704_vm10, %v6745_v49, %v6746_v25  ;;  %v6777_v20 = vrot.slane %v5342_v24, %v4412_v29 }
 0x4d2   : > { %v5563_v26 = vpop.permute.xlu0 %2204  ;;  %v2216_v49 = vsel %vm2208_vm4, %v6781_v33, %v6780_v50  ;;  %v2274_v39 = vrot.slane %v5547_v63, %v4412_v29  ;;  %v6782_v25 = vrot.slane %v4924_v35, %v3884_v16  ;;  %vm2490_vm10 = vcmp.lt.s32.totalorder %v3860_v22, 97 }
 0x4d3   : > { %v2201_v53 = vmul.f32 %v6777_v20, %v2169_v10  ;;  %v2186_v37 = vadd.f32 %v2184_v48, %v5388_v18  ;;  %v5561_v34 = vpop.permute.xlu1 %2206  ;;  %6779 = vst [vmem:[#allocation30_spill] sm:$0xff] %v5563_v26  ;;  %v1933_v48 = vsel %vm1926_vm14, %v6755_v32, %v6756_v46  ;;  %v2027_v35 = vsel %vm2020_vm0, %v6761_v13, %v6762_v6  ;;  %v6785_v6 = vld [vmem:[#allocation63_spill] sm:$0xff] }
 0x4d4   : > { %v2210_v18 = vsel %vm2208_vm4, %v5561_v34, %v5563_v26  ;;  %v5590_v10 = vmul.f32 %v6782_v25, %v1712_v21  ;;  %v1980_v26 = vsel %vm1973_vm15, %v6757_v2, %v6758_v62  ;;  %v2074_v2 = vsel %vm2067_vm1, %v6766_v42, %v6767_v12  ;;  %v6786_v42 = vld [vmem:[#allocation62_spill] sm:$0xff] }
 0x4d5   : > { %v2231_v20 = vmul.f32 %v2227_v47, %v2210_v18  ;;  %v5585_v14 = vadd.f32 %v2201_v53, %v2186_v37  ;;  %v5601_v47 = vld [vmem:[#allocation6 + $0x41] ss:$8 sm:$0x3]  ;;  %v6783_v62 = vrot.slane %v5369_v45, %v4412_v29  ;;  %v6784_v18 = vrot.slane %v5192_v23, %v3884_v16 }
 0x4d6   : > { %v5617_v25 = vpop.permute.xlu0 %2251  ;;  %v2121_v13 = vsel %vm2114_vm2, %v6770_v4, %v6771_v30  ;;  %v2263_v12 = vsel %vm6552_vm5, %v6786_v42, %v6785_v6  ;;  %v2168_v23 = vsel %vm2161_vm3, %v6775_v9, %v6776_v7  ;;  %v2321_v4 = vrot.slane %v5601_v47, %v4412_v29 }
 0x4d7   : > { %v2248_v37 = vmul.f32 %v6783_v62, %v2216_v49  ;;  %v2233_v21 = vadd.f32 %v2231_v20, %v5438_v61  ;;  %v5615_v53 = vpop.permute.xlu1 %2253  ;;  %v5622_v46 = vmul.f32 %v6784_v18, %v1933_v48  ;;  %v6787_v48 = vrot.slane %v5225_v44, %v3884_v16 }
 0x4d8   : > { %v2257_v61 = vsel %vm6552_vm5, %v5615_v53, %v5617_v25  ;;  %v6788_v62 = vrot.slane %v5283_v40, %v3884_v16  ;;  %v6789_v7 = vrot.slane %v5312_v56, %v3884_v16  ;;  %v2262_v44 = vsel %vm6552_vm5, %v6785_v6, %v6786_v42  ;;  %v6792_v56 = vld [vmem:[#allocation64_spill] sm:$0xff] }
 0x4d9   : > { %v2278_v30 = vmul.f32 %v2274_v39, %v2257_v61  ;;  %v5644_v49 = vadd.f32 %v2248_v37, %v2233_v21  ;;  %v5649_v20 = vmul.f32 %v6787_v48, %v1980_v26  ;;  %v2215_v39 = vsel %vm2208_vm4, %v6780_v50, %v6781_v33  ;;  %v5665_v37 = vld [vmem:[#allocation6 + $0x42] ss:$8 sm:$0x3] }
 0x4da   : > { %v5654_v18 = vmul.f32 %v6788_v62, %v2027_v35  ;;  %v5659_v9 = vmul.f32 %v6789_v7, %v2074_v2  ;;  %v6790_v40 = vrot.slane %v5371_v55, %v4412_v29  ;;  %v6791_v35 = vld [vmem:[#allocation65_spill] sm:$0xff]  ;;  %v5682_v21 = vpop.permute.xlu0 %2298  ;;  %v6793_v6 = vrot.slane %v5340_v27, %v3884_v16  ;;  %v6796_v27 = vld [vmem:[#allocation66_spill] sm:$0xff] }
 0x4db   : > { %v2310_v2 = vsel %vm6549_vm6, %v6792_v56, %v6791_v35  ;;  %v2280_v33 = vadd.f32 %v2278_v30, %v5487_v31  ;;  %v5680_v50 = vpop.permute.xlu1 %2300  ;;  %v2309_v48 = vsel %vm6549_vm6, %v6791_v35, %v6792_v56  ;;  %vm2678_vm14 = vcmp.lt.s32.totalorder %v3860_v22, 93 }
 0x4dc   : > { %v2295_v26 = vmul.f32 %v6790_v40, %v2263_v12  ;;  %v5687_v42 = vmul.f32 %v6793_v6, %v2121_v13  ;;  %v6795_v12 = vrot.slane %v5342_v24, %v3884_v16  ;;  %v2304_v31 = vsel %vm6549_vm6, %v5680_v50, %v5682_v21  ;;  %v6797_v13 = vld [vmem:[#allocation67_spill] sm:$0xff] }
 0x4dd   : > { %v2356_v30 = vsel %vm6553_vm7, %v6797_v13, %v6796_v27  ;;  %vm2725_vm15 = vcmp.lt.s32.totalorder %v3860_v22, 83  ;;  %v2325_v24 = vmul.f32 %v2321_v4, %v2304_v31  ;;  %v6798_v7 = vrot.slane %v5369_v45, %v3884_v16  ;;  %v6803_v45 = vld [vmem:[#allocation69_spill] sm:$0xff]  ;;  %v6805_v31 = vld [vmem:[#allocation71_spill] sm:$0xff] }
 0x4de   : > { %6794 = vst [vmem:[#allocation31_spill] sm:$0xff] %v5687_v42  ;;  %v5692_v61 = vmul.f32 %v6795_v12, %v2168_v23  ;;  %v2368_v23 = vrot.slane %v5665_v37, %v4412_v29  ;;  %v5710_v62 = vadd.f32 %v2295_v26, %v2280_v33  ;;  %v6799_v35 = vrot.slane %v5371_v55, %v3884_v16  ;;  %v5729_v26 = vld [vmem:[#allocation6 + $0x43] ss:$8 sm:$0x3]  ;;  %v6802_v33 = vld [vmem:[#allocation68_spill] sm:$0xff] }
 0x4df   : > { %v5715_v40 = vmul.f32 %v6798_v7, %v2215_v39  ;;  %v6801_v6 = vrot.slane %v5386_v51, %v4412_v29  ;;  %v2357_v4 = vsel %vm6553_vm7, %v6796_v27, %v6797_v13  ;;  %v2403_v39 = vsel %vm6554_vm8, %v6803_v45, %v6802_v33  ;;  %v5744_v27 = vpop.permute.xlu1 %2347  ;;  %v5746_v13 = vpop.permute.xlu0 %2345 }
 0x4e0   : > { %v5720_v56 = vmul.f32 %v6799_v35, %v2262_v44  ;;  %v2404_v55 = vsel %vm6554_vm8, %v6802_v33, %v6803_v45  ;;  %v6804_v44 = vld [vmem:[#allocation70_spill] sm:$0xff]  ;;  %v2327_v7 = vadd.f32 %v2325_v24, %v5536_v58  ;;  %v6806_v35 = vrot.slane %v5386_v51, %v3884_v16  ;;  %v6810_v51 = vld [vmem:[#allocation72_spill] sm:$0xff] }
 0x4e1   : > { %v2342_v12 = vmul.f32 %v6801_v6, %v2310_v2  ;;  %v2450_v2 = vsel %vm2443_vm9, %v6805_v31, %v6804_v44  ;;  %v6808_v32 = vrot.slane %v5398_v17, %v3884_v16  ;;  %v2451_v45 = vsel %vm2443_vm9, %v6804_v44, %v6805_v31 }
 0x4e2   : > { %6800 = vst [vmem:[#allocation32_spill] sm:$0xff] %v5720_v56  ;;  %v5751_v6 = vmul.f32 %v6806_v35, %v2309_v48  ;;  %vm2772_vm0 = vcmp.lt.s32.totalorder %v3860_v22, 82  ;;  %v2351_v58 = vsel %vm6553_vm7, %v5744_v27, %v5746_v13  ;;  %v6811_v48 = vld [vmem:[#allocation73_spill] sm:$0xff]  ;;  %vm2819_vm6 = vcmp.lt.s32.totalorder %v3860_v22, 81 }
 0x4e3   : > { %v5756_v33 = vmul.f32 %v6808_v32, %v2356_v30  ;;  %v2497_v24 = vsel %vm2490_vm10, %v6811_v48, %v6810_v51  ;;  %v2372_v32 = vmul.f32 %v2368_v23, %v2351_v58  ;;  %v2415_v30 = vrot.slane %v5729_v26, %v4412_v29 }
 0x4e4   : > { %6807 = vst [vmem:[#allocation33_spill] sm:$0xff] %v5751_v6  ;;  %v5774_v35 = vadd.f32 %v2342_v12, %v2327_v7  ;;  %v6812_v44 = vrot.slane %v5398_v17, %v4412_v29  ;;  %v5782_v6 = vmul.f32 %v6813_v0, %v2403_v39  ;;  %v6815_v56 = vrot.slane %v5407_v52, %v4412_v29  ;;  %v5793_v12 = vld [vmem:[#allocation6 + $0x44] ss:$8 sm:$0x3] }
 0x4e5   : > { %6809 = vst [vmem:[#allocation34_spill] sm:$0xff] %v5756_v33  ;;  %v6816_v23 = vrot.slane %v5409_v54, %v3884_v16  ;;  %vm2866_vm5 = vcmp.lt.s32.totalorder %v3860_v22, 80  ;;  %v2498_v17 = vsel %vm2490_vm10, %v6810_v51, %v6811_v48  ;;  %v6818_v0 = vld [vmem:[#allocation74_spill] sm:$0xff]  ;;  %v2374_v39 = vadd.f32 %v2372_v32, %v5585_v14 }
 0x4e6   : > { %v2389_v31 = vmul.f32 %v6812_v44, %v2357_v4  ;;  %6814 = vst [vmem:[#allocation35_spill] sm:$0xff] %v5782_v6  ;;  %v2436_v33 = vmul.f32 %v6815_v56, %v2404_v55  ;;  %v6819_v4 = vld [vmem:[#allocation75_spill] sm:$0xff]  ;;  %v5808_v55 = vpop.permute.xlu1 %2394  ;;  %v6820_v7 = vrot.slane %v5409_v54, %v4412_v29  ;;  %v6821_v48 = vrot.slane %v5425_v36, %v3884_v16 }
 0x4e7   : > { %v5790_v58 = vmul.f32 %v6816_v23, %v2450_v2  ;;  %v2544_v52 = vsel %vm2537_vm11, %v6819_v4, %v6818_v0  ;;  %v2545_v56 = vsel %vm2537_vm11, %v6818_v0, %v6819_v4  ;;  %v5810_v2 = vpop.permute.xlu0 %2392  ;;  %v6823_v23 = vld [vmem:[#allocation76_spill] sm:$0xff]  ;;  %vm2913_vm7 = vcmp.lt.s32.totalorder %v3860_v22, 79 }
 0x4e8   : > { %v2483_v51 = vmul.f32 %v6820_v7, %v2451_v45  ;;  %v5818_v44 = vmul.f32 %v6821_v48, %v2497_v24  ;;  %v2398_v14 = vsel %vm6554_vm8, %v5808_v55, %v5810_v2  ;;  %v2462_v24 = vrot.slane %v5793_v12, %v4412_v29 }
 0x4e9   : > { %6817 = vst [vmem:[#allocation36_spill] sm:$0xff] %v5790_v58  ;;  %v6824_v58 = vld [vmem:[#allocation77_spill] sm:$0xff]  ;;  %v2419_v45 = vmul.f32 %v2415_v30, %v2398_v14  ;;  %v5835_v32 = vadd.f32 %v2389_v31, %v2374_v39  ;;  %v6825_v4 = vrot.slane %v5425_v36, %v4412_v29  ;;  %v6826_v48 = vrot.slane %v5434_v57, %v3884_v16  ;;  %v6829_v30 = vld [vmem:[#allocation78_spill] sm:$0xff] }
 0x4ea   : > { %6822 = vst [vmem:[#allocation37_spill] sm:$0xff] %v5818_v44  ;;  %v2591_v0 = vsel %vm2584_vm12, %v6824_v58, %v6823_v23  ;;  %v2592_v54 = vsel %vm2584_vm12, %v6823_v23, %v6824_v58  ;;  %v6828_v6 = vrot.slane %v5434_v57, %v4412_v29  ;;  %v6830_v58 = vld [vmem:[#allocation79_spill] sm:$0xff]  ;;  %v5854_v39 = vld [vmem:[#allocation6 + $0x45] ss:$8 sm:$0x3]  ;;  %vm2960_vm8 = vcmp.lt.s32.totalorder %v3860_v22, 78 }
 0x4eb   : > { %v2530_v7 = vmul.f32 %v6825_v4, %v2498_v17  ;;  %v5843_v44 = vmul.f32 %v6826_v48, %v2544_v52  ;;  %v2638_v31 = vsel %vm2631_vm13, %v6830_v58, %v6829_v30  ;;  %v2639_v36 = vsel %vm2631_vm13, %v6829_v30, %v6830_v58  ;;  %v6831_v17 = vld [vmem:[#allocation80_spill] sm:$0xff]  ;;  %v6832_v52 = vld [vmem:[#allocation81_spill] sm:$0xff]  ;;  %v5872_v14 = vpop.permute.xlu0 %2439 }
 0x4ec   : > { %v5848_v42 = vmul.f32 %v6828_v6, %v2545_v56  ;;  %v2685_v23 = vsel %vm2678_vm14, %v6832_v52, %v6831_v17  ;;  %v2686_v57 = vsel %vm2678_vm14, %v6831_v17, %v6832_v52  ;;  %v2421_v6 = vadd.f32 %v2419_v45, %v5644_v49  ;;  %v5870_v56 = vpop.permute.xlu1 %2441  ;;  %6834 = vst [vmem:[#allocation22_spill] sm:$0xff] %v5872_v14  ;;  %v6839_v17 = vld [vmem:[#allocation83_spill] sm:$0xff] }
 0x4ed   : > { %6827 = vst [vmem:[#allocation38_spill] sm:$0xff] %v5843_v44  ;;  %6833 = vst [vmem:[#allocation39_spill] sm:$0xff] %v5870_v56  ;;  %v6835_v4 = vrot.slane %v5457_v59, %v3884_v16  ;;  %v6837_v30 = vrot.slane %v5457_v59, %v4412_v29  ;;  %v6838_v44 = vld [vmem:[#allocation82_spill] sm:$0xff]  ;;  %v2445_v49 = vsel %vm2443_vm9, %v5870_v56, %v5872_v14 }
 0x4ee   : > { %v2732_v52 = vsel %vm2725_vm15, %v6839_v17, %v6838_v44  ;;  %v2466_v45 = vmul.f32 %v2462_v24, %v2445_v49  ;;  %v2509_v59 = vrot.slane %v5854_v39, %v4412_v29  ;;  %v6843_v56 = vrot.slane %v5474_v11, %v3884_v16 }
 0x4ef   : > { %v5877_v48 = vmul.f32 %v6835_v4, %v2591_v0  ;;  %v5882_v58 = vmul.f32 %v6837_v30, %v2592_v54  ;;  %v2733_v0 = vsel %vm2725_vm15, %v6838_v44, %v6839_v17  ;;  %v5898_v54 = vadd.f32 %v2436_v33, %v2421_v6  ;;  %v5920_v6 = vld [vmem:[#allocation6 + $0x46] ss:$8 sm:$0x3] }
 0x4f0   : > { %v6840_v4 = vrot.slane %v5459_v43, %v3884_v16  ;;  %v5913_v44 = vmul.f32 %v6843_v56, %v2685_v23  ;;  %v6845_v24 = vrot.slane %v5474_v11, %v4412_v29  ;;  %v2468_v11 = vadd.f32 %v2466_v45, %v5710_v62  ;;  %v5938_v56 = vpop.permute.xlu0 %2486  ;;  %v6854_v45 = vld [vmem:[#allocation89_spill] sm:$0xff] }
 0x4f1   : > { %6836 = vst [vmem:[#allocation21_spill] sm:$0xff] %v5877_v48  ;;  %v6842_v48 = vrot.slane %v5459_v43, %v4412_v29  ;;  %v6848_v43 = vld [vmem:[#allocation84_spill] sm:$0xff] }
 0x4f2   : > { %v5903_v30 = vmul.f32 %v6840_v4, %v2638_v31  ;;  %6844 = vst [vmem:[#allocation41_spill] sm:$0xff] %v5913_v44  ;;  %v5918_v33 = vmul.f32 %v6845_v24, %v2686_v57  ;;  %v6846_v31 = vrot.slane %v5483_v3, %v3884_v16  ;;  %v5936_v57 = vpop.permute.xlu1 %2488  ;;  %v6852_v4 = vld [vmem:[#allocation86_spill] sm:$0xff]  ;;  %v6853_v24 = vld [vmem:[#allocation87_spill] sm:$0xff]  ;;  %v5963_v44 = vadd.f32 %v2483_v51, %v2468_v11 }
 0x4f3   : > { %v5908_v14 = vmul.f32 %v6842_v48, %v2639_v36  ;;  %v6849_v36 = vld [vmem:[#allocation85_spill] sm:$0xff]  ;;  %v2492_v62 = vsel %vm2490_vm10, %v5936_v57, %v5938_v56  ;;  %v6860_v51 = vrot.slane %v5508_v15, %v3884_v16 }
 0x4f4   : > { %6841 = vst [vmem:[#allocation40_spill] sm:$0xff] %v5903_v30  ;;  %v5925_v17 = vmul.f32 %v6846_v31, %v2732_v52  ;;  %v2779_v48 = vsel %vm2772_vm0, %v6849_v36, %v6848_v43  ;;  %v2780_v23 = vsel %vm2772_vm0, %v6848_v43, %v6849_v36  ;;  %v6850_v52 = vrot.slane %v5483_v3, %v4412_v29  ;;  %v6855_v36 = vld [vmem:[#allocation88_spill] sm:$0xff] }
 0x4f5   : > { %v2826_v31 = vsel %vm2819_vm6, %v6853_v24, %v6852_v4  ;;  %v2827_v43 = vsel %vm2819_vm6, %v6852_v4, %v6853_v24  ;;  %v2874_v3 = vsel %vm2866_vm5, %v6855_v36, %v6854_v45  ;;  %v6856_v30 = vrot.slane %v5497_v8, %v3884_v16 }
 0x4f6   : > { %6847 = vst [vmem:[#allocation42_spill] sm:$0xff] %v5925_v17  ;;  %v5943_v49 = vmul.f32 %v6850_v52, %v2733_v0  ;;  %v2513_v0 = vmul.f32 %v2509_v59, %v2492_v62  ;;  %v2556_v52 = vrot.slane %v5920_v6, %v4412_v29  ;;  %v6858_v24 = vrot.slane %v5497_v8, %v4412_v29  ;;  %v5979_v62 = vld [vmem:[#allocation6 + $0x47] ss:$8 sm:$0x3] }
 0x4f7   : > { %v5968_v4 = vmul.f32 %v6856_v30, %v2779_v48  ;;  %v2129_v59 = vrot.slane %v5400_v1, %v3884_v16  ;;  %v5984_v11 = vmul.f32 %v6860_v51, %v2826_v31  ;;  %v6862_v30 = vld [vmem:[#allocation90_spill] sm:$0xff]  ;;  %v6863_v48 = vld [vmem:[#allocation91_spill] sm:$0xff]  ;;  %v5995_v1 = vpop.permute.xlu1 %2535  ;;  %v6864_v31 = vrot.slane %v5508_v15, %v4412_v29 }
 0x4f8   : > { %6851 = vst [vmem:[#allocation43_spill] sm:$0xff] %v5943_v49  ;;  %v5973_v17 = vmul.f32 %v6858_v24, %v2780_v23  ;;  %v2082_v49 = vrot.slane %v5352_v28, %v3884_v16  ;;  %v2920_v8 = vsel %vm2913_vm7, %v6863_v48, %v6862_v30  ;;  %v2921_v28 = vsel %vm2913_vm7, %v6862_v30, %v6863_v48  ;;  %v5997_v24 = vpop.permute.xlu0 %2533 }
 0x4f9   : > { %6857 = vst [vmem:[#allocation44_spill] sm:$0xff] %v5968_v4  ;;  %6861 = vst [vmem:[#allocation94_spill] sm:$0xff] %v5984_v11  ;;  %v2515_v23 = vadd.f32 %v2513_v0, %v5774_v35  ;;  %v6002_v51 = vmul.f32 %v6864_v31, %v2827_v43  ;;  %v6866_v11 = vrot.slane %v5510_v60, %v4412_v29  ;;  %v6019_v43 = vld [vmem:[#allocation6 + $0x50] ss:$8 sm:$0x3] }
 0x4fa   : > { %6859 = vst [vmem:[#allocation45_spill] sm:$0xff] %v5973_v17  ;;  %v2176_v36 = vrot.slane %v5448_v19, %v3884_v16  ;;  %v2539_v35 = vsel %vm2537_vm11, %v5995_v1, %v5997_v24  ;;  %v1745_v0 = vadd.f32 %v5590_v10, %v5227_v41  ;;  %v2603_v15 = vrot.slane %v5979_v62, %v4412_v29  ;;  %v6872_v60 = vld [vmem:[#allocation92_spill] sm:$0xff]  ;;  %v6873_v41 = vld [vmem:[#allocation93_spill] sm:$0xff] }
 0x4fb   : > { %6865 = vst [vmem:[#allocation96_spill] sm:$0xff] %v6002_v51  ;;  %v6007_v45 = vmul.f32 %v6866_v11, %v2874_v3  ;;  %v2560_v30 = vmul.f32 %v2556_v52, %v2539_v35  ;;  %v6021_v48 = vadd.f32 %v2530_v7, %v2515_v23  ;;  %v6868_v3 = vrot.slane %v5532_v5, %v3884_v16  ;;  %v6052_v23 = vpop.permute.xlu1 %2582  ;;  %v6119_v17 = vld [vmem:[#allocation6 + $0x52] ss:$8 sm:$0x3] }
 0x4fc   : > { %v6870_v11 = vrot.slane %v5532_v5, %v4412_v29  ;;  %v6037_v10 = vsel %vm2960_vm8, %v6873_v41, %v6872_v60  ;;  %v2223_v7 = vrot.slane %v5499_v38, %v3884_v16  ;;  %v6045_v52 = vsel %vm2960_vm8, %v6872_v60, %v6873_v41  ;;  %v6054_v35 = vpop.permute.xlu0 %2580  ;;  %v6877_v38 = vld [vmem:[#allocation99_spill] sm:$0xff] }
 0x4fd   : > { %6867 = vst [vmem:[#allocation46_spill] sm:$0xff] %v6007_v45  ;;  %v6026_v19 = vmul.f32 %v6868_v3, %v2920_v8  ;;  %6874 = vst [vmem:[#allocation48_spill] sm:$0xff] %v6037_v10  ;;  %v2270_v5 = vrot.slane %v5547_v63, %v3884_v16  ;;  %v6876_v3 = vld [vmem:[#allocation25_spill] sm:$0xff]  ;;  %v2364_v60 = vrot.slane %v5665_v37, %v3884_v16  ;;  %v6879_v8 = vld [vmem:[#allocation28_spill] sm:$0xff] }
 0x4fe   : > { %v6031_v31 = vmul.f32 %v6870_v11, %v2921_v28  ;;  %6875 = vst [vmem:[#allocation51_spill] sm:$0xff] %v6045_v52  ;;  %v2562_v28 = vadd.f32 %v2560_v30, %v5835_v32  ;;  %v2068_v11 = vsel %vm2067_vm1, %v6877_v38, %v6876_v3  ;;  %v2586_v63 = vsel %vm2584_vm12, %v6052_v23, %v6054_v35  ;;  %v6878_v30 = vld [vmem:[#allocation97_spill] sm:$0xff]  ;;  %v6073_v3 = vld [vmem:[#allocation6 + $0x51] ss:$8 sm:$0x3]  ;;  %v6881_v38 = vld [vmem:[#allocation30_spill] sm:$0xff] }
 0x4ff   : > { %6869 = vst [vmem:[#allocation47_spill] sm:$0xff] %v6026_v19  ;;  %v2650_v32 = vrot.slane %v6019_v43, %v4412_v29  ;;  %v1903_v41 = vadd.f32 %v6878_v30, %v1745_v0  ;;  %v6880_v19 = vld [vmem:[#allocation29_spill] sm:$0xff]  ;;  %v2607_v10 = vmul.f32 %v2603_v15, %v2586_v63  ;;  %v2209_v4 = vsel %vm2208_vm4, %v6881_v38, %v5561_v34  ;;  %v6093_v63 = vpop.permute.xlu1 %2629  ;;  %v6883_v30 = vld [vmem:[#allocation27_spill] sm:$0xff]  ;;  %v6885_v45 = vld [vmem:[#allocation98_spill] sm:$0xff] }
 0x500   : > { %6871 = vst [vmem:[#allocation49_spill] sm:$0xff] %v6031_v31  ;;  %v2162_v52 = vsel %vm2161_vm3, %v6880_v19, %v6879_v8  ;;  %v6076_v37 = vadd.f32 %v5848_v42, %v2562_v28  ;;  %v2411_v31 = vrot.slane %v5729_v26, %v3884_v16  ;;  %v2089_v15 = vmul.f32 %v2082_v49, %v2068_v11  ;;  %v6095_v34 = vpop.permute.xlu0 %2627  ;;  %v6882_v26 = vld [vmem:[#allocation26_spill] sm:$0xff]  ;;  %v6884_v19 = vld [vmem:[#allocation95_spill] sm:$0xff] }
 0x501   : > { %v2609_v28 = vadd.f32 %v2607_v10, %v5898_v54  ;;  %v2115_v38 = vsel %vm2114_vm2, %v6883_v30, %v6882_v26  ;;  %v2183_v0 = vmul.f32 %v2176_v36, %v2162_v52  ;;  %v2633_v49 = vsel %vm2631_vm13, %v6093_v63, %v6095_v34  ;;  %v6886_v26 = vld [vmem:[#allocation24_spill] sm:$0xff] }
 0x502   : > { %v2697_v11 = vrot.slane %v6073_v3, %v4412_v29  ;;  %v1920_v54 = vadd.f32 %v6884_v19, %v1903_v41  ;;  %v2230_v10 = vmul.f32 %v2223_v7, %v2209_v4  ;;  %v2654_v42 = vmul.f32 %v2650_v32, %v2633_v49  ;;  %v6130_v7 = vld [vmem:[#allocation6 + $0x53] ss:$8 sm:$0x3] }
 0x503   : > { %v6109_v8 = vadd.f32 %v5882_v58, %v2609_v28  ;;  %v2014_v51 = vadd.f32 %v5649_v20, %v6885_v45  ;;  %v2061_v36 = vadd.f32 %v5654_v18, %v6886_v26  ;;  %v2646_v52 = vrot.slane %v6019_v43, %v3884_v16  ;;  %v6126_v45 = vpop.permute.xlu1 %2676  ;;  %v6893_v26 = vld [vmem:[#allocation39_spill] sm:$0xff] }
 0x504   : > { %v2693_v30 = vrot.slane %v6073_v3, %v3884_v16  ;;  %v2091_v41 = vadd.f32 %v2089_v15, %v1920_v54  ;;  %v2136_v4 = vmul.f32 %v2129_v59, %v2115_v38  ;;  %vm6887_vm1 = vcmp.lt.s32.totalorder %v3860_v22, 109  ;;  %v6128_v18 = vpop.permute.xlu0 %2674  ;;  %v6890_v15 = vld [vmem:[#allocation23_spill] sm:$0xff] }
 0x505   : > { %v2350_v58 = vsel %vm6887_vm1, %v5746_v13, %v5744_v27  ;;  %v2656_v20 = vadd.f32 %v2654_v42, %v5963_v44  ;;  %v2185_v32 = vadd.f32 %v2183_v0, %v2014_v51  ;;  %vm6888_vm2 = vcmp.lt.s32.totalorder %v3860_v22, 111 }
 0x506   : > { %v2256_v19 = vsel %vm6888_vm2, %v5617_v25, %v5615_v53  ;;  %vm6889_vm3 = vcmp.lt.s32.totalorder %v3860_v22, 99  ;;  %v2680_v27 = vsel %vm2678_vm14, %v6126_v45, %v6128_v18  ;;  %v2232_v13 = vadd.f32 %v2230_v10, %v2061_v36  ;;  %v6894_v36 = vld [vmem:[#allocation22_spill] sm:$0xff] }
 0x507   : > { %v2397_v59 = vsel %vm6889_vm3, %v5810_v2, %v5808_v55  ;;  %v2701_v44 = vmul.f32 %v2697_v11, %v2680_v27  ;;  %v2744_v51 = vrot.slane %v6119_v17, %v4412_v29  ;;  %v6147_v0 = vadd.f32 %v5908_v14, %v2656_v20  ;;  %v2724_v49 = vpop.permute.xlu1 %2723  ;;  %v6895_v20 = vld [vmem:[#allocation31_spill] sm:$0xff] }
 0x508   : > { %v1967_v53 = vadd.f32 %v5622_v46, %v6890_v15  ;;  %v2371_v25 = vmul.f32 %v2364_v60, %v2350_v58  ;;  %v2740_v55 = vrot.slane %v6119_v17, %v3884_v16  ;;  %v2791_v2 = vrot.slane %v6130_v7, %v4412_v29  ;;  %v2722_v11 = vpop.permute.xlu0 %2721  ;;  %v6899_v15 = vld [vmem:[#allocation34_spill] sm:$0xff] }
 0x509   : > { %v2277_v42 = vmul.f32 %v2270_v5, %v2256_v19  ;;  %vm6891_vm4 = vcmp.lt.s32.totalorder %v3860_v22, 110  ;;  %v2418_v38 = vmul.f32 %v2411_v31, %v2397_v59  ;;  %v2703_v14 = vadd.f32 %v2701_v44, %v6021_v48  ;;  %v6169_v31 = vld [vmem:[#allocation6 + $0x54] ss:$8 sm:$0x3] }
 0x50a   : > { %v2303_v28 = vsel %vm6891_vm4, %v5682_v21, %v5680_v50  ;;  %v2138_v54 = vadd.f32 %v2136_v4, %v1967_v53  ;;  %v2108_v46 = vadd.f32 %v5659_v9, %v2091_v41  ;;  %v2202_v60 = vadd.f32 %v5692_v61, %v2185_v32  ;;  %v6898_v44 = vld [vmem:[#allocation43_spill] sm:$0xff] }
 0x50b   : > { %v2727_v17 = vsel %vm2725_vm15, %v2724_v49, %v2722_v11  ;;  %v2249_v5 = vadd.f32 %v5715_v40, %v2232_v13  ;;  %v2538_v50 = vsel %vm2537_vm11, %v5997_v24, %v5995_v1  ;;  %v6172_v48 = vadd.f32 %v5918_v33, %v2703_v14 }
 0x50c   : > { %v2748_v21 = vmul.f32 %v2744_v51, %v2727_v17  ;;  %v6892_v9 = vrot.slane %v5601_v47, %v3884_v16  ;;  %v2373_v10 = vadd.f32 %v2371_v25, %v2202_v60  ;;  %v2444_v40 = vsel %vm2443_vm9, %v6894_v36, %v6893_v26  ;;  %v2771_v47 = vpop.permute.xlu1 %2770  ;;  %v2769_v58 = vpop.permute.xlu0 %2768 }
 0x50d   : > { %v2787_v41 = vrot.slane %v6130_v7, %v3884_v16  ;;  %v2279_v1 = vadd.f32 %v2277_v42, %v2108_v46  ;;  %v2420_v24 = vadd.f32 %v2418_v38, %v2249_v5  ;;  %v2585_v33 = vsel %vm2584_vm12, %v6054_v35, %v6052_v23  ;;  %v6901_v38 = vld [vmem:[#allocation32_spill] sm:$0xff] }
 0x50e   : > { %v2324_v61 = vmul.f32 %v6892_v9, %v2303_v28  ;;  %v2750_v4 = vadd.f32 %v2748_v21, %v6076_v37  ;;  %v2155_v32 = vadd.f32 %v6895_v20, %v2138_v54  ;;  %v6896_v19 = vrot.slane %v5920_v6, %v3884_v16  ;;  %v6212_v28 = vld [vmem:[#allocation6 + $0x55] ss:$8 sm:$0x3]  ;;  %v2970_v20 = vld [vmem:[#allocation6 + $0x57] ss:$8 sm:$0x3] }
 0x50f   : > { %v2774_v7 = vsel %vm2772_vm0, %v2771_v47, %v2769_v58  ;;  %v2838_v27 = vrot.slane %v6169_v31, %v4412_v29  ;;  %v6897_v13 = vrot.slane %v5793_v12, %v3884_v16  ;;  %v2491_v35 = vsel %vm2490_vm10, %v5938_v56, %v5936_v57  ;;  %v6902_v54 = vld [vmem:[#allocation35_spill] sm:$0xff] }
 0x510   : > { %v2559_v59 = vmul.f32 %v6896_v19, %v2538_v50  ;;  %v2795_v37 = vmul.f32 %v2791_v2, %v2774_v7  ;;  %v6204_v51 = vadd.f32 %v6898_v44, %v2750_v4  ;;  %v2326_v6 = vadd.f32 %v2324_v61, %v2155_v32  ;;  %v2818_v46 = vpop.permute.xlu1 %2817  ;;  %v2816_v60 = vpop.permute.xlu0 %2815  ;;  %v6908_v7 = vld [vmem:[#allocation96_spill] sm:$0xff] }
 0x511   : > { %v2465_v23 = vmul.f32 %v6897_v13, %v2444_v40  ;;  %v2390_v53 = vadd.f32 %v6899_v15, %v2373_v10  ;;  %v6900_v25 = vrot.slane %v5979_v62, %v3884_v16  ;;  %v2834_v12 = vrot.slane %v6169_v31, %v3884_v16  ;;  %v2923_v31 = vld [vmem:[#allocation6 + $0x56] ss:$8 sm:$0x3] }
 0x512   : > { %v2296_v14 = vadd.f32 %v6901_v38, %v2279_v1  ;;  %v2437_v57 = vadd.f32 %v6902_v54, %v2420_v24  ;;  %v2726_v56 = vsel %vm2725_vm15, %v2722_v11, %v2724_v49  ;;  %v2797_v2 = vadd.f32 %v2795_v37, %v6109_v8  ;;  %v6904_v11 = vld [vmem:[#allocation45_spill] sm:$0xff] }
 0x513   : > { %v2606_v42 = vmul.f32 %v6900_v25, %v2585_v33  ;;  %v6903_v62 = vrot.slane %v5854_v39, %v3884_v16  ;;  %v2561_v5 = vadd.f32 %v2559_v59, %v2390_v53  ;;  %v2632_v50 = vsel %vm2631_vm13, %v6095_v34, %v6093_v63  ;;  %v6905_v39 = vld [vmem:[#allocation33_spill] sm:$0xff] }
 0x514   : > { %v2821_v21 = vsel %vm2819_vm6, %v2818_v46, %v2816_v60  ;;  %v2467_v9 = vadd.f32 %v2465_v23, %v2296_v14  ;;  %v2885_v8 = vrot.slane %v6212_v28, %v4412_v29  ;;  %v6231_v61 = vadd.f32 %v6904_v11, %v2797_v2  ;;  %v2865_v1 = vpop.permute.xlu1 %2864  ;;  %v2863_v24 = vpop.permute.xlu0 %2862  ;;  %v6909_v23 = vld [vmem:[#allocation21_spill] sm:$0xff] }
 0x515   : > { %v2512_v17 = vmul.f32 %v6903_v62, %v2491_v35  ;;  %v2842_v49 = vmul.f32 %v2838_v27, %v2821_v21  ;;  %v2343_v10 = vadd.f32 %v6905_v39, %v2326_v6  ;;  %v2608_v26 = vadd.f32 %v2606_v42, %v2437_v57  ;;  %v3017_v25 = vld [vmem:[#allocation6 + $0x60] ss:$8 sm:$0x3] }
 0x516   : > { %v2747_v36 = vmul.f32 %v2740_v55, %v2726_v56  ;;  %v2773_v40 = vsel %vm2772_vm0, %v2769_v58, %v2771_v47  ;;  %v2653_v63 = vmul.f32 %v2646_v52, %v2632_v50  ;;  %v2928_v33 = vrot.slane %v2923_v31, %v3884_v16  ;;  %v6906_v47 = vld [vmem:[#allocation38_spill] sm:$0xff]  ;;  %v6907_v52 = vld [vmem:[#allocation36_spill] sm:$0xff]  ;;  %v6910_v42 = vld [vmem:[#allocation37_spill] sm:$0xff] }
 0x517   : > { %v2844_v34 = vadd.f32 %v2842_v49, %v6147_v0  ;;  %v2932_v4 = vrot.slane %v2923_v31, %v4412_v29  ;;  %v2514_v32 = vadd.f32 %v2512_v17, %v2343_v10  ;;  %v2679_v55 = vsel %vm2678_vm14, %v6128_v18, %v6126_v45 }
 0x518   : > { %v2578_v58 = vadd.f32 %v6906_v47, %v2561_v5  ;;  %v2868_v43 = vsel %vm2866_vm5, %v2865_v1, %v2863_v24  ;;  %v2484_v0 = vadd.f32 %v6907_v52, %v2467_v9  ;;  %v2794_v19 = vmul.f32 %v2787_v41, %v2773_v40  ;;  %v2912_v15 = vpop.permute.xlu1 %2911  ;;  %v2910_v53 = vpop.permute.xlu0 %2909  ;;  %v6913_v5 = vld [vmem:[#allocation40_spill] sm:$0xff] }
 0x519   : > { %v2889_v59 = vmul.f32 %v2885_v8, %v2868_v43  ;;  %v6251_v27 = vadd.f32 %v6908_v7, %v2844_v34  ;;  %v2625_v35 = vadd.f32 %v6909_v23, %v2608_v26  ;;  %v2881_v37 = vrot.slane %v6212_v28, %v3884_v16  ;;  %v3034_v8 = vld [vmem:[#allocation8 + $0x60] ss:$8 sm:$0x3]  ;;  %v6914_v26 = vld [vmem:[#allocation49_spill] sm:$0xff] }
 0x51a   : > { %v2749_v13 = vadd.f32 %v2747_v36, %v2578_v58  ;;  %v2975_v45 = vrot.slane %v2970_v20, %v3884_v16  ;;  %v2655_v18 = vadd.f32 %v2653_v63, %v2484_v0  ;;  %v2700_v44 = vmul.f32 %v2693_v30, %v2679_v55  ;;  %v6911_v30 = vld [vmem:[#allocation46_spill] sm:$0xff]  ;;  %v6915_v40 = vld [vmem:[#allocation44_spill] sm:$0xff]  ;;  %v6919_v55 = vld [vmem:[#allocation51_spill] sm:$0xff] }
 0x51b   : > { %v2820_v41 = vsel %vm2819_vm6, %v2816_v60, %v2818_v46  ;;  %v2891_v6 = vadd.f32 %v2889_v59, %v6172_v48  ;;  %v2531_v38 = vadd.f32 %v6910_v42, %v2514_v32  ;;  %v2914_v28 = vsel %vm2913_vm7, %v2910_v53, %v2912_v15  ;;  %v6912_v48 = vld [vmem:[#allocation42_spill] sm:$0xff] }
 0x51c   : > { %v2915_v14 = vsel %vm2913_vm7, %v2912_v15, %v2910_v53  ;;  %v2979_v54 = vrot.slane %v2970_v20, %v4412_v29  ;;  %v2796_v3 = vadd.f32 %v2794_v19, %v2625_v35  ;;  %v2935_v56 = vmul.f32 %v2928_v33, %v2914_v28  ;;  %v2959_v31 = vpop.permute.xlu1 %2958  ;;  %v2957_v9 = vpop.permute.xlu0 %2956  ;;  %v6916_v33 = vld [vmem:[#allocation48_spill] sm:$0xff]  ;;  %v6922_v35 = vld [vmem:[#allocation47_spill] sm:$0xff] }
 0x51d   : > { %v2908_v57 = vadd.f32 %v6911_v30, %v2891_v6  ;;  %v2936_v2 = vmul.f32 %v2932_v4, %v2915_v14  ;;  %v2841_v46 = vmul.f32 %v2834_v12, %v2820_v41  ;;  %v2766_v60 = vadd.f32 %v6912_v48, %v2749_v13  ;;  %v6917_v4 = vld [vmem:[#allocation101_spill] sm:$0xff]  ;;  %v6923_v53 = vld [vmem:[#allocation88_spill] sm:$0xff] }
 0x51e   : > { %vm3007_vm6 = vcmp.lt.s32.totalorder %v3860_v22, 77  ;;  %v3022_v62 = vrot.slane %v3017_v25, %v3884_v16  ;;  %v2702_v17 = vadd.f32 %v2700_v44, %v2531_v38  ;;  %v2672_v50 = vadd.f32 %v6913_v5, %v2655_v18  ;;  %v6921_v13 = vld [vmem:[#allocation41_spill] sm:$0xff] }
 0x51f   : > { %v2938_v21 = vadd.f32 %v2936_v2, %v6204_v51  ;;  %v3026_v49 = vrot.slane %v3017_v25, %v4412_v29  ;;  %v2867_v11 = vsel %vm2866_vm5, %v2863_v24, %v2865_v1  ;;  %v2937_v12 = vadd.f32 %v2935_v56, %v2766_v60 }
 0x520   : > { %v2961_v39 = vsel %vm2960_vm8, %v2957_v9, %v2959_v31  ;;  %v2962_v10 = vsel %vm2960_vm8, %v2959_v31, %v2957_v9  ;;  %v2813_v63 = vadd.f32 %v6915_v40, %v2796_v3  ;;  %v6918_v20 = vrot.slane %v6917_v4, %v3884_v16  ;;  %v3006_v19 = vpop.permute.xlu1 %3005  ;;  %v3004_v59 = vpop.permute.xlu0 %3003 }
 0x521   : > { %v2955_v36 = vadd.f32 %v6914_v26, %v2938_v21  ;;  %v2982_v51 = vmul.f32 %v2975_v45, %v2961_v39  ;;  %v2983_v34 = vmul.f32 %v2979_v54, %v2962_v10  ;;  %v6920_v1 = vrot.slane %v6917_v4, %v4412_v29  ;;  %v6929_v4 = vld [vmem:[#allocation17_spill] sm:$0xff] }
 0x522   : > { %v2999_v32 = vmul.f32 %v6918_v20, %v6916_v33  ;;  %v2843_v47 = vadd.f32 %v2841_v46, %v2672_v50  ;;  %v3039_v58 = vrot.slane %v3034_v8, %v3884_v16  ;;  %v2888_v43 = vmul.f32 %v2881_v37, %v2867_v11  ;;  %v6926_v46 = vld [vmem:[#allocation100_spill] sm:$0xff] }
 0x523   : > { %v3000_v24 = vmul.f32 %v6920_v1, %v6919_v55  ;;  %v2984_v52 = vadd.f32 %v2982_v51, %v2813_v63  ;;  %v2985_v0 = vadd.f32 %v2983_v34, %v6231_v61  ;;  %v3043_v7 = vrot.slane %v3034_v8, %v4412_v29  ;;  %v6924_v61 = vld [vmem:[#allocation89_spill] sm:$0xff]  ;;  %v6925_v29 = vld [vmem:[#allocation94_spill] sm:$0xff] }
 0x524   : > { %v2719_v23 = vadd.f32 %v6921_v13, %v2702_v17  ;;  %v2954_v45 = vadd.f32 %v6922_v35, %v2937_v12  ;;  %v3008_v18 = vsel %vm3007_vm6, %v3004_v59, %v3006_v19  ;;  %v3009_v44 = vsel %vm3007_vm6, %v3006_v19, %v3004_v59  ;;  %v3013_v3 = vpop.permute.xlu1 %3012  ;;  %v3011_v30 = vpop.permute.xlu0 %3010  ;;  %v6931_v1 = vld [vmem:[#allocation13_spill] sm:$0xff] }
 0x525   : > { %v3001_v41 = vadd.f32 %v2999_v32, %v2984_v52  ;;  %v3002_v6 = vadd.f32 %v3000_v24, %v2985_v0  ;;  %v3029_v37 = vmul.f32 %v3022_v62, %v3008_v18  ;;  %v3030_v15 = vmul.f32 %v3026_v49, %v3009_v44  ;;  %v6930_v32 = vld [vmem:[#allocation15_spill] sm:$0xff]  ;;  %v6934_v0 = vld [vmem:[#allocation16_spill] sm:$0xff] }
 0x526   : > { %v2873_v25 = vsel %vm2866_vm5, %v6924_v61, %v6923_v53  ;;  %v2860_v42 = vadd.f32 %v6925_v29, %v2843_v47  ;;  %v2890_v38 = vadd.f32 %v2888_v43, %v2719_v23  ;;  %v3014_v56 = vsel %vm3007_vm6, %v3011_v30, %v3013_v3  ;;  %v6932_v47 = vld [vmem:[#allocation19_spill] sm:$0xff]  ;;  %v6933_v43 = vld [vmem:[#allocation18_spill] sm:$0xff] }
 0x527   : > { %v3052_v28 = vadd.f32 %v3001_v41, %v2954_v45  ;;  %v3053_v14 = vadd.f32 %v3002_v6, %v2955_v36  ;;  %v3032_v54 = vadd.f32 %v3030_v15, %v6251_v27  ;;  %v3015_v2 = vsel %vm3007_vm6, %v3013_v3, %v3011_v30 }
 0x528   : > { %v6927_v48 = vrot.slane %v6926_v46, %v3884_v16  ;;  %v3031_v62 = vadd.f32 %v3029_v37, %v2860_v42  ;;  %v3046_v17 = vmul.f32 %v3039_v58, %v3014_v56  ;;  %v3047_v5 = vmul.f32 %v3043_v7, %v3015_v2  ;;  %v6936_v7 = vld [vmem:[#allocation20_spill] sm:$0xff] }
 0x529   : > { %v3057_v49 = vstv %s3056_s16 }
 0x52a   : > { %v2905_v60 = vmul.f32 %v6927_v48, %v2873_v25  ;;  %v3048_v21 = vadd.f32 %v3046_v17, %v3031_v62  ;;  %v3049_v31 = vadd.f32 %v3047_v5, %v3032_v54 }
 0x52c   : > { %v2907_v50 = vadd.f32 %v2905_v60, %v2890_v38  ;;  %v3051_v27 = vadd.f32 %v3049_v31, %v2908_v57 }
 0x52e   : > { %v3050_v9 = vadd.f32 %v3048_v21, %v2907_v50  ;;  %v3055_v11 = vadd.f32 %v3053_v14, %v3051_v27 }
 0x530   : > { %v3054_v8 = vadd.f32 %v3052_v28, %v3050_v9  ;;  %v3059_v22 = vadd.f32 %v3057_v49, %v3055_v11 }
 0x532   : > { %v3058_v12 = vadd.f32 %v3057_v49, %v3054_v8  ;;  %v3221_v10 = vmul.f32 -1.442695, %v3059_v22 }
 0x534   : > { %v3220_v39 = vmul.f32 -1.442695, %v3058_v12 }
 0x536   : > { %3399 = vpow2.f32 %v3220_v39 }
 0x537   : > { %3401 = vpow2.f32 %v3221_v10 }
 0x543   : > { %v3400_v26 = vpop.eup %3399 }
 0x544   : > { %v3402_v36 = vpop.eup %3401  ;;  %v3066_v40 = vadd.f32 1.0, %v3400_v26 }
 0x545   : > { %v3067_v63 = vadd.f32 1.0, %v3402_v36 }
 0x546   : > { %3403 = vrcp.f32 %v3066_v40 }
 0x547   : > { %3405 = vrcp.f32 %v3067_v63 }
 0x553   : > { %v3404_v51 = vpop.eup %3403 }
 0x554   : > { %v3406_v57 = vpop.eup %3405  ;;  %v3075_v34 = vrot.slane %v3404_v51, %v3884_v16 }
 0x555   : > { %v3079_v33 = vrot.slane %v3406_v57, %v3884_v16  ;;  %v6935_v16 = vld [vmem:[#allocation14_spill] sm:$0xff] }
 0x556   : > { %v3080_v20 = vmul.f32 %v3075_v34, %v6929_v4  ;;  %v3082_v55 = vmul.f32 %v3075_v34, %v6930_v32  ;;  %v3084_v24 = vmul.f32 %v3075_v34, %v6931_v1  ;;  %v3086_v58 = vmul.f32 %v3075_v34, %v6932_v47 }
 0x557   : > { %v3081_v52 = vmul.f32 %v3079_v33, %v6933_v43  ;;  %v3083_v19 = vmul.f32 %v3079_v33, %v6934_v0  ;;  %v3085_v59 = vmul.f32 %v3079_v33, %v6935_v16  ;;  %v3087_v13 = vmul.f32 %v3079_v33, %v6936_v7 }
 0x558   : > { %3088 = vst [vmem:[%s299_s22] sm:$0xff] %v3080_v20  ;;  %3090 = vst [vmem:[%s299_s22 + $0x10] sm:$0xff] %v3082_v55 }
 0x559   : > { %3092 = vst [vmem:[%s299_s22 + $0x20] sm:$0xff] %v3084_v24  ;;  %3094 = vst [vmem:[%s299_s22 + $0x30] sm:$0xff] %v3086_v58 }
 0x55a   : > { %3089 = vst [vmem:[%s299_s22 + $0x8] sm:$0xff] %v3081_v52  ;;  %3091 = vst [vmem:[%s299_s22 + $0x18] sm:$0xff] %v3083_v19 }
 0x55b   : > { %3093 = vst [vmem:[%s299_s22 + $0x28] sm:$0xff] %v3085_v59  ;;  %3095 = vst [vmem:[%s299_s22 + $0x38] sm:$0xff] %v3087_v13 }
 0x55c   : > { %3500 = shalt.err (!%p3497_p3)
}
 0x55d   : > { %s3501_s17 = scalar_lea.hbm %s6326_s0, 1024  ;;  %s3505_s19 = scalar_lea.hbm %s6382_s6, 2048 }
 0x55e   : > { %p3502_p11 = scmp.ne.s32.totalorder %s6326_s0, %s3501_s17  ;;  %p3506_p4 = scmp.lt.s32.totalorder %s6326_s0, %s6382_s6 }
 0x55f   : > { %p3507_p6 = scmp.lt.s32.totalorder %s3505_s19, %s3501_s17 }
 0x560   : > { %p3503_p9 = pnand %p3502_p11, %p6937_p2 }
 0x561   : > { %p3508_p8 = por %p3507_p6, %p3506_p4 }
 0x562   : > { %p3504_p1 = pneg %p3503_p9 }
 0x564   : > { %p3509_p5 = pnand %p3508_p8, %p3504_p1 }
 0x566   : > { %3512 = shalt.err (!%p3509_p5)
}
 0x567   : > { %s3613_s12 = smov 256  }
 0x568   : > { %3285 = dma.vmem_to_hbm [thread:$0]  (%p6937_p2), %s6332_s21, 1024, %s6326_s0, %s3097_s18, %s3613_s12, %s3613_s12, %s6634_s14  }
 0x569 PF: > { %s3125_s9 = sand.u32 1, %s3543_s23   ;;  %p6938_p7 = scmp.ne.s32.totalorder %s6559_s29, 0 }
 0x56a   : > { %p6939_p12 = scmp.ge.s32.totalorder %s3555_s26, 2  ;;  %s3126_s28 = scalar_lea.sflag [#allocation5], %s3125_s9 }
 0x56c   : > { %p3299_p13 = pnand %p6939_p12, %p6938_p7 }
 0x56e   : > { %p3300_p0 = pneg %p3299_p13 }
 0x570   : > { %3538 = dma.done.wait (%p3300_p0), %s3126_s28, 1024  }
 0x571   : > { %3540 = vsyncadd (%p3300_p0), %s3126_s28, 4294966272  ;;  %p21_p10 = scmp.ge.s32.totalorder %s3730_s20, 4   ;;  %s6940_s23 = smov %s3547_s24 }
 0x572   : > { %s6941_s24 = smov %s3551_s25  ;;  %s6942_s25 = smov %s3746_s7 }
 0x573   : > { %s6943_s26 = smov %s3730_s20  ;;  %23 = sbr.rel (!%p21_p10) target bundleno = 8 (0x8), region = 193 }
 0x578   :  { %3131 = vsyncpa [#allocation4], 1 }
 0x579   :  { %3133 = vsyncpa [#allocation4 + $0x1], 1 }
 0x57a   :  { %3134 = vsyncpa [#allocation7], 1 }
 0x57b   :  { %3135 = vsyncpa [#allocation5], 1 }
 0x57c   :  { %3137 = vsyncpa [#allocation5 + $0x1], 1 }

</bundles_post_ra>
